<compile_context>
chip_gen: v7x
topology: tpu7x:2x2x1
jax: 0.10.0
libtpu: 0.0.40
codegen_flags: <defaults>
</compile_context>

<pallas_src>
import jax
import jax.numpy as jnp
from jax.experimental import pallas as pl
from jax.experimental.pallas import tpu as pltpu

IMAGE_SIZE = (1, 28, 28)
Z_DIM = 100
Z_PAD = 128                       # 100 -> 128 lane-aligned latent
HIDDEN = (128, 256, 512, 1024)
OUT_DIM = 1 * 28 * 28             # 784
OUT_PAD = 896                     # 7 * 128 lane-dense output slab
BN_EPS = 1e-5
INV_SQRT2 = 0.7071067811865476

# Packed small-parameter layout (all widths are multiples of 128, so every
# static slice below is lane-tile aligned):
#   b1 g1 be1 | b2 g2 be2 | b3 g3 be3 | b4 g4 be4 | b5(padded to 896)
_SMALL_WIDTHS = (
    HIDDEN[0], HIDDEN[0], HIDDEN[0],
    HIDDEN[1], HIDDEN[1], HIDDEN[1],
    HIDDEN[2], HIDDEN[2], HIDDEN[2],
    HIDDEN[3], HIDDEN[3], HIDDEN[3],
    OUT_PAD,
)


def _build_small_slices():
    slices, off = [], 0
    for w in _SMALL_WIDTHS:
        slices.append((off, w))
        off += w
    return tuple(slices), off


_SMALL_SLICES, SMALL_TOTAL = _build_small_slices()   # SMALL_TOTAL = 6656 = 52*128


def generator_kernel(
    z_ref,          # (B, Z_PAD)        f32   VMEM
    w1_ref,         # (Z_PAD, 128)      bf16  VMEM
    w2_ref,         # (128, 256)        bf16  VMEM
    w3_ref,         # (256, 512)        bf16  VMEM
    small_ref,      # (1, SMALL_TOTAL)  f32   VMEM (packed biases/gammas/betas)
    w4_hbm,         # (512, 1024)       bf16  HBM (pl.ANY)
    w5_hbm,         # (1024, OUT_PAD)   bf16  HBM (pl.ANY)
    out_ref,        # (B, OUT_PAD)      f32   VMEM
    w4_vmem,        # scratch (512, 1024)    bf16
    w5_vmem,        # scratch (1024, OUT_PAD) bf16
    dma_sems,       # scratch DMA sems (2,)
):
    # Kick off the two big weight DMAs immediately; they are consumed only by
    # layers 4 and 5, so the transfers overlap layers 1-3 / layer-4 compute.
    cp4 = pltpu.make_async_copy(w4_hbm, w4_vmem, dma_sems.at[0])
    cp5 = pltpu.make_async_copy(w5_hbm, w5_vmem, dma_sems.at[1])
    cp4.start()
    cp5.start()

    def sp(i):
        off, width = _SMALL_SLICES[i]
        return small_ref[:, off:off + width]          # static, lane-aligned slice

    inv_b = jnp.float32(1.0 / z_ref.shape[0])

    def linear(x, w, b):
        # bf16 x bf16 MXU matmul, f32 accumulation.
        return jnp.dot(x.astype(jnp.bfloat16), w,
                       preferred_element_type=jnp.float32) + b

    def bn_gelu(h, g, be):
        # Training-mode BatchNorm1d with biased variance, one-pass stats.
        s1 = jnp.sum(h, axis=0, keepdims=True)
        s2 = jnp.sum(h * h, axis=0, keepdims=True)
        mean = s1 * inv_b
        var = jnp.maximum(s2 * inv_b - mean * mean, 0.0)
        hn = (h - mean) * jax.lax.rsqrt(var + BN_EPS)
        hn = hn * g + be
        # Exact GELU (torch.nn.GELU default): 0.5 * x * (1 + erf(x / sqrt(2)))
        return 0.5 * hn * (1.0 + jax.lax.erf(hn * INV_SQRT2))

    h = linear(z_ref[...], w1_ref[...], sp(0))
    h = bn_gelu(h, sp(1), sp(2))

    h = linear(h, w2_ref[...], sp(3))
    h = bn_gelu(h, sp(4), sp(5))

    h = linear(h, w3_ref[...], sp(6))
    h = bn_gelu(h, sp(7), sp(8))

    cp4.wait()
    h = linear(h, w4_vmem[...], sp(9))
    h = bn_gelu(h, sp(10), sp(11))

    cp5.wait()
    h = linear(h, w5_vmem[...], sp(12))
    out_ref[...] = jax.nn.sigmoid(h)


@jax.jit
def generator_forward(z, params):
    """z: (B, Z_DIM) f32 -> image (B, 1, 28, 28) f32."""
    B = z.shape[0]
    z_pad = jnp.pad(z, ((0, 0), (0, Z_PAD - Z_DIM)))  # zero-padded latent

    flat_args = (z_pad, params["w1"], params["w2"], params["w3"],
                 params["small"], params["w4"], params["w5"])

    vmem_spec = pl.BlockSpec(memory_space=pltpu.MemorySpace.VMEM)
    any_spec = pl.BlockSpec(memory_space=pl.ANY)
    in_specs = [vmem_spec] * 5 + [any_spec, any_spec]   # W4, W5 stay in HBM

    out_flat = pl.pallas_call(
        generator_kernel,
        out_shape=jax.ShapeDtypeStruct((B, OUT_PAD), jnp.float32),
        in_specs=in_specs,
        out_specs=vmem_spec,
        scratch_shapes=[
            pltpu.VMEM((HIDDEN[2], HIDDEN[3]), jnp.bfloat16),  # W4 buffer (1 MiB)
            pltpu.VMEM((HIDDEN[3], OUT_PAD), jnp.bfloat16),    # W5 buffer (1.75 MiB)
            pltpu.SemaphoreType.DMA((2,)),
        ],
        compiler_params=pltpu.CompilerParams(vmem_limit_bytes=32 << 20),
    )(*flat_args)

    # Glue: drop padded lanes, reshape to NCHW image (torch semantics).
    return out_flat[:, :OUT_DIM].reshape(B, *IMAGE_SIZE)


def init_params(key):
    """Deterministic synthetic parameters matching the torch module shapes.

    Linear weights are stored transposed as (in, out) in bfloat16; the first
    weight is zero-row-padded 100->128 and the last weight / bias are
    zero-column-padded 784->896.  All biases / BN affine params are packed
    into one (1, SMALL_TOTAL) f32 row in _SMALL_SLICES order.
    """
    dims = (Z_DIM,) + HIDDEN + (OUT_DIM,)
    keys = jax.random.split(key, 2 * (len(dims) - 1))
    weights, small_rows = [], []
    ki = 0
    for li in range(len(dims) - 1):
        fin, fout = dims[li], dims[li + 1]
        w = (jax.random.normal(keys[ki], (fin, fout), jnp.float32)
             * (1.0 / jnp.sqrt(fin)))
        ki += 1
        b = jax.random.normal(keys[ki], (1, fout), jnp.float32) * 0.01
        ki += 1
        if li == 0:                                  # pad K: 100 -> 128
            w = jnp.pad(w, ((0, Z_PAD - Z_DIM), (0, 0)))
        if li == len(dims) - 2:                      # pad N: 784 -> 896
            w = jnp.pad(w, ((0, 0), (0, OUT_PAD - OUT_DIM)))
            b = jnp.pad(b, ((0, 0), (0, OUT_PAD - OUT_DIM)))
        weights.append(w.astype(jnp.bfloat16))
        small_rows.append(b)
        if li < len(dims) - 2:                       # BN follows every Linear but the last
            small_rows.append(jnp.ones((1, fout), jnp.float32))    # gamma
            small_rows.append(jnp.zeros((1, fout), jnp.float32))   # beta
    small = jnp.concatenate(small_rows, axis=1)
    assert small.shape == (1, SMALL_TOTAL), small.shape
    return {"w1": weights[0], "w2": weights[1], "w3": weights[2],
            "w4": weights[3], "w5": weights[4], "small": small}


def reference_forward(z, params):
    """Pure-JAX f32 reference (same bf16 weights, f32 activations)."""
    def sp(i):
        off, width = _SMALL_SLICES[i]
        return params["small"][:, off:off + width]

    h = jnp.pad(z, ((0, 0), (0, Z_PAD - Z_DIM)))
    ws = (params["w1"], params["w2"], params["w3"], params["w4"])
    for li in range(4):
        h = h @ ws[li].astype(jnp.float32) + sp(3 * li)
        mean = jnp.mean(h, axis=0, keepdims=True)
        var = jnp.mean((h - mean) ** 2, axis=0, keepdims=True)
        h = (h - mean) * jax.lax.rsqrt(var + BN_EPS)
        h = h * sp(3 * li + 1) + sp(3 * li + 2)
        h = 0.5 * h * (1.0 + jax.lax.erf(h * INV_SQRT2))
    logits = h @ params["w5"].astype(jnp.float32) + sp(12)
    out = jax.nn.sigmoid(logits)
    return out[:, :OUT_DIM].reshape(z.shape[0], *IMAGE_SIZE)


if __name__ == "__main__":
    key = jax.random.PRNGKey(0)
    k_param, k_z = jax.random.split(key)

    params = init_params(k_param)

    B = 8  # BatchNorm1d training mode needs batch > 1
    z = jax.random.normal(k_z, (B, Z_DIM), jnp.float32)

    img = generator_forward(z, params)
    jax.block_until_ready(img)

    assert img.shape == (B, 1, 28, 28), img.shape
    assert img.dtype == jnp.float32
    assert bool(jnp.all(jnp.isfinite(img)))
    # Sigmoid output lies in [0, 1] (closed interval: f32 rounding can hit the ends).
    assert bool(jnp.all((img >= 0.0) & (img <= 1.0)))

    # Numerical check vs. f32 reference (bf16 activations => loose tolerance).
    ref = reference_forward(z, params)
    max_err = float(jnp.max(jnp.abs(img - ref)))
    assert max_err < 3e-2, f"max abs error vs reference: {max_err}"

    print("KERNEL_OK")
</pallas_src>

<mosaic_0001>
module attributes {stable_mosaic.version = 11 : i64} {
  func.func @generator_kernel(%arg0: memref<8x128xf32, #tpu.memory_space<vmem>>, %arg1: memref<128x128xbf16, #tpu.memory_space<vmem>>, %arg2: memref<128x256xbf16, #tpu.memory_space<vmem>>, %arg3: memref<256x512xbf16, #tpu.memory_space<vmem>>, %arg4: memref<1x6656xf32, #tpu.memory_space<vmem>>, %arg5: memref<512x1024xbf16, #tpu.memory_space<any>>, %arg6: memref<1024x896xbf16, #tpu.memory_space<any>>, %arg7: memref<8x896xf32, #tpu.memory_space<vmem>>, %arg8: memref<512x1024xbf16, #tpu.memory_space<vmem>>, %arg9: memref<1024x896xbf16, #tpu.memory_space<vmem>>, %arg10: memref<2x!tpu.dma_semaphore, #tpu.memory_space<semaphore_mem>>) attributes {dimension_semantics = [], scalar_prefetch = 0 : i64, scratch_operands = 3 : i64, tpu.core_type = #tpu.core_type<tc>} {
    %c0_i32 = arith.constant 0 : i32
    %0 = tpu.memref_slice %arg10[%c0_i32] : memref<2x!tpu.dma_semaphore, #tpu.memory_space<semaphore_mem>> -> memref<1x!tpu.dma_semaphore, #tpu.memory_space<semaphore_mem>>
    %1 = tpu.memref_squeeze %0 : memref<1x!tpu.dma_semaphore, #tpu.memory_space<semaphore_mem>> -> memref<!tpu.dma_semaphore, #tpu.memory_space<semaphore_mem>>
    tpu.enqueue_dma source(%arg5 : memref<512x1024xbf16, #tpu.memory_space<any>>) target(%arg8 : memref<512x1024xbf16, #tpu.memory_space<vmem>>) target_semaphore(%1 : memref<!tpu.dma_semaphore, #tpu.memory_space<semaphore_mem>>)
    %c1_i32 = arith.constant 1 : i32
    %2 = tpu.memref_slice %arg10[%c1_i32] : memref<2x!tpu.dma_semaphore, #tpu.memory_space<semaphore_mem>> -> memref<1x!tpu.dma_semaphore, #tpu.memory_space<semaphore_mem>>
    %3 = tpu.memref_squeeze %2 : memref<1x!tpu.dma_semaphore, #tpu.memory_space<semaphore_mem>> -> memref<!tpu.dma_semaphore, #tpu.memory_space<semaphore_mem>>
    tpu.enqueue_dma source(%arg6 : memref<1024x896xbf16, #tpu.memory_space<any>>) target(%arg9 : memref<1024x896xbf16, #tpu.memory_space<vmem>>) target_semaphore(%3 : memref<!tpu.dma_semaphore, #tpu.memory_space<semaphore_mem>>)
    %c0 = arith.constant 0 : index
    %c0_0 = arith.constant 0 : index
    %4 = vector.load %arg0[%c0, %c0_0] : memref<8x128xf32, #tpu.memory_space<vmem>>, vector<8x128xf32>
    %c0_1 = arith.constant 0 : index
    %c0_2 = arith.constant 0 : index
    %5 = vector.load %arg1[%c0_1, %c0_2] : memref<128x128xbf16, #tpu.memory_space<vmem>>, vector<128x128xbf16>
    %c0_3 = arith.constant 0 : index
    %c0_4 = arith.constant 0 : index
    %6 = vector.load %arg4[%c0_3, %c0_4] : memref<1x6656xf32, #tpu.memory_space<vmem>>, vector<1x128xf32>
    %7 = arith.truncf %4 : vector<8x128xf32> to vector<8x128xbf16>
    %cst = arith.constant dense<0.000000e+00> : vector<8x128xf32>
    %8 = tpu.matmul %7, %5, %cst {dimension_numbers = #tpu.dot_dimension_numbers<[1], [0], [0], [1], [0, 0, 1, 1], [], []>} : vector<8x128xbf16>, vector<128x128xbf16>, vector<8x128xf32> -> vector<8x128xf32>
    %9 = vector.broadcast %6 : vector<1x128xf32> to vector<8x128xf32>
    %10 = arith.addf %8, %9 : vector<8x128xf32>
    %c0_5 = arith.constant 0 : index
    %c128 = arith.constant 128 : index
    %11 = vector.load %arg4[%c0_5, %c128] : memref<1x6656xf32, #tpu.memory_space<vmem>>, vector<1x128xf32>
    %c0_6 = arith.constant 0 : index
    %c256 = arith.constant 256 : index
    %12 = vector.load %arg4[%c0_6, %c256] : memref<1x6656xf32, #tpu.memory_space<vmem>>, vector<1x128xf32>
    %cst_7 = arith.constant dense<0.000000e+00> : vector<128xf32>
    %13 = vector.multi_reduction <add>, %10, %cst_7 [0] : vector<8x128xf32> to vector<128xf32>
    %14 = vector.shape_cast %13 : vector<128xf32> to vector<1x128xf32>
    %15 = arith.mulf %10, %10 : vector<8x128xf32>
    %cst_8 = arith.constant dense<0.000000e+00> : vector<128xf32>
    %16 = vector.multi_reduction <add>, %15, %cst_8 [0] : vector<8x128xf32> to vector<128xf32>
    %17 = vector.shape_cast %16 : vector<128xf32> to vector<1x128xf32>
    %cst_9 = arith.constant 1.250000e-01 : f32
    %18 = vector.broadcast %cst_9 : f32 to vector<1x128xf32>
    %19 = arith.mulf %14, %18 : vector<1x128xf32>
    %cst_10 = arith.constant 1.250000e-01 : f32
    %20 = vector.broadcast %cst_10 : f32 to vector<1x128xf32>
    %21 = arith.mulf %17, %20 : vector<1x128xf32>
    %22 = arith.mulf %19, %19 : vector<1x128xf32>
    %23 = arith.subf %21, %22 : vector<1x128xf32>
    %cst_11 = arith.constant 0.000000e+00 : f32
    %24 = vector.broadcast %cst_11 : f32 to vector<1x128xf32>
    %25 = arith.maximumf %23, %24 : vector<1x128xf32>
    %26 = vector.broadcast %19 : vector<1x128xf32> to vector<8x128xf32>
    %27 = arith.subf %10, %26 : vector<8x128xf32>
    %cst_12 = arith.constant 9.99999974E-6 : f32
    %28 = vector.broadcast %cst_12 : f32 to vector<1x128xf32>
    %29 = arith.addf %25, %28 : vector<1x128xf32>
    %30 = math.rsqrt %29 : vector<1x128xf32>
    %31 = vector.broadcast %30 : vector<1x128xf32> to vector<8x128xf32>
    %32 = arith.mulf %27, %31 : vector<8x128xf32>
    %33 = vector.broadcast %11 : vector<1x128xf32> to vector<8x128xf32>
    %34 = arith.mulf %32, %33 : vector<8x128xf32>
    %35 = vector.broadcast %12 : vector<1x128xf32> to vector<8x128xf32>
    %36 = arith.addf %34, %35 : vector<8x128xf32>
    %cst_13 = arith.constant 5.000000e-01 : f32
    %37 = vector.broadcast %cst_13 : f32 to vector<8x128xf32>
    %38 = arith.mulf %37, %36 : vector<8x128xf32>
    %cst_14 = arith.constant 0.707106769 : f32
    %39 = vector.broadcast %cst_14 : f32 to vector<8x128xf32>
    %40 = arith.mulf %36, %39 : vector<8x128xf32>
    %41 = math.erf %40 : vector<8x128xf32>
    %cst_15 = arith.constant 1.000000e+00 : f32
    %42 = vector.broadcast %cst_15 : f32 to vector<8x128xf32>
    %43 = arith.addf %42, %41 : vector<8x128xf32>
    %44 = arith.mulf %38, %43 : vector<8x128xf32>
    %c0_16 = arith.constant 0 : index
    %c0_17 = arith.constant 0 : index
    %45 = vector.load %arg2[%c0_16, %c0_17] : memref<128x256xbf16, #tpu.memory_space<vmem>>, vector<128x256xbf16>
    %c0_18 = arith.constant 0 : index
    %c384 = arith.constant 384 : index
    %46 = vector.load %arg4[%c0_18, %c384] : memref<1x6656xf32, #tpu.memory_space<vmem>>, vector<1x256xf32>
    %47 = arith.truncf %44 : vector<8x128xf32> to vector<8x128xbf16>
    %cst_19 = arith.constant dense<0.000000e+00> : vector<8x256xf32>
    %48 = tpu.matmul %47, %45, %cst_19 {dimension_numbers = #tpu.dot_dimension_numbers<[1], [0], [0], [1], [0, 0, 1, 1], [], []>} : vector<8x128xbf16>, vector<128x256xbf16>, vector<8x256xf32> -> vector<8x256xf32>
    %49 = vector.broadcast %46 : vector<1x256xf32> to vector<8x256xf32>
    %50 = arith.addf %48, %49 : vector<8x256xf32>
    %c0_20 = arith.constant 0 : index
    %c640 = arith.constant 640 : index
    %51 = vector.load %arg4[%c0_20, %c640] : memref<1x6656xf32, #tpu.memory_space<vmem>>, vector<1x256xf32>
    %c0_21 = arith.constant 0 : index
    %c896 = arith.constant 896 : index
    %52 = vector.load %arg4[%c0_21, %c896] : memref<1x6656xf32, #tpu.memory_space<vmem>>, vector<1x256xf32>
    %cst_22 = arith.constant dense<0.000000e+00> : vector<256xf32>
    %53 = vector.multi_reduction <add>, %50, %cst_22 [0] : vector<8x256xf32> to vector<256xf32>
    %54 = vector.shape_cast %53 : vector<256xf32> to vector<1x256xf32>
    %55 = arith.mulf %50, %50 : vector<8x256xf32>
    %cst_23 = arith.constant dense<0.000000e+00> : vector<256xf32>
    %56 = vector.multi_reduction <add>, %55, %cst_23 [0] : vector<8x256xf32> to vector<256xf32>
    %57 = vector.shape_cast %56 : vector<256xf32> to vector<1x256xf32>
    %cst_24 = arith.constant 1.250000e-01 : f32
    %58 = vector.broadcast %cst_24 : f32 to vector<1x256xf32>
    %59 = arith.mulf %54, %58 : vector<1x256xf32>
    %cst_25 = arith.constant 1.250000e-01 : f32
    %60 = vector.broadcast %cst_25 : f32 to vector<1x256xf32>
    %61 = arith.mulf %57, %60 : vector<1x256xf32>
    %62 = arith.mulf %59, %59 : vector<1x256xf32>
    %63 = arith.subf %61, %62 : vector<1x256xf32>
    %cst_26 = arith.constant 0.000000e+00 : f32
    %64 = vector.broadcast %cst_26 : f32 to vector<1x256xf32>
    %65 = arith.maximumf %63, %64 : vector<1x256xf32>
    %66 = vector.broadcast %59 : vector<1x256xf32> to vector<8x256xf32>
    %67 = arith.subf %50, %66 : vector<8x256xf32>
    %cst_27 = arith.constant 9.99999974E-6 : f32
    %68 = vector.broadcast %cst_27 : f32 to vector<1x256xf32>
    %69 = arith.addf %65, %68 : vector<1x256xf32>
    %70 = math.rsqrt %69 : vector<1x256xf32>
    %71 = vector.broadcast %70 : vector<1x256xf32> to vector<8x256xf32>
    %72 = arith.mulf %67, %71 : vector<8x256xf32>
    %73 = vector.broadcast %51 : vector<1x256xf32> to vector<8x256xf32>
    %74 = arith.mulf %72, %73 : vector<8x256xf32>
    %75 = vector.broadcast %52 : vector<1x256xf32> to vector<8x256xf32>
    %76 = arith.addf %74, %75 : vector<8x256xf32>
    %cst_28 = arith.constant 5.000000e-01 : f32
    %77 = vector.broadcast %cst_28 : f32 to vector<8x256xf32>
    %78 = arith.mulf %77, %76 : vector<8x256xf32>
    %cst_29 = arith.constant 0.707106769 : f32
    %79 = vector.broadcast %cst_29 : f32 to vector<8x256xf32>
    %80 = arith.mulf %76, %79 : vector<8x256xf32>
    %81 = math.erf %80 : vector<8x256xf32>
    %cst_30 = arith.constant 1.000000e+00 : f32
    %82 = vector.broadcast %cst_30 : f32 to vector<8x256xf32>
    %83 = arith.addf %82, %81 : vector<8x256xf32>
    %84 = arith.mulf %78, %83 : vector<8x256xf32>
    %c0_31 = arith.constant 0 : index
    %c0_32 = arith.constant 0 : index
    %85 = vector.load %arg3[%c0_31, %c0_32] : memref<256x512xbf16, #tpu.memory_space<vmem>>, vector<256x512xbf16>
    %c0_33 = arith.constant 0 : index
    %c1152 = arith.constant 1152 : index
    %86 = vector.load %arg4[%c0_33, %c1152] : memref<1x6656xf32, #tpu.memory_space<vmem>>, vector<1x512xf32>
    %87 = arith.truncf %84 : vector<8x256xf32> to vector<8x256xbf16>
    %cst_34 = arith.constant dense<0.000000e+00> : vector<8x512xf32>
    %88 = tpu.matmul %87, %85, %cst_34 {dimension_numbers = #tpu.dot_dimension_numbers<[1], [0], [0], [1], [0, 0, 1, 1], [], []>} : vector<8x256xbf16>, vector<256x512xbf16>, vector<8x512xf32> -> vector<8x512xf32>
    %89 = vector.broadcast %86 : vector<1x512xf32> to vector<8x512xf32>
    %90 = arith.addf %88, %89 : vector<8x512xf32>
    %c0_35 = arith.constant 0 : index
    %c1664 = arith.constant 1664 : index
    %91 = vector.load %arg4[%c0_35, %c1664] : memref<1x6656xf32, #tpu.memory_space<vmem>>, vector<1x512xf32>
    %c0_36 = arith.constant 0 : index
    %c2176 = arith.constant 2176 : index
    %92 = vector.load %arg4[%c0_36, %c2176] : memref<1x6656xf32, #tpu.memory_space<vmem>>, vector<1x512xf32>
    %cst_37 = arith.constant dense<0.000000e+00> : vector<512xf32>
    %93 = vector.multi_reduction <add>, %90, %cst_37 [0] : vector<8x512xf32> to vector<512xf32>
    %94 = vector.shape_cast %93 : vector<512xf32> to vector<1x512xf32>
    %95 = arith.mulf %90, %90 : vector<8x512xf32>
    %cst_38 = arith.constant dense<0.000000e+00> : vector<512xf32>
    %96 = vector.multi_reduction <add>, %95, %cst_38 [0] : vector<8x512xf32> to vector<512xf32>
    %97 = vector.shape_cast %96 : vector<512xf32> to vector<1x512xf32>
    %cst_39 = arith.constant 1.250000e-01 : f32
    %98 = vector.broadcast %cst_39 : f32 to vector<1x512xf32>
    %99 = arith.mulf %94, %98 : vector<1x512xf32>
    %cst_40 = arith.constant 1.250000e-01 : f32
    %100 = vector.broadcast %cst_40 : f32 to vector<1x512xf32>
    %101 = arith.mulf %97, %100 : vector<1x512xf32>
    %102 = arith.mulf %99, %99 : vector<1x512xf32>
    %103 = arith.subf %101, %102 : vector<1x512xf32>
    %cst_41 = arith.constant 0.000000e+00 : f32
    %104 = vector.broadcast %cst_41 : f32 to vector<1x512xf32>
    %105 = arith.maximumf %103, %104 : vector<1x512xf32>
    %106 = vector.broadcast %99 : vector<1x512xf32> to vector<8x512xf32>
    %107 = arith.subf %90, %106 : vector<8x512xf32>
    %cst_42 = arith.constant 9.99999974E-6 : f32
    %108 = vector.broadcast %cst_42 : f32 to vector<1x512xf32>
    %109 = arith.addf %105, %108 : vector<1x512xf32>
    %110 = math.rsqrt %109 : vector<1x512xf32>
    %111 = vector.broadcast %110 : vector<1x512xf32> to vector<8x512xf32>
    %112 = arith.mulf %107, %111 : vector<8x512xf32>
    %113 = vector.broadcast %91 : vector<1x512xf32> to vector<8x512xf32>
    %114 = arith.mulf %112, %113 : vector<8x512xf32>
    %115 = vector.broadcast %92 : vector<1x512xf32> to vector<8x512xf32>
    %116 = arith.addf %114, %115 : vector<8x512xf32>
    %cst_43 = arith.constant 5.000000e-01 : f32
    %117 = vector.broadcast %cst_43 : f32 to vector<8x512xf32>
    %118 = arith.mulf %117, %116 : vector<8x512xf32>
    %cst_44 = arith.constant 0.707106769 : f32
    %119 = vector.broadcast %cst_44 : f32 to vector<8x512xf32>
    %120 = arith.mulf %116, %119 : vector<8x512xf32>
    %121 = math.erf %120 : vector<8x512xf32>
    %cst_45 = arith.constant 1.000000e+00 : f32
    %122 = vector.broadcast %cst_45 : f32 to vector<8x512xf32>
    %123 = arith.addf %122, %121 : vector<8x512xf32>
    %124 = arith.mulf %118, %123 : vector<8x512xf32>
    %c0_i32_46 = arith.constant 0 : i32
    %125 = tpu.memref_slice %arg10[%c0_i32_46] : memref<2x!tpu.dma_semaphore, #tpu.memory_space<semaphore_mem>> -> memref<1x!tpu.dma_semaphore, #tpu.memory_space<semaphore_mem>>
    %126 = tpu.memref_squeeze %125 : memref<1x!tpu.dma_semaphore, #tpu.memory_space<semaphore_mem>> -> memref<!tpu.dma_semaphore, #tpu.memory_space<semaphore_mem>>
    tpu.wait_dma2 semaphore(%126 : memref<!tpu.dma_semaphore, #tpu.memory_space<semaphore_mem>>) src(%arg5 : memref<512x1024xbf16, #tpu.memory_space<any>>) dst(%arg8 : memref<512x1024xbf16, #tpu.memory_space<vmem>>)
    %c0_47 = arith.constant 0 : index
    %c0_48 = arith.constant 0 : index
    %127 = vector.load %arg8[%c0_47, %c0_48] : memref<512x1024xbf16, #tpu.memory_space<vmem>>, vector<512x1024xbf16>
    %c0_49 = arith.constant 0 : index
    %c2688 = arith.constant 2688 : index
    %128 = vector.load %arg4[%c0_49, %c2688] : memref<1x6656xf32, #tpu.memory_space<vmem>>, vector<1x1024xf32>
    %129 = arith.truncf %124 : vector<8x512xf32> to vector<8x512xbf16>
    %cst_50 = arith.constant dense<0.000000e+00> : vector<8x1024xf32>
    %130 = tpu.matmul %129, %127, %cst_50 {dimension_numbers = #tpu.dot_dimension_numbers<[1], [0], [0], [1], [0, 0, 1, 1], [], []>} : vector<8x512xbf16>, vector<512x1024xbf16>, vector<8x1024xf32> -> vector<8x1024xf32>
    %131 = vector.broadcast %128 : vector<1x1024xf32> to vector<8x1024xf32>
    %132 = arith.addf %130, %131 : vector<8x1024xf32>
    %c0_51 = arith.constant 0 : index
    %c3712 = arith.constant 3712 : index
    %133 = vector.load %arg4[%c0_51, %c3712] : memref<1x6656xf32, #tpu.memory_space<vmem>>, vector<1x1024xf32>
    %c0_52 = arith.constant 0 : index
    %c4736 = arith.constant 4736 : index
    %134 = vector.load %arg4[%c0_52, %c4736] : memref<1x6656xf32, #tpu.memory_space<vmem>>, vector<1x1024xf32>
    %cst_53 = arith.constant dense<0.000000e+00> : vector<1024xf32>
    %135 = vector.multi_reduction <add>, %132, %cst_53 [0] : vector<8x1024xf32> to vector<1024xf32>
    %136 = vector.shape_cast %135 : vector<1024xf32> to vector<1x1024xf32>
    %137 = arith.mulf %132, %132 : vector<8x1024xf32>
    %cst_54 = arith.constant dense<0.000000e+00> : vector<1024xf32>
    %138 = vector.multi_reduction <add>, %137, %cst_54 [0] : vector<8x1024xf32> to vector<1024xf32>
    %139 = vector.shape_cast %138 : vector<1024xf32> to vector<1x1024xf32>
    %cst_55 = arith.constant 1.250000e-01 : f32
    %140 = vector.broadcast %cst_55 : f32 to vector<1x1024xf32>
    %141 = arith.mulf %136, %140 : vector<1x1024xf32>
    %cst_56 = arith.constant 1.250000e-01 : f32
    %142 = vector.broadcast %cst_56 : f32 to vector<1x1024xf32>
    %143 = arith.mulf %139, %142 : vector<1x1024xf32>
    %144 = arith.mulf %141, %141 : vector<1x1024xf32>
    %145 = arith.subf %143, %144 : vector<1x1024xf32>
    %cst_57 = arith.constant 0.000000e+00 : f32
    %146 = vector.broadcast %cst_57 : f32 to vector<1x1024xf32>
    %147 = arith.maximumf %145, %146 : vector<1x1024xf32>
    %148 = vector.broadcast %141 : vector<1x1024xf32> to vector<8x1024xf32>
    %149 = arith.subf %132, %148 : vector<8x1024xf32>
    %cst_58 = arith.constant 9.99999974E-6 : f32
    %150 = vector.broadcast %cst_58 : f32 to vector<1x1024xf32>
    %151 = arith.addf %147, %150 : vector<1x1024xf32>
    %152 = math.rsqrt %151 : vector<1x1024xf32>
    %153 = vector.broadcast %152 : vector<1x1024xf32> to vector<8x1024xf32>
    %154 = arith.mulf %149, %153 : vector<8x1024xf32>
    %155 = vector.broadcast %133 : vector<1x1024xf32> to vector<8x1024xf32>
    %156 = arith.mulf %154, %155 : vector<8x1024xf32>
    %157 = vector.broadcast %134 : vector<1x1024xf32> to vector<8x1024xf32>
    %158 = arith.addf %156, %157 : vector<8x1024xf32>
    %cst_59 = arith.constant 5.000000e-01 : f32
    %159 = vector.broadcast %cst_59 : f32 to vector<8x1024xf32>
    %160 = arith.mulf %159, %158 : vector<8x1024xf32>
    %cst_60 = arith.constant 0.707106769 : f32
    %161 = vector.broadcast %cst_60 : f32 to vector<8x1024xf32>
    %162 = arith.mulf %158, %161 : vector<8x1024xf32>
    %163 = math.erf %162 : vector<8x1024xf32>
    %cst_61 = arith.constant 1.000000e+00 : f32
    %164 = vector.broadcast %cst_61 : f32 to vector<8x1024xf32>
    %165 = arith.addf %164, %163 : vector<8x1024xf32>
    %166 = arith.mulf %160, %165 : vector<8x1024xf32>
    %c1_i32_62 = arith.constant 1 : i32
    %167 = tpu.memref_slice %arg10[%c1_i32_62] : memref<2x!tpu.dma_semaphore, #tpu.memory_space<semaphore_mem>> -> memref<1x!tpu.dma_semaphore, #tpu.memory_space<semaphore_mem>>
    %168 = tpu.memref_squeeze %167 : memref<1x!tpu.dma_semaphore, #tpu.memory_space<semaphore_mem>> -> memref<!tpu.dma_semaphore, #tpu.memory_space<semaphore_mem>>
    tpu.wait_dma2 semaphore(%168 : memref<!tpu.dma_semaphore, #tpu.memory_space<semaphore_mem>>) src(%arg6 : memref<1024x896xbf16, #tpu.memory_space<any>>) dst(%arg9 : memref<1024x896xbf16, #tpu.memory_space<vmem>>)
    %c0_63 = arith.constant 0 : index
    %c0_64 = arith.constant 0 : index
    %169 = vector.load %arg9[%c0_63, %c0_64] : memref<1024x896xbf16, #tpu.memory_space<vmem>>, vector<1024x896xbf16>
    %c0_65 = arith.constant 0 : index
    %c5760 = arith.constant 5760 : index
    %170 = vector.load %arg4[%c0_65, %c5760] : memref<1x6656xf32, #tpu.memory_space<vmem>>, vector<1x896xf32>
    %171 = arith.truncf %166 : vector<8x1024xf32> to vector<8x1024xbf16>
    %cst_66 = arith.constant dense<0.000000e+00> : vector<8x896xf32>
    %172 = tpu.matmul %171, %169, %cst_66 {dimension_numbers = #tpu.dot_dimension_numbers<[1], [0], [0], [1], [0, 0, 1, 1], [], []>} : vector<8x1024xbf16>, vector<1024x896xbf16>, vector<8x896xf32> -> vector<8x896xf32>
    %173 = vector.broadcast %170 : vector<1x896xf32> to vector<8x896xf32>
    %174 = arith.addf %172, %173 : vector<8x896xf32>
    %175 = arith.negf %174 : vector<8x896xf32>
    %176 = math.exp %175 : vector<8x896xf32>
    %cst_67 = arith.constant 1.000000e+00 : f32
    %177 = vector.broadcast %cst_67 : f32 to vector<8x896xf32>
    %178 = arith.addf %177, %176 : vector<8x896xf32>
    %179 = arith.divf %177, %178 : vector<8x896xf32>
    %c0_68 = arith.constant 0 : index
    %c0_69 = arith.constant 0 : index
    %180 = vector.load %arg7[%c0_68, %c0_69] : memref<8x896xf32, #tpu.memory_space<vmem>>, vector<8x896xf32>
    tpu.vector_store %arg7[%c0_68, %c0_69], %179 {strides = array<i32>} : memref<8x896xf32, #tpu.memory_space<vmem>>, vector<8x896xf32>,
    return
  }
}

</mosaic_0001>

<bundles_post_ra>
// kernel: generator_forward.1
= control target key start
LH: loop header
LB: loop body
LE: loop exit
PB: predicated region body
PF: predicated region fallthrough
CT: control target
= control target key end

     0   :  { %12 = vsyncpa [#allocation6], 0  ;;  %s4448_s0 = inlined_call_operand.vmem [shape: f32[8,128], index: 0, kind: input, shape index: {}]   ;;  %s4449_s1 = inlined_call_operand.hbm [shape: bf16[128,128], index: 1, kind: input, shape index: {}]   ;;  %s4450_s2 = inlined_call_operand.hbm [shape: bf16[128,256], index: 2, kind: input, shape index: {}]   ;;  %s4451_s3 = inlined_call_operand.hbm [shape: bf16[256,512], index: 3, kind: input, shape index: {}]   ;;  %s4452_s4 = inlined_call_operand.hbm [shape: f32[1,6656], index: 4, kind: input, shape index: {}]   ;;  %s4453_s5 = inlined_call_operand.hbm [shape: bf16[512,1024], index: 5, kind: input, shape index: {}]   ;;  %s4454_s6 = inlined_call_operand.hbm [shape: bf16[1024,896], index: 6, kind: input, shape index: {}]   ;;  %s4455_s7 = inlined_call_operand.vmem [shape: f32[8,896], index: 7, kind: output, shape index: {}]  }
   0x1   :  { %13 = vsyncpa [#allocation8], 0 }
   0x2   :  { %14 = vsyncpa [#allocation11], 0  ;;  %s3978_s24 = smov [#allocation7]   ;;  %s3880_s28 = scalar_lea.hbm %s4450_s2, 2048 }
   0x3   :  { %s34_s25 = sshll.u32 %s3978_s24, 4  ;;  %p3881_p0 = scmp.ne.s32.totalorder %s4450_s2, %s3880_s28  ;;  %s35_s25 = int_to_ptr.vmem [resolvable:$true] %s34_s25 }
   0x4   :  { %p3884_p1 = scmp.lt.u32.totalorder %s3880_s28, %s4450_s2 }
   0x6   :  { %p3886_p2 = pnand %p3884_p1, %p3881_p0 }
   0x8   :  { %3889 = shalt.err (!%p3886_p2)
}
   0x9   :  { %s3890_s10 = scalar_lea.vmem %s35_s25, 2048  ;;  %p3895_p4 = scmp.lt.s32.totalorder %s35_s25, %s35_s25 }
   0xa   :  { %p3891_p3 = scmp.ne.s32.totalorder %s35_s25, %s3890_s10  ;;  %p3896_p5 = scmp.lt.s32.totalorder %s3890_s10, %s3890_s10 }
   0xc   :  { %p3897_p6 = por %p3896_p5, %p3895_p4 }
   0xe   :  { %p3898_p7 = pnand %p3897_p6, %p3891_p3 }
  0x10   :  { %3901 = shalt.err (!%p3898_p7)
}
  0x11   :  { %s3979_s11 = smov 128   ;;  %s3980_s12 = smov 8  }
  0x12   :  { %40 = dma.hbm_to_vmem [thread:$0]  %s4450_s2, 2048, %s35_s25, [#allocation8], %s3979_s11, %s3979_s11, %s3980_s12  }
  0x13   :  { %s3981_s15 = smov [#allocation5]   ;;  %s3902_s19 = scalar_lea.hbm %s4449_s1, 1024 }
  0x14   :  { %s22_s16 = sshll.u32 %s3981_s15, 4  ;;  %p3903_p8 = scmp.ne.s32.totalorder %s4449_s1, %s3902_s19  ;;  %s23_s16 = int_to_ptr.vmem [resolvable:$true] %s22_s16 }
  0x15   :  { %p3906_p9 = scmp.lt.u32.totalorder %s3902_s19, %s4449_s1 }
  0x17   :  { %p3908_p10 = pnand %p3906_p9, %p3903_p8 }
  0x19   :  { %3911 = shalt.err (!%p3908_p10)
}
  0x1a   :  { %s3912_s24 = scalar_lea.vmem %s23_s16, 1024  ;;  %p3917_p12 = scmp.lt.s32.totalorder %s23_s16, %s23_s16 }
  0x1b   :  { %p3913_p11 = scmp.ne.s32.totalorder %s23_s16, %s3912_s24  ;;  %p3918_p13 = scmp.lt.s32.totalorder %s3912_s24, %s3912_s24 }
  0x1d   :  { %p3919_p0 = por %p3918_p13, %p3917_p12 }
  0x1f   :  { %p3920_p1 = pnand %p3919_p0, %p3913_p11 }
  0x21   :  { %3923 = shalt.err (!%p3920_p1)
}
  0x22   :  { %s3982_s2 = smov 64   ;;  %s3983_s25 = smov 4  }
  0x23   :  { %28 = dma.hbm_to_vmem [thread:$0]  %s4449_s1, 1024, %s23_s16, [#allocation6], %s3982_s2, %s3982_s2, %s3983_s25  }
  0x24   :  { %s3984_s28 = smov [#allocation9]   ;;  %s3924_s9 = scalar_lea.hbm %s4451_s3, 8192 }
  0x25   :  { %s46_s29 = sshll.u32 %s3984_s28, 4  ;;  %p3925_p2 = scmp.ne.s32.totalorder %s4451_s3, %s3924_s9  ;;  %s47_s29 = int_to_ptr.vmem [resolvable:$true] %s46_s29 }
  0x26   :  { %p3928_p3 = scmp.lt.u32.totalorder %s3924_s9, %s4451_s3 }
  0x28   :  { %p3930_p4 = pnand %p3928_p3, %p3925_p2 }
  0x2a   :  { %3933 = shalt.err (!%p3930_p4)
}
  0x2b   :  { %s3934_s17 = scalar_lea.vmem %s47_s29, 8192  ;;  %p3939_p6 = scmp.lt.s32.totalorder %s47_s29, %s47_s29 }
  0x2c   :  { %p3935_p5 = scmp.ne.s32.totalorder %s47_s29, %s3934_s17  ;;  %p3940_p7 = scmp.lt.s32.totalorder %s3934_s17, %s3934_s17 }
  0x2e   :  { %p3941_p8 = por %p3940_p7, %p3939_p6 }
  0x30   :  { %p3942_p9 = pnand %p3941_p8, %p3935_p5 }
  0x32   :  { %3945 = shalt.err (!%p3942_p9)
}
  0x33   :  { %s3985_s1 = smov 256   ;;  %s3986_s16 = smov 16  }
  0x34   :  { %52 = dma.hbm_to_vmem [thread:$0]  %s4451_s3, 8192, %s47_s29, [#allocation8], %s3985_s1, %s3985_s1, %s3986_s16  }
  0x35   :  { %s3987_s20 = smov [#allocation10]   ;;  %s3946_s24 = scalar_lea.hbm %s4452_s4, 832 }
  0x36   :  { %s59_s21 = sshll.u32 %s3987_s20, 4  ;;  %p3947_p10 = scmp.ne.s32.totalorder %s4452_s4, %s3946_s24  ;;  %s60_s21 = int_to_ptr.vmem [resolvable:$true] %s59_s21 }
  0x37   :  { %p3950_p11 = scmp.lt.u32.totalorder %s3946_s24, %s4452_s4 }
  0x39   :  { %p3952_p12 = pnand %p3950_p11, %p3947_p10 }
  0x3b   :  { %3955 = shalt.err (!%p3952_p12)
}
  0x3c   :  { %s3956_s8 = scalar_lea.vmem %s60_s21, 832  ;;  %p3961_p0 = scmp.lt.s32.totalorder %s60_s21, %s60_s21 }
  0x3d   :  { %p3957_p13 = scmp.ne.s32.totalorder %s60_s21, %s3956_s8  ;;  %p3962_p1 = scmp.lt.s32.totalorder %s3956_s8, %s3956_s8 }
  0x3f   :  { %p3963_p2 = por %p3962_p1, %p3961_p0 }
  0x41   :  { %p3964_p3 = pnand %p3963_p2, %p3957_p13 }
  0x43   :  { %3967 = shalt.err (!%p3964_p3)
}
  0x44   :  { %62 = dma.hbm_to_vmem [thread:$0]  %s4452_s4, 832, %s60_s21, [#allocation11]  }
  0x45   :  { %3968 = dma.done.wait [#allocation6], 1024  }
  0x46   :  { %3969 = vsyncadd [#allocation6], 4294966272 }
  0x47   :  { %3970 = dma.done.wait [#allocation8], 10240  }
  0x48   :  { %3971 = vsyncadd [#allocation8], 4294957056 }
  0x49   :  { %3972 = dma.done.wait [#allocation11], 832  }
  0x4a   :  { %3973 = vsyncadd [#allocation11], 4294966464  ;;  %s80_s9 = sld [smem:[#allocation0]]   ;;  %s3988_s10 = smov 1024   ;;  %v3989_v0 = vmov 0.0   ;;  %vm3990_vm0 = vmmov 0  }
  0x4b   :  { %92 = sst [smem:[#allocation13]] %s3988_s10  ;;  %3553 = vmatprep.subr.bf16.mxu0 %v3989_v0  ;;  %3569 = vmatprep.mubr.msk.bf16.mxu0 %vm3990_vm0, %v3989_v0  ;;  %s3991_s13 = smov [#allocation2]   ;;  %v4002_v20 = vmov 0  }
  0x4c   :  { %94 = sst [smem:[#allocation13 + $0x1]] %s3988_s10  ;;  %s88_s14 = sshll.u32 %s3991_s13, 4  ;;  %443 = vmatprep.mubr.bf16.mxu1 %v4002_v20  ;;  %s89_s14 = int_to_ptr.vmem [resolvable:$true] %s88_s14 }
  0x4d   :  { %96 = sst [smem:[#allocation13 + $0x2]] %s3980_s12  ;;  %s3992_s4 = smov 512  }
  0x4e   :  { %98 = sst [smem:[#allocation13 + $0x3]] %s3982_s2  ;;  %s3993_s1 = smov 2  }
  0x4f   :  { %100 = sst [smem:[#allocation13 + $0x4]] %s3979_s11  ;;  %s3994_s16 = smov [#allocation4]  }
  0x50   :  { %104 = sst [smem:[#allocation13 + $0x6]] %s3992_s4  ;;  %s3352_s15 = sshll.u32 %s80_s9, 26 }
  0x51   :  { %106 = sst [smem:[#allocation13 + $0x7]] %s3982_s2  ;;  %s3353_s17 = sadd.s32 134217728, %s3352_s15 }
  0x52   :  { %108 = sst [smem:[#allocation13 + $0x8]] %s3983_s25  ;;  %s3995_s18 = smov [#allocation12]  }
  0x53   :  { %102 = sst [smem:[#allocation13 + $0x5]] %s3993_s1  ;;  %s3996_s20 = smov 896  }
  0x54   :  { %110 = dma.general %s4453_s5, 32768, %s89_s14, %s3994_s16, %s3995_s18, [#allocation13], %s3353_s17, 0  }
  0x55   :  { %127 = sst [smem:[#allocation15]] %s3996_s20  ;;  %s3997_s21 = smov 7  }
  0x56   :  { %129 = sst [smem:[#allocation15 + $0x1]] %s3996_s20  ;;  %s3998_s22 = smov [#allocation3]  }
  0x57   :  { %131 = sst [smem:[#allocation15 + $0x2]] %s3997_s21  ;;  %s123_s23 = sshll.u32 %s3998_s22, 4  ;;  %s124_s23 = int_to_ptr.vmem [resolvable:$true] %s123_s23 }
  0x58   :  { %133 = sst [smem:[#allocation15 + $0x3]] %s3982_s2  ;;  %s3999_s24 = smov 448  }
  0x59   :  { %135 = sst [smem:[#allocation15 + $0x4]] %s3979_s11  ;;  %s4000_s5 = smov [#allocation4 + $0x1]  }
  0x5a   :  { %137 = sst [smem:[#allocation15 + $0x5]] %s3993_s1  ;;  %s4001_s26 = smov [#allocation14]  }
  0x5b   :  { %139 = sst [smem:[#allocation15 + $0x6]] %s3999_s24 }
  0x5c   :  { %141 = sst [smem:[#allocation15 + $0x7]] %s3982_s2 }
  0x5d   :  { %143 = sst [smem:[#allocation15 + $0x8]] %s3983_s25 }
  0x5e   :  { %145 = dma.general %s4454_s6, 57344, %s124_s23, %s4000_s5, %s4001_s26, [#allocation15], %s3353_s17, 0  }
  0x5f   :  { %v3664_v1 = vld [vmem:[#allocation5] sm:$0xff]   ;;  %v3665_v2 = vld [vmem:[#allocation5 + $0x8] sm:$0xff]   ;;  %v3666_v3 = vld [vmem:[#allocation5 + $0x10] sm:$0xff]  }
  0x60   :  { %3554 = vmatpush3.bf16.msra.mxu0 %v3664_v1  ;;  %v3667_v4 = vld [vmem:[#allocation5 + $0x18] sm:$0xff]   ;;  %v3668_v5 = vld [vmem:[#allocation5 + $0x20] sm:$0xff]   ;;  %v3669_v6 = vld [vmem:[#allocation5 + $0x28] sm:$0xff]  }
  0x61   :  { %3555 = vmatprep.subr.bf16.mxu0 %v3989_v0  ;;  %v3670_v7 = vld [vmem:[#allocation5 + $0x30] sm:$0xff]   ;;  %v3671_v8 = vld [vmem:[#allocation5 + $0x38] sm:$0xff]   ;;  %v146_v9 = vld [vmem:[%s4448_s0] sm:$0xff] }
  0x62   :  { %v164_v10 = vpack.c.bf16 %v146_v9, %v146_v9  ;;  %v3672_v11 = vld [vmem:[#allocation7 + $0x4] ss:$8 sps:$4 sm:$0xff]   ;;  %v3674_v12 = vld [vmem:[#allocation7] ss:$8 sps:$4 sm:$0xff]   ;;  %v3675_v13 = vld [vmem:[#allocation7 + $0x14] ss:$8 sps:$4 sm:$0xff]  }
  0x63   :  { %411 = vmatprep.subr.bf16.mxu1 %v3672_v11  ;;  %v3677_v14 = vld [vmem:[#allocation7 + $0x10] ss:$8 sps:$4 sm:$0xff]   ;;  %v3678_v15 = vld [vmem:[#allocation7 + $0x24] ss:$8 sps:$4 sm:$0xff]   ;;  %v3680_v16 = vld [vmem:[#allocation7 + $0x20] ss:$8 sps:$4 sm:$0xff]  }
  0x64   :  { %3556 = vmatpush3.bf16.msra.mxu0 %v3665_v2  ;;  %412 = vmatpush1.bf16.msra.mxu1 %v3674_v12  ;;  %v3681_v17 = vld [vmem:[#allocation7 + $0x34] ss:$8 sps:$4 sm:$0xff]   ;;  %v3683_v18 = vld [vmem:[#allocation7 + $0x30] ss:$8 sps:$4 sm:$0xff]   ;;  %v3684_v19 = vld [vmem:[#allocation7 + $0x44] ss:$8 sps:$4 sm:$0xff]  }
  0x65   :  { %3557 = vmatprep.subr.bf16.mxu0 %v3989_v0  ;;  %413 = vmatprep.subr.bf16.mxu1 %v3675_v13  ;;  %v3686_v21 = vld [vmem:[#allocation7 + $0x40] ss:$8 sps:$4 sm:$0xff]   ;;  %v3687_v22 = vld [vmem:[#allocation7 + $0x54] ss:$8 sps:$4 sm:$0xff]   ;;  %v3689_v23 = vld [vmem:[#allocation7 + $0x50] ss:$8 sps:$4 sm:$0xff]  }
  0x66   :  { %v3690_v24 = vld [vmem:[#allocation7 + $0x64] ss:$8 sps:$4 sm:$0xff]   ;;  %v3692_v25 = vld [vmem:[#allocation7 + $0x60] ss:$8 sps:$4 sm:$0xff]   ;;  %v3693_v26 = vld [vmem:[#allocation7 + $0x74] ss:$8 sps:$4 sm:$0xff]  }
  0x67   :  { %v3695_v27 = vld [vmem:[#allocation7 + $0x70] ss:$8 sps:$4 sm:$0xff]   ;;  %v3698_v28 = vld [vmem:[#allocation9 + $0x4] ss:$16 sps:$4 sm:$0xff]   ;;  %v3356_v29 = vld [vmem:[#allocation10] ss:$0 sm:$0xff] }
  0x68   :  { %3558 = vmatpush3.bf16.msra.mxu0 %v3666_v3  ;;  %414 = vmatpush1.bf16.msra.mxu1 %v3677_v14  ;;  %v3365_v56 = vld [vmem:[#allocation10 + $0x1] ss:$0 sm:$0xff]  ;;  %v3366_v58 = vld [vmem:[#allocation10 + $0x2] ss:$0 sm:$0xff]  ;;  %v3713_v12 = vld [vmem:[#allocation9 + $0xa4] ss:$16 sps:$4 sm:$0xff]  }
  0x69   :  { %3559 = vmatprep.subr.bf16.mxu0 %v3989_v0  ;;  %415 = vmatprep.subr.bf16.mxu1 %v3678_v15  ;;  %v3696_v2 = vld [vmem:[#allocation9] ss:$16 sps:$4 sm:$0xff]   ;;  %v3716_v14 = vld [vmem:[#allocation9 + $0xc4] ss:$16 sps:$4 sm:$0xff]  }
  0x6a   :  { %v3705_v9 = vld [vmem:[#allocation9 + $0x60] ss:$16 sps:$4 sm:$0xff]   ;;  %v3725_v20 = vld [vmem:[#allocation9 + $0x124] ss:$16 sps:$4 sm:$0xff]  }
  0x6b   :  { %v3708_v11 = vld [vmem:[#allocation9 + $0x80] ss:$16 sps:$4 sm:$0xff]  }
  0x6c   :  { %3560 = vmatpush3.bf16.msra.mxu0 %v3667_v4  ;;  %416 = vmatpush1.bf16.msra.mxu1 %v3680_v16  ;;  %v3701_v4 = vld [vmem:[#allocation9 + $0x24] ss:$16 sps:$4 sm:$0xff]   ;;  %v3711_v13 = vld [vmem:[#allocation9 + $0xa0] ss:$16 sps:$4 sm:$0xff]  }
  0x6d   :  { %3561 = vmatprep.subr.bf16.mxu0 %v3989_v0  ;;  %417 = vmatprep.subr.bf16.mxu1 %v3681_v17  ;;  %v3714_v15 = vld [vmem:[#allocation9 + $0xc0] ss:$16 sps:$4 sm:$0xff]   ;;  %v3719_v16 = vld [vmem:[#allocation9 + $0xe4] ss:$16 sps:$4 sm:$0xff]  }
  0x6e   :  { %v3717_v17 = vld [vmem:[#allocation9 + $0xe0] ss:$16 sps:$4 sm:$0xff]  }
  0x70   :  { %3562 = vmatpush3.bf16.msra.mxu0 %v3668_v5  ;;  %418 = vmatpush1.bf16.msra.mxu1 %v3683_v18  ;;  %v3699_v5 = vld [vmem:[#allocation9 + $0x20] ss:$16 sps:$4 sm:$0xff]   ;;  %v3722_v18 = vld [vmem:[#allocation9 + $0x104] ss:$16 sps:$4 sm:$0xff]  }
  0x71   :  { %3563 = vmatprep.subr.bf16.mxu0 %v3989_v0  ;;  %419 = vmatprep.subr.bf16.mxu1 %v3684_v19  ;;  %v3720_v19 = vld [vmem:[#allocation9 + $0x100] ss:$16 sps:$4 sm:$0xff]  }
  0x74   :  { %3564 = vmatpush3.bf16.msra.mxu0 %v3669_v6  ;;  %420 = vmatpush1.bf16.msra.mxu1 %v3686_v21  ;;  %v3704_v6 = vld [vmem:[#allocation9 + $0x44] ss:$16 sps:$4 sm:$0xff]   ;;  %v3723_v21 = vld [vmem:[#allocation9 + $0x120] ss:$16 sps:$4 sm:$0xff]  }
  0x75   :  { %3565 = vmatprep.subr.bf16.mxu0 %v3989_v0  ;;  %421 = vmatprep.subr.bf16.mxu1 %v3687_v22  ;;  %v3728_v22 = vld [vmem:[#allocation9 + $0x144] ss:$16 sps:$4 sm:$0xff]  }
  0x78   :  { %3566 = vmatpush3.bf16.msra.mxu0 %v3670_v7  ;;  %422 = vmatpush1.bf16.msra.mxu1 %v3689_v23  ;;  %v3702_v7 = vld [vmem:[#allocation9 + $0x40] ss:$16 sps:$4 sm:$0xff]  }
  0x79   :  { %3567 = vmatprep.subr.bf16.mxu0 %v3989_v0  ;;  %423 = vmatprep.subr.bf16.mxu1 %v3690_v24  ;;  %v3726_v23 = vld [vmem:[#allocation9 + $0x140] ss:$16 sps:$4 sm:$0xff]   ;;  %v3731_v24 = vld [vmem:[#allocation9 + $0x164] ss:$16 sps:$4 sm:$0xff]  }
  0x7c   :  { %3568 = vmatpush3.bf16.msra.mxu0 %v3671_v8  ;;  %424 = vmatpush1.bf16.msra.mxu1 %v3692_v25  ;;  %v3707_v8 = vld [vmem:[#allocation9 + $0x64] ss:$16 sps:$4 sm:$0xff]   ;;  %v3729_v25 = vld [vmem:[#allocation9 + $0x160] ss:$16 sps:$4 sm:$0xff]  }
  0x7d   :  { %425 = vmatprep.subr.bf16.mxu1 %v3693_v26  ;;  %v3734_v26 = vld [vmem:[#allocation9 + $0x184] ss:$16 sps:$4 sm:$0xff]  }
  0x7f   :  { %3570 = vmatmul.mubr.bf16.vlgmr.msra.gmra.mrb[0].mxu0 %v164_v10  ;;  %v3710_v10 = vld [vmem:[#allocation9 + $0x84] ss:$16 sps:$4 sm:$0xff]  }
  0x80   :  { %426 = vmatpush1.bf16.msra.mxu1 %v3695_v27  ;;  %v3732_v27 = vld [vmem:[#allocation9 + $0x180] ss:$16 sps:$4 sm:$0xff]  }
  0x81   :  { %942 = vmatprep.subr.bf16.mxu1 %v3698_v28  ;;  %v3737_v28 = vld [vmem:[#allocation9 + $0x1a4] ss:$16 sps:$4 sm:$0xff]  }
 0x152   :  { %v253_v30 = vpop.f32.mrb[0].mxu0 }
 0x153   :  { %v254_v31 = vadd.f32 %v3356_v29, %v253_v30  ;;  %v3571_v32 = vpop.f32.mrb[1].mxu0  ;;  %v3735_v29 = vld [vmem:[#allocation9 + $0x1a0] ss:$16 sps:$4 sm:$0xff]   ;;  %v3740_v30 = vld [vmem:[#allocation9 + $0x1c4] ss:$16 sps:$4 sm:$0xff]  }
 0x154   :  { %v256_v33 = vpop.f32.mrb[2].mxu0  ;;  %v3743_v32 = vld [vmem:[#allocation9 + $0x1e4] ss:$16 sps:$4 sm:$0xff]  }
 0x155   :  { %v261_v34 = vrot.slane %v254_v31, 4  ;;  %v267_v35 = vmul.f32 %v254_v31, %v254_v31  ;;  %v3572_v36 = vpop.f32.mrb[3].mxu0  ;;  %v3741_v33 = vld [vmem:[#allocation9 + $0x1e0] ss:$16 sps:$4 sm:$0xff]  }
 0x157   :  { %v262_v37 = vadd.f32 %v261_v34, %v254_v31  ;;  %v268_v38 = vrot.slane %v267_v35, 4  ;;  %v3746_v34 = vld [vmem:[#allocation9 + $0xc] ss:$16 sps:$4 sm:$0xff]  }
 0x159   :  { %v263_v39 = vrot.slane %v262_v37, 2  ;;  %v269_v40 = vadd.f32 %v268_v38, %v267_v35  ;;  %v321_v35 = vlaneseq  ;;  %v318_v38 = vld [vmem:[#allocation10 + $0x3] sm:$0x3] }
 0x15b   :  { %v264_v41 = vadd.f32 %v263_v39, %v262_v37  ;;  %v270_v42 = vrot.slane %v269_v40, 2  ;;  %v4115_v36 = vshrl.u32 %v321_v35, 7 }
 0x15d   :  { %v265_v43 = vrot.slane %v264_v41, 1  ;;  %v271_v44 = vadd.f32 %v270_v42, %v269_v40  ;;  %v4118_v37 = vsub.s32 0, %v4115_v36  ;;  %v4121_v39 = vsub.s32 1, %v4115_v36 }
 0x15f   :  { %v266_v45 = vadd.f32 %v265_v43, %v264_v41  ;;  %v272_v46 = vrot.slane %v271_v44, 1  ;;  %v324_v40 = vrot.slane %v318_v38, %v4118_v37  ;;  %v328_v41 = vrot.slane %v318_v38, %v4121_v39 }
 0x161   :  { %v273_v47 = vadd.f32 %v272_v46, %v271_v44  ;;  %v274_v48 = vmul.f32 0.125, %v266_v45 }
 0x163   :  { %v275_v49 = vmul.f32 0.125, %v273_v47  ;;  %v276_v50 = vmul.f32 %v274_v48, %v274_v48  ;;  %v279_v54 = vsub.f32 %v254_v31, %v274_v48  ;;  %v3738_v31 = vld [vmem:[#allocation9 + $0x1c0] ss:$16 sps:$4 sm:$0xff]  }
 0x165   :  { %v277_v51 = vsub.f32 %v275_v49, %v276_v50 }
 0x167   :  { %v278_v52 = vmax.f32 %v277_v51, 0.0 }
 0x169   :  { %v280_v53 = vadd.f32 1e-05, %v278_v52 }
 0x16b   :  { %3792 = vrsqrt.f32 %v280_v53 }
 0x175   :  { %v3793_v55 = vpop.eup %3792 }
 0x176   :  { %v282_v57 = vmul.f32 %v3793_v55, %v279_v54 }
 0x178   :  { %v289_v59 = vmul.f32 %v3365_v56, %v282_v57 }
 0x17a   :  { %v296_v60 = vadd.f32 %v3366_v58, %v289_v59 }
 0x17c   :  { %v298_v61 = vmul.f32 0.70710677, %v296_v60  ;;  %v297_v63 = vmul.f32 0.5, %v296_v60 }
 0x17e   :  { %3794 = verf.f32 %v298_v61 }
 0x188   :  { %v3795_v62 = vpop.eup %3794 }
 0x189   :  { %v300_v0 = vadd.f32 1.0, %v3795_v62 }
 0x18b   :  { %v301_v1 = vmul.f32 %v300_v0, %v297_v63 }
 0x18d   :  { %v319_v3 = vpack.c.bf16 %v301_v1, %v301_v1 }
 0x18f   :  { %444 = vmatmul.mubr.bf16.vlgmr.msra.gmra.mrb[0].mxu1 %v319_v3 }
 0x190   :  { %943 = vmatpush1.bf16.msra.mxu1 %v3696_v2 }
 0x191   :  { %944 = vmatprep.subr.bf16.mxu1 %v3701_v4 }
 0x194   :  { %945 = vmatpush1.bf16.msra.mxu1 %v3699_v5 }
 0x195   :  { %946 = vmatprep.subr.bf16.mxu1 %v3704_v6 }
 0x198   :  { %947 = vmatpush1.bf16.msra.mxu1 %v3702_v7 }
 0x199   :  { %948 = vmatprep.subr.bf16.mxu1 %v3707_v8 }
 0x19c   :  { %949 = vmatpush1.bf16.msra.mxu1 %v3705_v9 }
 0x19d   :  { %950 = vmatprep.subr.bf16.mxu1 %v3710_v10 }
 0x1a0   :  { %951 = vmatpush1.bf16.msra.mxu1 %v3708_v11 }
 0x1a1   :  { %952 = vmatprep.subr.bf16.mxu1 %v3713_v12 }
 0x1a4   :  { %953 = vmatpush1.bf16.msra.mxu1 %v3711_v13 }
 0x1a5   :  { %954 = vmatprep.subr.bf16.mxu1 %v3716_v14 }
 0x1a8   :  { %955 = vmatpush1.bf16.msra.mxu1 %v3714_v15 }
 0x1a9   :  { %956 = vmatprep.subr.bf16.mxu1 %v3719_v16 }
 0x1ac   :  { %957 = vmatpush1.bf16.msra.mxu1 %v3717_v17 }
 0x1ad   :  { %958 = vmatprep.subr.bf16.mxu1 %v3722_v18 }
 0x1b0   :  { %959 = vmatpush1.bf16.msra.mxu1 %v3720_v19 }
 0x1b1   :  { %960 = vmatprep.subr.bf16.mxu1 %v3725_v20 }
 0x1b4   :  { %961 = vmatpush1.bf16.msra.mxu1 %v3723_v21 }
 0x1b5   :  { %962 = vmatprep.subr.bf16.mxu1 %v3728_v22  ;;  %v452_v22 = vld [vmem:[#allocation10 + $0x5] sm:$0x3] }
 0x1b8   :  { %963 = vmatpush1.bf16.msra.mxu1 %v3726_v23  ;;  %v453_v23 = vld [vmem:[#allocation10 + $0x7] sm:$0x3] }
 0x1b9   :  { %964 = vmatprep.subr.bf16.mxu1 %v3731_v24 }
 0x1bc   :  { %965 = vmatpush1.bf16.msra.mxu1 %v3729_v25  ;;  %v502_v25 = vrot.slane %v452_v22, %v4118_v37 }
 0x1bd   :  { %966 = vmatprep.subr.bf16.mxu1 %v3734_v26 }
 0x1c0   :  { %967 = vmatpush1.bf16.msra.mxu1 %v3732_v27 }
 0x1c1   :  { %968 = vmatprep.subr.bf16.mxu1 %v3737_v28  ;;  %v506_v28 = vrot.slane %v452_v22, %v4121_v39 }
 0x1c4   :  { %969 = vmatpush1.bf16.msra.mxu1 %v3735_v29 }
 0x1c5   :  { %970 = vmatprep.subr.bf16.mxu1 %v3740_v30 }
 0x1c8   :  { %971 = vmatpush1.bf16.msra.mxu1 %v3738_v31  ;;  %v515_v31 = vrot.slane %v453_v23, %v4118_v37 }
 0x1c9   :  { %972 = vmatprep.subr.bf16.mxu1 %v3743_v32 }
 0x1cc   :  { %973 = vmatpush1.bf16.msra.mxu1 %v3741_v33  ;;  %v519_v33 = vrot.slane %v453_v23, %v4121_v39 }
 0x1cd   :  { %983 = vmatprep.subr.bf16.mxu1 %v3746_v34 }
 0x262   :  { %v445_v42 = vpop.f32.mrb[0].mxu1 }
 0x263   :  { %v446_v43 = vadd.f32 %v445_v42, %v324_v40  ;;  %v447_v44 = vpop.f32.mrb[1].mxu1 }
 0x264   :  { %v448_v45 = vadd.f32 %v447_v44, %v328_v41  ;;  %v449_v46 = vpop.f32.mrb[2].mxu1 }
 0x265   :  { %v454_v47 = vrot.slane %v446_v43, 4  ;;  %v466_v48 = vmul.f32 %v446_v43, %v446_v43  ;;  %v450_v49 = vpop.f32.mrb[3].mxu1 }
 0x266   :  { %v460_v50 = vrot.slane %v448_v45, 4  ;;  %v467_v51 = vmul.f32 %v448_v45, %v448_v45 }
 0x267   :  { %v455_v52 = vadd.f32 %v454_v47, %v446_v43  ;;  %v468_v53 = vrot.slane %v466_v48, 4 }
 0x268   :  { %v461_v54 = vadd.f32 %v460_v50, %v448_v45  ;;  %v474_v55 = vrot.slane %v467_v51, 4 }
 0x269   :  { %v456_v56 = vrot.slane %v455_v52, 2  ;;  %v469_v57 = vadd.f32 %v468_v53, %v466_v48 }
 0x26a   :  { %v462_v58 = vrot.slane %v461_v54, 2  ;;  %v475_v59 = vadd.f32 %v474_v55, %v467_v51  ;;  %v3747_v55 = vld [vmem:[#allocation9 + $0x28] ss:$16 sps:$4 sm:$0xff]  }
 0x26b   :  { %v457_v60 = vadd.f32 %v456_v56, %v455_v52  ;;  %v470_v61 = vrot.slane %v469_v57, 2  ;;  %v3744_v52 = vld [vmem:[#allocation9 + $0x8] ss:$16 sps:$4 sm:$0xff]   ;;  %v3752_v56 = vld [vmem:[#allocation9 + $0x4c] ss:$16 sps:$4 sm:$0xff]  }
 0x26c   :  { %v463_v62 = vadd.f32 %v462_v58, %v461_v54  ;;  %v476_v63 = vrot.slane %v475_v59, 2  ;;  %v3749_v54 = vld [vmem:[#allocation9 + $0x2c] ss:$16 sps:$4 sm:$0xff]  }
 0x26d   :  { %v458_v0 = vrot.slane %v457_v60, 1  ;;  %v471_v1 = vadd.f32 %v470_v61, %v469_v57  ;;  %v3750_v57 = vld [vmem:[#allocation9 + $0x48] ss:$16 sps:$4 sm:$0xff]   ;;  %v3755_v58 = vld [vmem:[#allocation9 + $0x6c] ss:$16 sps:$4 sm:$0xff]  }
 0x26e   :  { %v464_v2 = vrot.slane %v463_v62, 1  ;;  %v477_v3 = vadd.f32 %v476_v63, %v475_v59  ;;  %v3753_v59 = vld [vmem:[#allocation9 + $0x68] ss:$16 sps:$4 sm:$0xff]  }
 0x26f   :  { %v459_v4 = vadd.f32 %v458_v0, %v457_v60  ;;  %v472_v5 = vrot.slane %v471_v1, 1  ;;  %v3758_v60 = vld [vmem:[#allocation9 + $0x8c] ss:$16 sps:$4 sm:$0xff]   ;;  %v3756_v61 = vld [vmem:[#allocation9 + $0x88] ss:$16 sps:$4 sm:$0xff]  }
 0x270   :  { %v465_v6 = vadd.f32 %v464_v2, %v463_v62  ;;  %v478_v7 = vrot.slane %v477_v3, 1  ;;  %v3761_v62 = vld [vmem:[#allocation9 + $0xac] ss:$16 sps:$4 sm:$0xff]   ;;  %v3759_v63 = vld [vmem:[#allocation9 + $0xa8] ss:$16 sps:$4 sm:$0xff]  }
 0x271   :  { %v473_v8 = vadd.f32 %v472_v5, %v471_v1  ;;  %v480_v9 = vmul.f32 0.125, %v459_v4  ;;  %v3764_v0 = vld [vmem:[#allocation9 + $0xcc] ss:$16 sps:$4 sm:$0xff]   ;;  %v3762_v1 = vld [vmem:[#allocation9 + $0xc8] ss:$16 sps:$4 sm:$0xff]  }
 0x272   :  { %v479_v10 = vadd.f32 %v478_v7, %v477_v3  ;;  %v481_v11 = vmul.f32 0.125, %v465_v6  ;;  %v3767_v2 = vld [vmem:[#allocation9 + $0xec] ss:$16 sps:$4 sm:$0xff]   ;;  %v3765_v3 = vld [vmem:[#allocation9 + $0xe8] ss:$16 sps:$4 sm:$0xff]  }
 0x273   :  { %v482_v12 = vmul.f32 0.125, %v473_v8  ;;  %v484_v13 = vmul.f32 %v480_v9, %v480_v9  ;;  %v490_v24 = vsub.f32 %v446_v43, %v480_v9  ;;  %v3770_v4 = vld [vmem:[#allocation9 + $0x10c] ss:$16 sps:$4 sm:$0xff]   ;;  %v3768_v5 = vld [vmem:[#allocation9 + $0x108] ss:$16 sps:$4 sm:$0xff]  }
 0x274   :  { %v483_v14 = vmul.f32 0.125, %v479_v10  ;;  %v485_v15 = vmul.f32 %v481_v11, %v481_v11  ;;  %v491_v27 = vsub.f32 %v448_v45, %v481_v11  ;;  %v3773_v6 = vld [vmem:[#allocation9 + $0x12c] ss:$16 sps:$4 sm:$0xff]   ;;  %v3771_v7 = vld [vmem:[#allocation9 + $0x128] ss:$16 sps:$4 sm:$0xff]  }
 0x275   :  { %v486_v16 = vsub.f32 %v482_v12, %v484_v13  ;;  %v3776_v8 = vld [vmem:[#allocation9 + $0x14c] ss:$16 sps:$4 sm:$0xff]   ;;  %v3774_v9 = vld [vmem:[#allocation9 + $0x148] ss:$16 sps:$4 sm:$0xff]  }
 0x276   :  { %v487_v17 = vsub.f32 %v483_v14, %v485_v15  ;;  %v3779_v10 = vld [vmem:[#allocation9 + $0x16c] ss:$16 sps:$4 sm:$0xff]   ;;  %v3777_v11 = vld [vmem:[#allocation9 + $0x168] ss:$16 sps:$4 sm:$0xff]  }
 0x277   :  { %v488_v18 = vmax.f32 %v486_v16, 0.0  ;;  %v3782_v12 = vld [vmem:[#allocation9 + $0x18c] ss:$16 sps:$4 sm:$0xff]   ;;  %v3780_v13 = vld [vmem:[#allocation9 + $0x188] ss:$16 sps:$4 sm:$0xff]  }
 0x278   :  { %v489_v19 = vmax.f32 %v487_v17, 0.0  ;;  %v3785_v14 = vld [vmem:[#allocation9 + $0x1ac] ss:$16 sps:$4 sm:$0xff]   ;;  %v3783_v15 = vld [vmem:[#allocation9 + $0x1a8] ss:$16 sps:$4 sm:$0xff]  }
 0x279   :  { %v492_v20 = vadd.f32 1e-05, %v488_v18  ;;  %v3788_v16 = vld [vmem:[#allocation9 + $0x1cc] ss:$16 sps:$4 sm:$0xff]   ;;  %v3786_v17 = vld [vmem:[#allocation9 + $0x1c8] ss:$16 sps:$4 sm:$0xff]  }
 0x27a   :  { %v493_v21 = vadd.f32 1e-05, %v489_v19  ;;  %v3791_v18 = vld [vmem:[#allocation9 + $0x1ec] ss:$16 sps:$4 sm:$0xff]   ;;  %v3789_v19 = vld [vmem:[#allocation9 + $0x1e8] ss:$16 sps:$4 sm:$0xff]  }
 0x27b   :  { %3796 = vrsqrt.f32 %v492_v20  ;;  %v4133_v20 = vld [vmem:[#allocation10 + $0x9] sm:$0xf] }
 0x27c   :  { %3798 = vrsqrt.f32 %v493_v21  ;;  %v605_v21 = vrot.slane %v4133_v20, %v4118_v37  ;;  %v609_v22 = vrot.slane %v4133_v20, %v4121_v39 }
 0x285   :  { %v3797_v26 = vpop.eup %3796 }
 0x286   :  { %v3799_v29 = vpop.eup %3798  ;;  %v496_v30 = vmul.f32 %v3797_v26, %v490_v24 }
 0x287   :  { %v497_v32 = vmul.f32 %v3799_v29, %v491_v27 }
 0x288   :  { %v509_v34 = vmul.f32 %v502_v25, %v496_v30 }
 0x289   :  { %v510_v35 = vmul.f32 %v506_v28, %v497_v32 }
 0x28a   :  { %v522_v38 = vadd.f32 %v515_v31, %v509_v34 }
 0x28b   :  { %v523_v40 = vadd.f32 %v519_v33, %v510_v35 }
 0x28c   :  { %v526_v41 = vmul.f32 0.70710677, %v522_v38  ;;  %v524_v45 = vmul.f32 0.5, %v522_v38 }
 0x28d   :  { %v527_v42 = vmul.f32 0.70710677, %v523_v40  ;;  %v525_v47 = vmul.f32 0.5, %v523_v40 }
 0x28e   :  { %3800 = verf.f32 %v526_v41 }
 0x28f   :  { %3802 = verf.f32 %v527_v42 }
 0x298   :  { %v3801_v43 = vpop.eup %3800 }
 0x299   :  { %v3803_v44 = vpop.eup %3802  ;;  %v530_v46 = vadd.f32 1.0, %v3801_v43 }
 0x29a   :  { %v531_v48 = vadd.f32 1.0, %v3803_v44 }
 0x29b   :  { %v532_v49 = vmul.f32 %v530_v46, %v524_v45 }
 0x29c   :  { %v533_v50 = vmul.f32 %v531_v48, %v525_v47 }
 0x29d   :  { %v4129_v53 = vpack.c.bf16 %v532_v49, %v532_v49 }
 0x29e   :  { %v600_v51 = vpack.c.bf16 %v533_v50, %v533_v50 }
 0x2a0   :  { %974 = vmatprep.mubr.bf16.mxu1 %v600_v51 }
 0x2a1   :  { %975 = vmatmul.mubr.bf16.vlgmr.msra.gmra.mrb[4].mxu1 %v4129_v53 }
 0x2a2   :  { %984 = vmatpush1.bf16.msra.mxu1 %v3744_v52  ;;  %1015 = vmatprep.mubr.bf16.mxu1 %v600_v51 }
 0x2a3   :  { %985 = vmatprep.subr.bf16.mxu1 %v3749_v54 }
 0x2a6   :  { %986 = vmatpush1.bf16.msra.mxu1 %v3747_v55 }
 0x2a7   :  { %987 = vmatprep.subr.bf16.mxu1 %v3752_v56 }
 0x2aa   :  { %988 = vmatpush1.bf16.msra.mxu1 %v3750_v57 }
 0x2ab   :  { %989 = vmatprep.subr.bf16.mxu1 %v3755_v58 }
 0x2ae   :  { %990 = vmatpush1.bf16.msra.mxu1 %v3753_v59 }
 0x2af   :  { %991 = vmatprep.subr.bf16.mxu1 %v3758_v60 }
 0x2b2   :  { %992 = vmatpush1.bf16.msra.mxu1 %v3756_v61 }
 0x2b3   :  { %993 = vmatprep.subr.bf16.mxu1 %v3761_v62 }
 0x2b6   :  { %994 = vmatpush1.bf16.msra.mxu1 %v3759_v63 }
 0x2b7   :  { %995 = vmatprep.subr.bf16.mxu1 %v3764_v0 }
 0x2ba   :  { %996 = vmatpush1.bf16.msra.mxu1 %v3762_v1 }
 0x2bb   :  { %997 = vmatprep.subr.bf16.mxu1 %v3767_v2 }
 0x2be   :  { %998 = vmatpush1.bf16.msra.mxu1 %v3765_v3 }
 0x2bf   :  { %999 = vmatprep.subr.bf16.mxu1 %v3770_v4 }
 0x2c2   :  { %1000 = vmatpush1.bf16.msra.mxu1 %v3768_v5 }
 0x2c3   :  { %1001 = vmatprep.subr.bf16.mxu1 %v3773_v6  ;;  %v4139_v6 = vld [vmem:[#allocation10 + $0xd] sm:$0xf] }
 0x2c6   :  { %1002 = vmatpush1.bf16.msra.mxu1 %v3771_v7  ;;  %v4141_v7 = vld [vmem:[#allocation10 + $0x11] sm:$0xf] }
 0x2c7   :  { %1003 = vmatprep.subr.bf16.mxu1 %v3776_v8 }
 0x2ca   :  { %1004 = vmatpush1.bf16.msra.mxu1 %v3774_v9  ;;  %v1118_v9 = vrot.slane %v4139_v6, %v4118_v37 }
 0x2cb   :  { %1005 = vmatprep.subr.bf16.mxu1 %v3779_v10 }
 0x2ce   :  { %1006 = vmatpush1.bf16.msra.mxu1 %v3777_v11 }
 0x2cf   :  { %1007 = vmatprep.subr.bf16.mxu1 %v3782_v12  ;;  %v1122_v12 = vrot.slane %v4139_v6, %v4121_v39 }
 0x2d2   :  { %1008 = vmatpush1.bf16.msra.mxu1 %v3780_v13 }
 0x2d3   :  { %1009 = vmatprep.subr.bf16.mxu1 %v3785_v14 }
 0x2d6   :  { %1010 = vmatpush1.bf16.msra.mxu1 %v3783_v15  ;;  %v1143_v15 = vrot.slane %v4141_v7, %v4118_v37 }
 0x2d7   :  { %1011 = vmatprep.subr.bf16.mxu1 %v3788_v16 }
 0x2da   :  { %1012 = vmatpush1.bf16.msra.mxu1 %v3786_v17  ;;  %v1147_v17 = vrot.slane %v4141_v7, %v4121_v39 }
 0x2db   :  { %1013 = vmatprep.subr.bf16.mxu1 %v3791_v18 }
 0x2de   :  { %1014 = vmatpush1.bf16.msra.mxu1 %v3789_v19 }
 0x2e1   :  { %1016 = vmatmul.mubr.bf16.vlgmr.msra.gmra.mrb[8].mxu1 %v4129_v53 }
 0x374   :  { %v976_v23 = vpop.f32.mrb[4].mxu1 }
 0x375   :  { %v977_v24 = vadd.f32 %v976_v23, %v605_v21  ;;  %v978_v25 = vpop.f32.mrb[5].mxu1 }
 0x376   :  { %v979_v26 = vadd.f32 %v978_v25, %v609_v22  ;;  %v980_v27 = vpop.f32.mrb[6].mxu1 }
 0x377   :  { %v1026_v28 = vrot.slane %v977_v24, 4  ;;  %v1050_v29 = vmul.f32 %v977_v24, %v977_v24  ;;  %v981_v30 = vpop.f32.mrb[7].mxu1 }
 0x378   :  { %v1032_v31 = vrot.slane %v979_v26, 4  ;;  %v1051_v32 = vmul.f32 %v979_v26, %v979_v26 }
 0x379   :  { %v1027_v33 = vadd.f32 %v1026_v28, %v977_v24  ;;  %v1054_v34 = vrot.slane %v1050_v29, 4 }
 0x37a   :  { %v1033_v35 = vadd.f32 %v1032_v31, %v979_v26  ;;  %v1060_v38 = vrot.slane %v1051_v32, 4 }
 0x37b   :  { %v1028_v40 = vrot.slane %v1027_v33, 2  ;;  %v1055_v41 = vadd.f32 %v1054_v34, %v1050_v29  ;;  %v4159_v34 = vsub.s32 3, %v4115_v36 }
 0x37c   :  { %v1034_v42 = vrot.slane %v1033_v35, 2  ;;  %v1061_v43 = vadd.f32 %v1060_v38, %v1051_v32  ;;  %v4154_v32 = vsub.s32 2, %v4115_v36 }
 0x37d   :  { %v1029_v44 = vadd.f32 %v1028_v40, %v1027_v33  ;;  %v1056_v45 = vrot.slane %v1055_v41, 2  ;;  %v617_v38 = vrot.slane %v4133_v20, %v4159_v34 }
 0x37e   :  { %v1035_v46 = vadd.f32 %v1034_v42, %v1033_v35  ;;  %v1062_v47 = vrot.slane %v1061_v43, 2  ;;  %v613_v35 = vrot.slane %v4133_v20, %v4154_v32 }
 0x37f   :  { %v1030_v48 = vrot.slane %v1029_v44, 1  ;;  %v1057_v49 = vadd.f32 %v1056_v45, %v1055_v41 }
 0x380   :  { %v1036_v50 = vrot.slane %v1035_v46, 1  ;;  %v1063_v51 = vadd.f32 %v1062_v47, %v1061_v43 }
 0x381   :  { %v1031_v52 = vadd.f32 %v1030_v48, %v1029_v44  ;;  %v1058_v53 = vrot.slane %v1057_v49, 1 }
 0x382   :  { %v1037_v54 = vadd.f32 %v1036_v50, %v1035_v46  ;;  %v1064_v55 = vrot.slane %v1063_v51, 1 }
 0x383   :  { %v1059_v56 = vadd.f32 %v1058_v53, %v1057_v49  ;;  %v1078_v57 = vmul.f32 0.125, %v1031_v52 }
 0x384   :  { %v1065_v58 = vadd.f32 %v1064_v55, %v1063_v51  ;;  %v1079_v59 = vmul.f32 0.125, %v1037_v54 }
 0x385   :  { %v1082_v60 = vmul.f32 0.125, %v1059_v56  ;;  %v1086_v61 = vmul.f32 %v1078_v57, %v1078_v57  ;;  %v1098_v8 = vsub.f32 %v977_v24, %v1078_v57 }
 0x386   :  { %v1083_v62 = vmul.f32 0.125, %v1065_v58  ;;  %v1087_v63 = vmul.f32 %v1079_v59, %v1079_v59  ;;  %v1099_v11 = vsub.f32 %v979_v26, %v1079_v59 }
 0x387   :  { %v1090_v0 = vsub.f32 %v1082_v60, %v1086_v61 }
 0x388   :  { %v1091_v1 = vsub.f32 %v1083_v62, %v1087_v63 }
 0x389   :  { %v1094_v2 = vmax.f32 %v1090_v0, 0.0 }
 0x38a   :  { %v1095_v3 = vmax.f32 %v1091_v1, 0.0 }
 0x38b   :  { %v1102_v4 = vadd.f32 1e-05, %v1094_v2 }
 0x38c   :  { %v1103_v5 = vadd.f32 1e-05, %v1095_v3 }
 0x38d   :  { %3804 = vrsqrt.f32 %v1102_v4 }
 0x38e   :  { %3806 = vrsqrt.f32 %v1103_v5 }
 0x397   :  { %v3805_v10 = vpop.eup %3804 }
 0x398   :  { %v3807_v13 = vpop.eup %3806  ;;  %v1110_v14 = vmul.f32 %v3805_v10, %v1098_v8 }
 0x399   :  { %v1111_v16 = vmul.f32 %v3807_v13, %v1099_v11 }
 0x39a   :  { %v1135_v18 = vmul.f32 %v1118_v9, %v1110_v14 }
 0x39b   :  { %v1136_v19 = vmul.f32 %v1122_v12, %v1111_v16 }
 0x39c   :  { %v1160_v21 = vadd.f32 %v1143_v15, %v1135_v18 }
 0x39d   :  { %v1161_v22 = vadd.f32 %v1147_v17, %v1136_v19 }
 0x39e   :  { %v1168_v23 = vmul.f32 0.70710677, %v1160_v21  ;;  %v1164_v27 = vmul.f32 0.5, %v1160_v21 }
 0x39f   :  { %v1169_v24 = vmul.f32 0.70710677, %v1161_v22  ;;  %v1165_v29 = vmul.f32 0.5, %v1161_v22 }
 0x3a0   :  { %3808 = verf.f32 %v1168_v23  ;;  %v1126_v23 = vrot.slane %v4139_v6, %v4154_v32 }
 0x3a1   :  { %3810 = verf.f32 %v1169_v24 }
 0x3aa   :  { %v3809_v25 = vpop.eup %3808 }
 0x3ab   :  { %v3811_v26 = vpop.eup %3810  ;;  %v1176_v28 = vadd.f32 1.0, %v3809_v25 }
 0x3ac   :  { %v1177_v30 = vadd.f32 1.0, %v3811_v26  ;;  %v1130_v26 = vrot.slane %v4139_v6, %v4159_v34 }
 0x3ad   :  { %v4151_v31 = vmul.f32 %v1176_v28, %v1164_v27 }
 0x3ae   :  { %v4156_v33 = vmul.f32 %v1177_v30, %v1165_v29  ;;  %v1151_v29 = vrot.slane %v4141_v7, %v4154_v32 }
 0x3b4   :  { %v1017_v40 = vpop.f32.mrb[8].mxu1 }
 0x3b5   :  { %v1018_v41 = vadd.f32 %v1017_v40, %v613_v35  ;;  %v1019_v42 = vpop.f32.mrb[9].mxu1  ;;  %v1155_v35 = vrot.slane %v4141_v7, %v4159_v34 }
 0x3b6   :  { %v1020_v43 = vadd.f32 %v1019_v42, %v617_v38  ;;  %v1021_v44 = vpop.f32.mrb[10].mxu1 }
 0x3b7   :  { %v1038_v45 = vrot.slane %v1018_v41, 4  ;;  %v1052_v46 = vmul.f32 %v1018_v41, %v1018_v41  ;;  %v1022_v47 = vpop.f32.mrb[11].mxu1 }
 0x3b8   :  { %v1044_v48 = vrot.slane %v1020_v43, 4  ;;  %v1053_v49 = vmul.f32 %v1020_v43, %v1020_v43 }
 0x3b9   :  { %v1039_v50 = vadd.f32 %v1038_v45, %v1018_v41  ;;  %v1066_v51 = vrot.slane %v1052_v46, 4 }
 0x3ba   :  { %v1045_v52 = vadd.f32 %v1044_v48, %v1020_v43  ;;  %v1072_v53 = vrot.slane %v1053_v49, 4 }
 0x3bb   :  { %v1040_v54 = vrot.slane %v1039_v50, 2  ;;  %v1067_v55 = vadd.f32 %v1066_v51, %v1052_v46 }
 0x3bc   :  { %v1046_v56 = vrot.slane %v1045_v52, 2  ;;  %v1073_v57 = vadd.f32 %v1072_v53, %v1053_v49 }
 0x3bd   :  { %v1041_v58 = vadd.f32 %v1040_v54, %v1039_v50  ;;  %v1068_v20 = vrot.slane %v1067_v55, 2 }
 0x3be   :  { %v1047_v59 = vadd.f32 %v1046_v56, %v1045_v52  ;;  %v1074_v60 = vrot.slane %v1073_v57, 2 }
 0x3bf   :  { %v1042_v61 = vrot.slane %v1041_v58, 1  ;;  %v1069_v62 = vadd.f32 %v1068_v20, %v1067_v55 }
 0x3c0   :  { %v1048_v63 = vrot.slane %v1047_v59, 1  ;;  %v1075_v0 = vadd.f32 %v1074_v60, %v1073_v57 }
 0x3c1   :  { %v1043_v1 = vadd.f32 %v1042_v61, %v1041_v58  ;;  %v1070_v2 = vrot.slane %v1069_v62, 1 }
 0x3c2   :  { %v1049_v3 = vadd.f32 %v1048_v63, %v1047_v59  ;;  %v1076_v4 = vrot.slane %v1075_v0, 1 }
 0x3c3   :  { %v1071_v5 = vadd.f32 %v1070_v2, %v1069_v62  ;;  %v1080_v8 = vmul.f32 0.125, %v1043_v1 }
 0x3c4   :  { %v1077_v9 = vadd.f32 %v1076_v4, %v1075_v0  ;;  %v1081_v10 = vmul.f32 0.125, %v1049_v3 }
 0x3c5   :  { %v1084_v11 = vmul.f32 0.125, %v1071_v5  ;;  %v1088_v12 = vmul.f32 %v1080_v8, %v1080_v8  ;;  %v1100_v22 = vsub.f32 %v1018_v41, %v1080_v8 }
 0x3c6   :  { %v1085_v13 = vmul.f32 0.125, %v1077_v9  ;;  %v1089_v14 = vmul.f32 %v1081_v10, %v1081_v10  ;;  %v1101_v25 = vsub.f32 %v1020_v43, %v1081_v10 }
 0x3c7   :  { %v1092_v15 = vsub.f32 %v1084_v11, %v1088_v12 }
 0x3c8   :  { %v1093_v16 = vsub.f32 %v1085_v13, %v1089_v14 }
 0x3c9   :  { %v1096_v17 = vmax.f32 %v1092_v15, 0.0 }
 0x3ca   :  { %v1097_v18 = vmax.f32 %v1093_v16, 0.0 }
 0x3cb   :  { %v1104_v19 = vadd.f32 1e-05, %v1096_v17 }
 0x3cc   :  { %v1105_v21 = vadd.f32 1e-05, %v1097_v18 }
 0x3cd   :  { %3812 = vrsqrt.f32 %v1104_v19 }
 0x3ce   :  { %3814 = vrsqrt.f32 %v1105_v21 }
 0x3d7   :  { %v3813_v24 = vpop.eup %3812 }
 0x3d8   :  { %v3815_v27 = vpop.eup %3814  ;;  %v1112_v28 = vmul.f32 %v3813_v24, %v1100_v22 }
 0x3d9   :  { %v1113_v30 = vmul.f32 %v3815_v27, %v1101_v25 }
 0x3da   :  { %v1137_v38 = vmul.f32 %v1126_v23, %v1112_v28 }
 0x3db   :  { %v1138_v40 = vmul.f32 %v1130_v26, %v1113_v30 }
 0x3dc   :  { %v1162_v41 = vadd.f32 %v1151_v29, %v1137_v38 }
 0x3dd   :  { %v1163_v42 = vadd.f32 %v1155_v35, %v1138_v40 }
 0x3de   :  { %v1170_v44 = vmul.f32 0.70710677, %v1162_v41  ;;  %v1166_v6 = vmul.f32 0.5, %v1162_v41 }
 0x3df   :  { %v1171_v45 = vmul.f32 0.70710677, %v1163_v42  ;;  %v1167_v48 = vmul.f32 0.5, %v1163_v42 }
 0x3e0   :  { %3816 = verf.f32 %v1170_v44 }
 0x3e1   :  { %3818 = verf.f32 %v1171_v45 }
 0x3ea   :  { %v3817_v43 = vpop.eup %3816 }
 0x3eb   :  { %v3819_v46 = vpop.eup %3818  ;;  %v1178_v47 = vadd.f32 1.0, %v3817_v43 }
 0x3ec   :  { %v1179_v49 = vadd.f32 1.0, %v3819_v46 }
 0x3ed   :  { %v4173_v50 = vmul.f32 %v1178_v47, %v1166_v6 }
 0x3ee   :  { %v4175_v51 = vmul.f32 %v1179_v49, %v1167_v48 }
 0x3ef   :  { %3974 = dma.done.wait [#allocation4], 32768 }
 0x3f0   :  { %3975 = vsyncadd [#allocation4], 4294934528  ;;  %v4179_v7 = vpack.c.bf16 %v4156_v33, %v4156_v33  ;;  %v1189_v52 = vld [vmem:[#allocation2 + $0x8] sm:$0xff]  ;;  %v1191_v53 = vld [vmem:[#allocation2 + $0x18] sm:$0xff] }
 0x3f1   :  { %v1188_v54 = vld [vmem:[#allocation2] sm:$0xff]  ;;  %1490 = vmatprep.subr.bf16.mxu0 %v1189_v52  ;;  %1572 = vmatprep.subr.bf16.mxu1 %v1191_v53  ;;  %v1190_v55 = vld [vmem:[#allocation2 + $0x10] sm:$0xff]  ;;  %v1197_v56 = vld [vmem:[#allocation2 + $0x48] sm:$0xff] }
 0x3f2   :  { %1522 = vmatprep.mubr.bf16.mxu0 %v4179_v7  ;;  %1604 = vmatprep.mubr.bf16.mxu1 %v4179_v7  ;;  %v1199_v57 = vld [vmem:[#allocation2 + $0x58] sm:$0xff]  ;;  %v1196_v58 = vld [vmem:[#allocation2 + $0x40] sm:$0xff]  ;;  %v1198_v20 = vld [vmem:[#allocation2 + $0x50] sm:$0xff] }
 0x3f3   :  { %1491 = vmatpush1.bf16.msra.mxu0 %v1188_v54  ;;  %1573 = vmatpush1.bf16.msra.mxu1 %v1190_v55  ;;  %v1205_v33 = vld [vmem:[#allocation2 + $0x88] sm:$0xff]  ;;  %v1207_v59 = vld [vmem:[#allocation2 + $0x98] sm:$0xff]  ;;  %v1204_v60 = vld [vmem:[#allocation2 + $0x80] sm:$0xff] }
 0x3f4   :  { %1492 = vmatprep.subr.bf16.mxu0 %v1197_v56  ;;  %1574 = vmatprep.subr.bf16.mxu1 %v1199_v57  ;;  %v1206_v61 = vld [vmem:[#allocation2 + $0x90] sm:$0xff]  ;;  %v1213_v62 = vld [vmem:[#allocation2 + $0xc8] sm:$0xff]  ;;  %v1215_v63 = vld [vmem:[#allocation2 + $0xd8] sm:$0xff] }
 0x3f5   :  { %v1212_v0 = vld [vmem:[#allocation2 + $0xc0] sm:$0xff]  ;;  %v1214_v1 = vld [vmem:[#allocation2 + $0xd0] sm:$0xff]  ;;  %v1221_v2 = vld [vmem:[#allocation2 + $0x108] sm:$0xff] }
 0x3f6   :  { %v1223_v3 = vld [vmem:[#allocation2 + $0x118] sm:$0xff]  ;;  %v1220_v4 = vld [vmem:[#allocation2 + $0x100] sm:$0xff]  ;;  %v1222_v5 = vld [vmem:[#allocation2 + $0x110] sm:$0xff] }
 0x3f7   :  { %1493 = vmatpush1.bf16.msra.mxu0 %v1196_v58  ;;  %1575 = vmatpush1.bf16.msra.mxu1 %v1198_v20  ;;  %v1229_v8 = vld [vmem:[#allocation2 + $0x148] sm:$0xff]  ;;  %v1231_v9 = vld [vmem:[#allocation2 + $0x158] sm:$0xff]  ;;  %v1228_v10 = vld [vmem:[#allocation2 + $0x140] sm:$0xff] }
 0x3f8   :  { %1494 = vmatprep.subr.bf16.mxu0 %v1205_v33  ;;  %1576 = vmatprep.subr.bf16.mxu1 %v1207_v59  ;;  %v1230_v11 = vld [vmem:[#allocation2 + $0x150] sm:$0xff]  ;;  %v1237_v12 = vld [vmem:[#allocation2 + $0x188] sm:$0xff]  ;;  %v1239_v13 = vld [vmem:[#allocation2 + $0x198] sm:$0xff] }
 0x3f9   :  { %v1236_v14 = vld [vmem:[#allocation2 + $0x180] sm:$0xff]  ;;  %v1238_v15 = vld [vmem:[#allocation2 + $0x190] sm:$0xff]  ;;  %v1245_v16 = vld [vmem:[#allocation2 + $0x1c8] sm:$0xff] }
 0x3fa   :  { %v1247_v17 = vld [vmem:[#allocation2 + $0x1d8] sm:$0xff]  ;;  %v1244_v18 = vld [vmem:[#allocation2 + $0x1c0] sm:$0xff]  ;;  %v1246_v19 = vld [vmem:[#allocation2 + $0x1d0] sm:$0xff] }
 0x3fb   :  { %1495 = vmatpush1.bf16.msra.mxu0 %v1204_v60  ;;  %1577 = vmatpush1.bf16.msra.mxu1 %v1206_v61  ;;  %v1253_v21 = vld [vmem:[#allocation2 + $0x208] sm:$0xff]  ;;  %v1255_v22 = vld [vmem:[#allocation2 + $0x218] sm:$0xff]  ;;  %v1252_v23 = vld [vmem:[#allocation2 + $0x200] sm:$0xff]  ;;  %v4185_v61 = vpack.c.bf16 %v4151_v31, %v4151_v31 }
 0x3fc   :  { %1496 = vmatprep.subr.bf16.mxu0 %v1213_v62  ;;  %1578 = vmatprep.subr.bf16.mxu1 %v1215_v63  ;;  %v1254_v24 = vld [vmem:[#allocation2 + $0x210] sm:$0xff]  ;;  %v1261_v25 = vld [vmem:[#allocation2 + $0x248] sm:$0xff]  ;;  %v1263_v26 = vld [vmem:[#allocation2 + $0x258] sm:$0xff] }
 0x3fd   :  { %v1260_v27 = vld [vmem:[#allocation2 + $0x240] sm:$0xff]  ;;  %v1262_v28 = vld [vmem:[#allocation2 + $0x250] sm:$0xff]  ;;  %v1269_v29 = vld [vmem:[#allocation2 + $0x288] sm:$0xff] }
 0x3fe   :  { %v1271_v30 = vld [vmem:[#allocation2 + $0x298] sm:$0xff]  ;;  %v1268_v35 = vld [vmem:[#allocation2 + $0x280] sm:$0xff]  ;;  %v1270_v38 = vld [vmem:[#allocation2 + $0x290] sm:$0xff] }
 0x3ff   :  { %1497 = vmatpush1.bf16.msra.mxu0 %v1212_v0  ;;  %1579 = vmatpush1.bf16.msra.mxu1 %v1214_v1  ;;  %v1277_v40 = vld [vmem:[#allocation2 + $0x2c8] sm:$0xff]  ;;  %v1279_v41 = vld [vmem:[#allocation2 + $0x2d8] sm:$0xff]  ;;  %v1276_v42 = vld [vmem:[#allocation2 + $0x2c0] sm:$0xff] }
 0x400   :  { %1498 = vmatprep.subr.bf16.mxu0 %v1221_v2  ;;  %1580 = vmatprep.subr.bf16.mxu1 %v1223_v3  ;;  %v1278_v44 = vld [vmem:[#allocation2 + $0x2d0] sm:$0xff]  ;;  %v1285_v45 = vld [vmem:[#allocation2 + $0x308] sm:$0xff]  ;;  %v1287_v43 = vld [vmem:[#allocation2 + $0x318] sm:$0xff]  ;;  %v4189_v2 = vpack.c.bf16 %v4175_v51, %v4175_v51 }
 0x401   :  { %v1284_v46 = vld [vmem:[#allocation2 + $0x300] sm:$0xff]  ;;  %v1286_v6 = vld [vmem:[#allocation2 + $0x310] sm:$0xff]  ;;  %v1293_v47 = vld [vmem:[#allocation2 + $0x348] sm:$0xff] }
 0x402   :  { %v1295_v48 = vld [vmem:[#allocation2 + $0x358] sm:$0xff]  ;;  %v1292_v49 = vld [vmem:[#allocation2 + $0x340] sm:$0xff]  ;;  %v1294_v52 = vld [vmem:[#allocation2 + $0x350] sm:$0xff] }
 0x403   :  { %1499 = vmatpush1.bf16.msra.mxu0 %v1220_v4  ;;  %1581 = vmatpush1.bf16.msra.mxu1 %v1222_v5  ;;  %v1301_v53 = vld [vmem:[#allocation2 + $0x388] sm:$0xff]  ;;  %v1303_v54 = vld [vmem:[#allocation2 + $0x398] sm:$0xff]  ;;  %v1300_v55 = vld [vmem:[#allocation2 + $0x380] sm:$0xff] }
 0x404   :  { %1500 = vmatprep.subr.bf16.mxu0 %v1229_v8  ;;  %1582 = vmatprep.subr.bf16.mxu1 %v1231_v9  ;;  %v1302_v56 = vld [vmem:[#allocation2 + $0x390] sm:$0xff]  ;;  %v1309_v57 = vld [vmem:[#allocation2 + $0x3c8] sm:$0xff]  ;;  %v1311_v58 = vld [vmem:[#allocation2 + $0x3d8] sm:$0xff] }
 0x405   :  { %v1308_v20 = vld [vmem:[#allocation2 + $0x3c0] sm:$0xff]  ;;  %v1310_v33 = vld [vmem:[#allocation2 + $0x3d0] sm:$0xff]  ;;  %v1317_v59 = vld [vmem:[#allocation2 + $0x408] sm:$0xff] }
 0x406   :  { %v1319_v60 = vld [vmem:[#allocation2 + $0x418] sm:$0xff]  ;;  %v1316_v62 = vld [vmem:[#allocation2 + $0x400] sm:$0xff]  ;;  %v1318_v63 = vld [vmem:[#allocation2 + $0x410] sm:$0xff] }
 0x407   :  { %1501 = vmatpush1.bf16.msra.mxu0 %v1228_v10  ;;  %1583 = vmatpush1.bf16.msra.mxu1 %v1230_v11  ;;  %v1325_v0 = vld [vmem:[#allocation2 + $0x448] sm:$0xff]  ;;  %v1327_v1 = vld [vmem:[#allocation2 + $0x458] sm:$0xff]  ;;  %v1324_v31 = vld [vmem:[#allocation2 + $0x440] sm:$0xff] }
 0x408   :  { %1502 = vmatprep.subr.bf16.mxu0 %v1237_v12  ;;  %1584 = vmatprep.subr.bf16.mxu1 %v1239_v13  ;;  %v1326_v3 = vld [vmem:[#allocation2 + $0x450] sm:$0xff]  ;;  %v1333_v4 = vld [vmem:[#allocation2 + $0x488] sm:$0xff]  ;;  %v1335_v5 = vld [vmem:[#allocation2 + $0x498] sm:$0xff] }
 0x409   :  { %v1332_v51 = vld [vmem:[#allocation2 + $0x480] sm:$0xff]  ;;  %v1334_v8 = vld [vmem:[#allocation2 + $0x490] sm:$0xff]  ;;  %v1341_v9 = vld [vmem:[#allocation2 + $0x4c8] sm:$0xff] }
 0x40a   :  { %v1343_v10 = vld [vmem:[#allocation2 + $0x4d8] sm:$0xff]  ;;  %v1340_v11 = vld [vmem:[#allocation2 + $0x4c0] sm:$0xff]  ;;  %v1342_v12 = vld [vmem:[#allocation2 + $0x4d0] sm:$0xff] }
 0x40b   :  { %1503 = vmatpush1.bf16.msra.mxu0 %v1236_v14  ;;  %1585 = vmatpush1.bf16.msra.mxu1 %v1238_v15  ;;  %v1349_v13 = vld [vmem:[#allocation2 + $0x508] sm:$0xff]  ;;  %v1351_v14 = vld [vmem:[#allocation2 + $0x518] sm:$0xff]  ;;  %v1348_v15 = vld [vmem:[#allocation2 + $0x500] sm:$0xff] }
 0x40c   :  { %1504 = vmatprep.subr.bf16.mxu0 %v1245_v16  ;;  %1586 = vmatprep.subr.bf16.mxu1 %v1247_v17  ;;  %v1350_v16 = vld [vmem:[#allocation2 + $0x510] sm:$0xff]  ;;  %v1357_v17 = vld [vmem:[#allocation2 + $0x548] sm:$0xff] }
 0x40f   :  { %1505 = vmatpush1.bf16.msra.mxu0 %v1244_v18  ;;  %1587 = vmatpush1.bf16.msra.mxu1 %v1246_v19  ;;  %v1359_v18 = vld [vmem:[#allocation2 + $0x558] sm:$0xff]  ;;  %v1356_v19 = vld [vmem:[#allocation2 + $0x540] sm:$0xff] }
 0x410   :  { %1506 = vmatprep.subr.bf16.mxu0 %v1253_v21  ;;  %1588 = vmatprep.subr.bf16.mxu1 %v1255_v22  ;;  %v1358_v21 = vld [vmem:[#allocation2 + $0x550] sm:$0xff]  ;;  %v1365_v22 = vld [vmem:[#allocation2 + $0x588] sm:$0xff] }
 0x413   :  { %1507 = vmatpush1.bf16.msra.mxu0 %v1252_v23  ;;  %1589 = vmatpush1.bf16.msra.mxu1 %v1254_v24  ;;  %v1367_v23 = vld [vmem:[#allocation2 + $0x598] sm:$0xff]  ;;  %v1364_v24 = vld [vmem:[#allocation2 + $0x580] sm:$0xff] }
 0x414   :  { %1508 = vmatprep.subr.bf16.mxu0 %v1261_v25  ;;  %1590 = vmatprep.subr.bf16.mxu1 %v1263_v26  ;;  %v1366_v25 = vld [vmem:[#allocation2 + $0x590] sm:$0xff]  ;;  %v1373_v26 = vld [vmem:[#allocation2 + $0x5c8] sm:$0xff] }
 0x417   :  { %1509 = vmatpush1.bf16.msra.mxu0 %v1260_v27  ;;  %1591 = vmatpush1.bf16.msra.mxu1 %v1262_v28  ;;  %v1375_v27 = vld [vmem:[#allocation2 + $0x5d8] sm:$0xff]  ;;  %v1372_v28 = vld [vmem:[#allocation2 + $0x5c0] sm:$0xff] }
 0x418   :  { %1510 = vmatprep.subr.bf16.mxu0 %v1269_v29  ;;  %1592 = vmatprep.subr.bf16.mxu1 %v1271_v30  ;;  %v1374_v29 = vld [vmem:[#allocation2 + $0x5d0] sm:$0xff]  ;;  %v1381_v30 = vld [vmem:[#allocation2 + $0x608] sm:$0xff] }
 0x41b   :  { %1511 = vmatpush1.bf16.msra.mxu0 %v1268_v35  ;;  %1593 = vmatpush1.bf16.msra.mxu1 %v1270_v38  ;;  %v1383_v35 = vld [vmem:[#allocation2 + $0x618] sm:$0xff]  ;;  %v1380_v38 = vld [vmem:[#allocation2 + $0x600] sm:$0xff] }
 0x41c   :  { %1512 = vmatprep.subr.bf16.mxu0 %v1277_v40  ;;  %1594 = vmatprep.subr.bf16.mxu1 %v1279_v41  ;;  %v1382_v40 = vld [vmem:[#allocation2 + $0x610] sm:$0xff]  ;;  %v1389_v41 = vld [vmem:[#allocation2 + $0x648] sm:$0xff] }
 0x41f   :  { %1513 = vmatpush1.bf16.msra.mxu0 %v1276_v42  ;;  %1595 = vmatpush1.bf16.msra.mxu1 %v1278_v44  ;;  %v1391_v42 = vld [vmem:[#allocation2 + $0x658] sm:$0xff]  ;;  %v1388_v44 = vld [vmem:[#allocation2 + $0x640] sm:$0xff] }
 0x420   :  { %1514 = vmatprep.subr.bf16.mxu0 %v1285_v45  ;;  %1596 = vmatprep.subr.bf16.mxu1 %v1287_v43  ;;  %v1390_v45 = vld [vmem:[#allocation2 + $0x650] sm:$0xff]  ;;  %v1397_v43 = vld [vmem:[#allocation2 + $0x688] sm:$0xff] }
 0x423   :  { %1515 = vmatpush1.bf16.msra.mxu0 %v1284_v46  ;;  %1597 = vmatpush1.bf16.msra.mxu1 %v1286_v6  ;;  %v1399_v46 = vld [vmem:[#allocation2 + $0x698] sm:$0xff]  ;;  %v1396_v6 = vld [vmem:[#allocation2 + $0x680] sm:$0xff] }
 0x424   :  { %1516 = vmatprep.subr.bf16.mxu0 %v1293_v47  ;;  %1598 = vmatprep.subr.bf16.mxu1 %v1295_v48  ;;  %v1398_v47 = vld [vmem:[#allocation2 + $0x690] sm:$0xff]  ;;  %v1405_v48 = vld [vmem:[#allocation2 + $0x6c8] sm:$0xff] }
 0x427   :  { %1517 = vmatpush1.bf16.msra.mxu0 %v1292_v49  ;;  %1599 = vmatpush1.bf16.msra.mxu1 %v1294_v52  ;;  %v1407_v49 = vld [vmem:[#allocation2 + $0x6d8] sm:$0xff]  ;;  %v1404_v52 = vld [vmem:[#allocation2 + $0x6c0] sm:$0xff] }
 0x428   :  { %1518 = vmatprep.subr.bf16.mxu0 %v1301_v53  ;;  %1600 = vmatprep.subr.bf16.mxu1 %v1303_v54  ;;  %v1406_v53 = vld [vmem:[#allocation2 + $0x6d0] sm:$0xff]  ;;  %v1413_v54 = vld [vmem:[#allocation2 + $0x708] sm:$0xff] }
 0x42b   :  { %1519 = vmatpush1.bf16.msra.mxu0 %v1300_v55  ;;  %1601 = vmatpush1.bf16.msra.mxu1 %v1302_v56  ;;  %v1415_v55 = vld [vmem:[#allocation2 + $0x718] sm:$0xff]  ;;  %v1412_v56 = vld [vmem:[#allocation2 + $0x700] sm:$0xff] }
 0x42c   :  { %1520 = vmatprep.subr.bf16.mxu0 %v1309_v57  ;;  %1602 = vmatprep.subr.bf16.mxu1 %v1311_v58  ;;  %v1414_v57 = vld [vmem:[#allocation2 + $0x710] sm:$0xff]  ;;  %v1421_v58 = vld [vmem:[#allocation2 + $0x748] sm:$0xff] }
 0x42f   :  { %1521 = vmatpush1.bf16.msra.mxu0 %v1308_v20  ;;  %1603 = vmatpush1.bf16.msra.mxu1 %v1310_v33  ;;  %v1423_v20 = vld [vmem:[#allocation2 + $0x758] sm:$0xff]  ;;  %v1420_v33 = vld [vmem:[#allocation2 + $0x740] sm:$0xff] }
 0x430   :  { %1531 = vmatprep.subr.bf16.mxu0 %v1317_v59  ;;  %1613 = vmatprep.subr.bf16.mxu1 %v1319_v60  ;;  %v1422_v59 = vld [vmem:[#allocation2 + $0x750] sm:$0xff]  ;;  %v1429_v60 = vld [vmem:[#allocation2 + $0x788] sm:$0xff] }
 0x432   :  { %1523 = vmatmul.mubr.bf16.vlgmr.msra.gmra.mrb[4].mxu0 %v4185_v61  ;;  %1605 = vmatmul.mubr.bf16.vlgmr.msra.gmra.mrb[12].mxu1 %v4185_v61 }
 0x433   :  { %1532 = vmatpush1.bf16.msra.mxu0 %v1316_v62  ;;  %1614 = vmatpush1.bf16.msra.mxu1 %v1318_v63  ;;  %v1431_v62 = vld [vmem:[#allocation2 + $0x798] sm:$0xff]  ;;  %v1428_v63 = vld [vmem:[#allocation2 + $0x780] sm:$0xff] }
 0x434   :  { %1533 = vmatprep.subr.bf16.mxu0 %v1325_v0  ;;  %1615 = vmatprep.subr.bf16.mxu1 %v1327_v1  ;;  %v1430_v0 = vld [vmem:[#allocation2 + $0x790] sm:$0xff]  ;;  %v1437_v1 = vld [vmem:[#allocation2 + $0x7c8] sm:$0xff] }
 0x435   :  { %1563 = vmatprep.mubr.bf16.mxu0 %v4189_v2  ;;  %1645 = vmatprep.mubr.bf16.mxu1 %v4189_v2 }
 0x437   :  { %1534 = vmatpush1.bf16.msra.mxu0 %v1324_v31  ;;  %1616 = vmatpush1.bf16.msra.mxu1 %v1326_v3  ;;  %v1439_v31 = vld [vmem:[#allocation2 + $0x7d8] sm:$0xff]  ;;  %v1436_v3 = vld [vmem:[#allocation2 + $0x7c0] sm:$0xff] }
 0x438   :  { %1535 = vmatprep.subr.bf16.mxu0 %v1333_v4  ;;  %1617 = vmatprep.subr.bf16.mxu1 %v1335_v5  ;;  %v1438_v4 = vld [vmem:[#allocation2 + $0x7d0] sm:$0xff]  ;;  %v1193_v5 = vld [vmem:[#allocation2 + $0x28] sm:$0xff] }
 0x43b   :  { %1536 = vmatpush1.bf16.msra.mxu0 %v1332_v51  ;;  %1618 = vmatpush1.bf16.msra.mxu1 %v1334_v8  ;;  %v1195_v51 = vld [vmem:[#allocation2 + $0x38] sm:$0xff]  ;;  %v4197_v8 = vpack.c.bf16 %v4173_v50, %v4173_v50  ;;  %v1209_v50 = vld [vmem:[#allocation2 + $0xa8] sm:$0xff] }
 0x43c   :  { %1537 = vmatprep.subr.bf16.mxu0 %v1341_v9  ;;  %1619 = vmatprep.subr.bf16.mxu1 %v1343_v10  ;;  %v1192_v9 = vld [vmem:[#allocation2 + $0x20] sm:$0xff]  ;;  %v1194_v10 = vld [vmem:[#allocation2 + $0x30] sm:$0xff] }
 0x43f   :  { %1538 = vmatpush1.bf16.msra.mxu0 %v1340_v11  ;;  %1620 = vmatpush1.bf16.msra.mxu1 %v1342_v12  ;;  %v1201_v11 = vld [vmem:[#allocation2 + $0x68] sm:$0xff]  ;;  %v1203_v12 = vld [vmem:[#allocation2 + $0x78] sm:$0xff] }
 0x440   :  { %1539 = vmatprep.subr.bf16.mxu0 %v1349_v13  ;;  %1621 = vmatprep.subr.bf16.mxu1 %v1351_v14  ;;  %v1200_v13 = vld [vmem:[#allocation2 + $0x60] sm:$0xff]  ;;  %v1202_v14 = vld [vmem:[#allocation2 + $0x70] sm:$0xff] }
 0x443   :  { %1540 = vmatpush1.bf16.msra.mxu0 %v1348_v15  ;;  %1622 = vmatpush1.bf16.msra.mxu1 %v1350_v16  ;;  %v1211_v15 = vld [vmem:[#allocation2 + $0xb8] sm:$0xff]  ;;  %v1208_v16 = vld [vmem:[#allocation2 + $0xa0] sm:$0xff] }
 0x444   :  { %1541 = vmatprep.subr.bf16.mxu0 %v1357_v17  ;;  %1623 = vmatprep.subr.bf16.mxu1 %v1359_v18  ;;  %v1210_v17 = vld [vmem:[#allocation2 + $0xb0] sm:$0xff]  ;;  %v1217_v18 = vld [vmem:[#allocation2 + $0xe8] sm:$0xff] }
 0x447   :  { %1542 = vmatpush1.bf16.msra.mxu0 %v1356_v19  ;;  %1624 = vmatpush1.bf16.msra.mxu1 %v1358_v21  ;;  %v1219_v19 = vld [vmem:[#allocation2 + $0xf8] sm:$0xff]  ;;  %v1216_v21 = vld [vmem:[#allocation2 + $0xe0] sm:$0xff] }
 0x448   :  { %1543 = vmatprep.subr.bf16.mxu0 %v1365_v22  ;;  %1625 = vmatprep.subr.bf16.mxu1 %v1367_v23  ;;  %v1218_v22 = vld [vmem:[#allocation2 + $0xf0] sm:$0xff]  ;;  %v1225_v23 = vld [vmem:[#allocation2 + $0x128] sm:$0xff] }
 0x44b   :  { %1544 = vmatpush1.bf16.msra.mxu0 %v1364_v24  ;;  %1626 = vmatpush1.bf16.msra.mxu1 %v1366_v25  ;;  %v1227_v24 = vld [vmem:[#allocation2 + $0x138] sm:$0xff]  ;;  %v1226_v25 = vld [vmem:[#allocation2 + $0x130] sm:$0xff] }
 0x44c   :  { %1545 = vmatprep.subr.bf16.mxu0 %v1373_v26  ;;  %1627 = vmatprep.subr.bf16.mxu1 %v1375_v27  ;;  %v1233_v26 = vld [vmem:[#allocation2 + $0x168] sm:$0xff]  ;;  %v1235_v27 = vld [vmem:[#allocation2 + $0x178] sm:$0xff] }
 0x44f   :  { %1546 = vmatpush1.bf16.msra.mxu0 %v1372_v28  ;;  %1628 = vmatpush1.bf16.msra.mxu1 %v1374_v29  ;;  %v1232_v28 = vld [vmem:[#allocation2 + $0x160] sm:$0xff]  ;;  %v1234_v29 = vld [vmem:[#allocation2 + $0x170] sm:$0xff] }
 0x450   :  { %1547 = vmatprep.subr.bf16.mxu0 %v1381_v30  ;;  %1629 = vmatprep.subr.bf16.mxu1 %v1383_v35  ;;  %v1241_v30 = vld [vmem:[#allocation2 + $0x1a8] sm:$0xff]  ;;  %v1243_v35 = vld [vmem:[#allocation2 + $0x1b8] sm:$0xff] }
 0x453   :  { %1548 = vmatpush1.bf16.msra.mxu0 %v1380_v38  ;;  %1630 = vmatpush1.bf16.msra.mxu1 %v1382_v40  ;;  %v1240_v38 = vld [vmem:[#allocation2 + $0x1a0] sm:$0xff]  ;;  %v1242_v40 = vld [vmem:[#allocation2 + $0x1b0] sm:$0xff] }
 0x454   :  { %1549 = vmatprep.subr.bf16.mxu0 %v1389_v41  ;;  %1631 = vmatprep.subr.bf16.mxu1 %v1391_v42  ;;  %v1249_v41 = vld [vmem:[#allocation2 + $0x1e8] sm:$0xff]  ;;  %v1251_v42 = vld [vmem:[#allocation2 + $0x1f8] sm:$0xff] }
 0x457   :  { %1550 = vmatpush1.bf16.msra.mxu0 %v1388_v44  ;;  %1632 = vmatpush1.bf16.msra.mxu1 %v1390_v45  ;;  %v1248_v44 = vld [vmem:[#allocation2 + $0x1e0] sm:$0xff]  ;;  %v1250_v45 = vld [vmem:[#allocation2 + $0x1f0] sm:$0xff] }
 0x458   :  { %1551 = vmatprep.subr.bf16.mxu0 %v1397_v43  ;;  %1633 = vmatprep.subr.bf16.mxu1 %v1399_v46  ;;  %v1257_v43 = vld [vmem:[#allocation2 + $0x228] sm:$0xff]  ;;  %v1259_v46 = vld [vmem:[#allocation2 + $0x238] sm:$0xff] }
 0x45b   :  { %1552 = vmatpush1.bf16.msra.mxu0 %v1396_v6  ;;  %1634 = vmatpush1.bf16.msra.mxu1 %v1398_v47  ;;  %v1256_v6 = vld [vmem:[#allocation2 + $0x220] sm:$0xff]  ;;  %v1258_v47 = vld [vmem:[#allocation2 + $0x230] sm:$0xff] }
 0x45c   :  { %1553 = vmatprep.subr.bf16.mxu0 %v1405_v48  ;;  %1635 = vmatprep.subr.bf16.mxu1 %v1407_v49  ;;  %v1265_v48 = vld [vmem:[#allocation2 + $0x268] sm:$0xff]  ;;  %v1267_v49 = vld [vmem:[#allocation2 + $0x278] sm:$0xff] }
 0x45f   :  { %1554 = vmatpush1.bf16.msra.mxu0 %v1404_v52  ;;  %1636 = vmatpush1.bf16.msra.mxu1 %v1406_v53  ;;  %v1264_v52 = vld [vmem:[#allocation2 + $0x260] sm:$0xff]  ;;  %v1266_v53 = vld [vmem:[#allocation2 + $0x270] sm:$0xff] }
 0x460   :  { %1555 = vmatprep.subr.bf16.mxu0 %v1413_v54  ;;  %1637 = vmatprep.subr.bf16.mxu1 %v1415_v55  ;;  %v1273_v54 = vld [vmem:[#allocation2 + $0x2a8] sm:$0xff]  ;;  %v1275_v55 = vld [vmem:[#allocation2 + $0x2b8] sm:$0xff] }
 0x463   :  { %1556 = vmatpush1.bf16.msra.mxu0 %v1412_v56  ;;  %1638 = vmatpush1.bf16.msra.mxu1 %v1414_v57  ;;  %v1272_v56 = vld [vmem:[#allocation2 + $0x2a0] sm:$0xff]  ;;  %v1274_v57 = vld [vmem:[#allocation2 + $0x2b0] sm:$0xff] }
 0x464   :  { %1557 = vmatprep.subr.bf16.mxu0 %v1421_v58  ;;  %1639 = vmatprep.subr.bf16.mxu1 %v1423_v20  ;;  %v1281_v58 = vld [vmem:[#allocation2 + $0x2e8] sm:$0xff]  ;;  %v1283_v20 = vld [vmem:[#allocation2 + $0x2f8] sm:$0xff] }
 0x467   :  { %1558 = vmatpush1.bf16.msra.mxu0 %v1420_v33  ;;  %1640 = vmatpush1.bf16.msra.mxu1 %v1422_v59  ;;  %v1280_v33 = vld [vmem:[#allocation2 + $0x2e0] sm:$0xff]  ;;  %v1282_v59 = vld [vmem:[#allocation2 + $0x2f0] sm:$0xff] }
 0x468   :  { %1559 = vmatprep.subr.bf16.mxu0 %v1429_v60  ;;  %1641 = vmatprep.subr.bf16.mxu1 %v1431_v62  ;;  %v1289_v60 = vld [vmem:[#allocation2 + $0x328] sm:$0xff]  ;;  %v1291_v62 = vld [vmem:[#allocation2 + $0x338] sm:$0xff] }
 0x46b   :  { %1560 = vmatpush1.bf16.msra.mxu0 %v1428_v63  ;;  %1642 = vmatpush1.bf16.msra.mxu1 %v1430_v0  ;;  %v1288_v63 = vld [vmem:[#allocation2 + $0x320] sm:$0xff]  ;;  %v1290_v0 = vld [vmem:[#allocation2 + $0x330] sm:$0xff] }
 0x46c   :  { %1561 = vmatprep.subr.bf16.mxu0 %v1437_v1  ;;  %1643 = vmatprep.subr.bf16.mxu1 %v1439_v31  ;;  %v1297_v1 = vld [vmem:[#allocation2 + $0x368] sm:$0xff]  ;;  %v1299_v31 = vld [vmem:[#allocation2 + $0x378] sm:$0xff] }
 0x46f   :  { %1562 = vmatpush1.bf16.msra.mxu0 %v1436_v3  ;;  %1644 = vmatpush1.bf16.msra.mxu1 %v1438_v4  ;;  %v1296_v3 = vld [vmem:[#allocation2 + $0x360] sm:$0xff]  ;;  %v1298_v4 = vld [vmem:[#allocation2 + $0x370] sm:$0xff] }
 0x470   :  { %1654 = vmatprep.subr.bf16.mxu0 %v1193_v5  ;;  %1736 = vmatprep.subr.bf16.mxu1 %v1195_v51  ;;  %v1305_v5 = vld [vmem:[#allocation2 + $0x3a8] sm:$0xff]  ;;  %v1307_v51 = vld [vmem:[#allocation2 + $0x3b8] sm:$0xff] }
 0x472   :  { %1564 = vmatmul.mubr.bf16.vlgmr.msra.gmra.mrb[4].mxu0 %v4197_v8  ;;  %1646 = vmatmul.mubr.bf16.vlgmr.msra.gmra.mrb[12].mxu1 %v4197_v8 }
 0x473   :  { %1655 = vmatpush1.bf16.msra.mxu0 %v1192_v9  ;;  %1737 = vmatpush1.bf16.msra.mxu1 %v1194_v10  ;;  %v1304_v9 = vld [vmem:[#allocation2 + $0x3a0] sm:$0xff]  ;;  %v1306_v10 = vld [vmem:[#allocation2 + $0x3b0] sm:$0xff] }
 0x474   :  { %1656 = vmatprep.subr.bf16.mxu0 %v1201_v11  ;;  %1738 = vmatprep.subr.bf16.mxu1 %v1203_v12  ;;  %v1313_v11 = vld [vmem:[#allocation2 + $0x3e8] sm:$0xff]  ;;  %v1315_v12 = vld [vmem:[#allocation2 + $0x3f8] sm:$0xff] }
 0x475   :  { %1686 = vmatprep.mubr.bf16.mxu0 %v4179_v7  ;;  %1768 = vmatprep.mubr.bf16.mxu1 %v4179_v7  ;;  %v1224_v7 = vld [vmem:[#allocation2 + $0x120] sm:$0xff] }
 0x477   :  { %1657 = vmatpush1.bf16.msra.mxu0 %v1200_v13  ;;  %1739 = vmatpush1.bf16.msra.mxu1 %v1202_v14  ;;  %v1312_v13 = vld [vmem:[#allocation2 + $0x3e0] sm:$0xff]  ;;  %v1314_v14 = vld [vmem:[#allocation2 + $0x3f0] sm:$0xff] }
 0x478   :  { %1658 = vmatprep.subr.bf16.mxu0 %v1209_v50  ;;  %1740 = vmatprep.subr.bf16.mxu1 %v1211_v15  ;;  %v1321_v50 = vld [vmem:[#allocation2 + $0x428] sm:$0xff]  ;;  %v1323_v15 = vld [vmem:[#allocation2 + $0x438] sm:$0xff] }
 0x47b   :  { %1659 = vmatpush1.bf16.msra.mxu0 %v1208_v16  ;;  %1741 = vmatpush1.bf16.msra.mxu1 %v1210_v17  ;;  %v1320_v16 = vld [vmem:[#allocation2 + $0x420] sm:$0xff]  ;;  %v1322_v17 = vld [vmem:[#allocation2 + $0x430] sm:$0xff] }
 0x47c   :  { %1660 = vmatprep.subr.bf16.mxu0 %v1217_v18  ;;  %1742 = vmatprep.subr.bf16.mxu1 %v1219_v19  ;;  %v1329_v18 = vld [vmem:[#allocation2 + $0x468] sm:$0xff]  ;;  %v1331_v19 = vld [vmem:[#allocation2 + $0x478] sm:$0xff] }
 0x47f   :  { %1661 = vmatpush1.bf16.msra.mxu0 %v1216_v21  ;;  %1743 = vmatpush1.bf16.msra.mxu1 %v1218_v22  ;;  %v1328_v21 = vld [vmem:[#allocation2 + $0x460] sm:$0xff]  ;;  %v1330_v22 = vld [vmem:[#allocation2 + $0x470] sm:$0xff] }
 0x480   :  { %1662 = vmatprep.subr.bf16.mxu0 %v1225_v23  ;;  %1744 = vmatprep.subr.bf16.mxu1 %v1227_v24  ;;  %v1337_v23 = vld [vmem:[#allocation2 + $0x4a8] sm:$0xff]  ;;  %v1339_v24 = vld [vmem:[#allocation2 + $0x4b8] sm:$0xff] }
 0x483   :  { %1663 = vmatpush1.bf16.msra.mxu0 %v1224_v7  ;;  %1745 = vmatpush1.bf16.msra.mxu1 %v1226_v25  ;;  %v1336_v7 = vld [vmem:[#allocation2 + $0x4a0] sm:$0xff]  ;;  %v1338_v25 = vld [vmem:[#allocation2 + $0x4b0] sm:$0xff] }
 0x484   :  { %1664 = vmatprep.subr.bf16.mxu0 %v1233_v26  ;;  %1746 = vmatprep.subr.bf16.mxu1 %v1235_v27  ;;  %v1345_v26 = vld [vmem:[#allocation2 + $0x4e8] sm:$0xff]  ;;  %v1344_v27 = vld [vmem:[#allocation2 + $0x4e0] sm:$0xff] }
 0x487   :  { %1665 = vmatpush1.bf16.msra.mxu0 %v1232_v28  ;;  %1747 = vmatpush1.bf16.msra.mxu1 %v1234_v29  ;;  %v1346_v28 = vld [vmem:[#allocation2 + $0x4f0] sm:$0xff]  ;;  %v1353_v29 = vld [vmem:[#allocation2 + $0x528] sm:$0xff] }
 0x488   :  { %1666 = vmatprep.subr.bf16.mxu0 %v1241_v30  ;;  %1748 = vmatprep.subr.bf16.mxu1 %v1243_v35  ;;  %v1355_v30 = vld [vmem:[#allocation2 + $0x538] sm:$0xff]  ;;  %v1354_v35 = vld [vmem:[#allocation2 + $0x530] sm:$0xff] }
 0x48b   :  { %1667 = vmatpush1.bf16.msra.mxu0 %v1240_v38  ;;  %1749 = vmatpush1.bf16.msra.mxu1 %v1242_v40  ;;  %v1361_v38 = vld [vmem:[#allocation2 + $0x568] sm:$0xff]  ;;  %v1363_v40 = vld [vmem:[#allocation2 + $0x578] sm:$0xff] }
 0x48c   :  { %1668 = vmatprep.subr.bf16.mxu0 %v1249_v41  ;;  %1750 = vmatprep.subr.bf16.mxu1 %v1251_v42  ;;  %v1360_v41 = vld [vmem:[#allocation2 + $0x560] sm:$0xff]  ;;  %v1362_v42 = vld [vmem:[#allocation2 + $0x570] sm:$0xff] }
 0x48f   :  { %1669 = vmatpush1.bf16.msra.mxu0 %v1248_v44  ;;  %1751 = vmatpush1.bf16.msra.mxu1 %v1250_v45  ;;  %v1369_v44 = vld [vmem:[#allocation2 + $0x5a8] sm:$0xff]  ;;  %v1371_v45 = vld [vmem:[#allocation2 + $0x5b8] sm:$0xff] }
 0x490   :  { %1670 = vmatprep.subr.bf16.mxu0 %v1257_v43  ;;  %1752 = vmatprep.subr.bf16.mxu1 %v1259_v46  ;;  %v1368_v43 = vld [vmem:[#allocation2 + $0x5a0] sm:$0xff]  ;;  %v1370_v46 = vld [vmem:[#allocation2 + $0x5b0] sm:$0xff] }
 0x493   :  { %1671 = vmatpush1.bf16.msra.mxu0 %v1256_v6  ;;  %1753 = vmatpush1.bf16.msra.mxu1 %v1258_v47  ;;  %v1377_v6 = vld [vmem:[#allocation2 + $0x5e8] sm:$0xff]  ;;  %v1379_v47 = vld [vmem:[#allocation2 + $0x5f8] sm:$0xff] }
 0x494   :  { %1672 = vmatprep.subr.bf16.mxu0 %v1265_v48  ;;  %1754 = vmatprep.subr.bf16.mxu1 %v1267_v49  ;;  %v1376_v48 = vld [vmem:[#allocation2 + $0x5e0] sm:$0xff]  ;;  %v1378_v49 = vld [vmem:[#allocation2 + $0x5f0] sm:$0xff] }
 0x497   :  { %1673 = vmatpush1.bf16.msra.mxu0 %v1264_v52  ;;  %1755 = vmatpush1.bf16.msra.mxu1 %v1266_v53  ;;  %v1385_v52 = vld [vmem:[#allocation2 + $0x628] sm:$0xff]  ;;  %v1387_v53 = vld [vmem:[#allocation2 + $0x638] sm:$0xff] }
 0x498   :  { %1674 = vmatprep.subr.bf16.mxu0 %v1273_v54  ;;  %1756 = vmatprep.subr.bf16.mxu1 %v1275_v55  ;;  %v1384_v54 = vld [vmem:[#allocation2 + $0x620] sm:$0xff]  ;;  %v1386_v55 = vld [vmem:[#allocation2 + $0x630] sm:$0xff] }
 0x49b   :  { %1675 = vmatpush1.bf16.msra.mxu0 %v1272_v56  ;;  %1757 = vmatpush1.bf16.msra.mxu1 %v1274_v57  ;;  %v1393_v56 = vld [vmem:[#allocation2 + $0x668] sm:$0xff]  ;;  %v1395_v57 = vld [vmem:[#allocation2 + $0x678] sm:$0xff] }
 0x49c   :  { %1676 = vmatprep.subr.bf16.mxu0 %v1281_v58  ;;  %1758 = vmatprep.subr.bf16.mxu1 %v1283_v20  ;;  %v1392_v58 = vld [vmem:[#allocation2 + $0x660] sm:$0xff]  ;;  %v1394_v20 = vld [vmem:[#allocation2 + $0x670] sm:$0xff] }
 0x49f   :  { %1677 = vmatpush1.bf16.msra.mxu0 %v1280_v33  ;;  %1759 = vmatpush1.bf16.msra.mxu1 %v1282_v59  ;;  %v1401_v33 = vld [vmem:[#allocation2 + $0x6a8] sm:$0xff]  ;;  %v1403_v59 = vld [vmem:[#allocation2 + $0x6b8] sm:$0xff] }
 0x4a0   :  { %1678 = vmatprep.subr.bf16.mxu0 %v1289_v60  ;;  %1760 = vmatprep.subr.bf16.mxu1 %v1291_v62  ;;  %v1400_v60 = vld [vmem:[#allocation2 + $0x6a0] sm:$0xff]  ;;  %v1402_v62 = vld [vmem:[#allocation2 + $0x6b0] sm:$0xff] }
 0x4a3   :  { %1679 = vmatpush1.bf16.msra.mxu0 %v1288_v63  ;;  %1761 = vmatpush1.bf16.msra.mxu1 %v1290_v0  ;;  %v1409_v63 = vld [vmem:[#allocation2 + $0x6e8] sm:$0xff]  ;;  %v1411_v0 = vld [vmem:[#allocation2 + $0x6f8] sm:$0xff] }
 0x4a4   :  { %1680 = vmatprep.subr.bf16.mxu0 %v1297_v1  ;;  %1762 = vmatprep.subr.bf16.mxu1 %v1299_v31  ;;  %v1408_v1 = vld [vmem:[#allocation2 + $0x6e0] sm:$0xff]  ;;  %v1410_v31 = vld [vmem:[#allocation2 + $0x6f0] sm:$0xff] }
 0x4a7   :  { %1681 = vmatpush1.bf16.msra.mxu0 %v1296_v3  ;;  %1763 = vmatpush1.bf16.msra.mxu1 %v1298_v4  ;;  %v1417_v3 = vld [vmem:[#allocation2 + $0x728] sm:$0xff]  ;;  %v1419_v4 = vld [vmem:[#allocation2 + $0x738] sm:$0xff] }
 0x4a8   :  { %1682 = vmatprep.subr.bf16.mxu0 %v1305_v5  ;;  %1764 = vmatprep.subr.bf16.mxu1 %v1307_v51  ;;  %v1416_v5 = vld [vmem:[#allocation2 + $0x720] sm:$0xff]  ;;  %v1418_v51 = vld [vmem:[#allocation2 + $0x730] sm:$0xff] }
 0x4ab   :  { %1683 = vmatpush1.bf16.msra.mxu0 %v1304_v9  ;;  %1765 = vmatpush1.bf16.msra.mxu1 %v1306_v10  ;;  %v1425_v9 = vld [vmem:[#allocation2 + $0x768] sm:$0xff]  ;;  %v1427_v10 = vld [vmem:[#allocation2 + $0x778] sm:$0xff] }
 0x4ac   :  { %1684 = vmatprep.subr.bf16.mxu0 %v1313_v11  ;;  %1766 = vmatprep.subr.bf16.mxu1 %v1315_v12  ;;  %v1424_v11 = vld [vmem:[#allocation2 + $0x760] sm:$0xff]  ;;  %v1426_v12 = vld [vmem:[#allocation2 + $0x770] sm:$0xff] }
 0x4af   :  { %1685 = vmatpush1.bf16.msra.mxu0 %v1312_v13  ;;  %1767 = vmatpush1.bf16.msra.mxu1 %v1314_v14  ;;  %v1433_v13 = vld [vmem:[#allocation2 + $0x7a8] sm:$0xff]  ;;  %v1435_v14 = vld [vmem:[#allocation2 + $0x7b8] sm:$0xff] }
 0x4b0   :  { %1695 = vmatprep.subr.bf16.mxu0 %v1321_v50  ;;  %1777 = vmatprep.subr.bf16.mxu1 %v1323_v15  ;;  %v1432_v50 = vld [vmem:[#allocation2 + $0x7a0] sm:$0xff]  ;;  %v1434_v15 = vld [vmem:[#allocation2 + $0x7b0] sm:$0xff] }
 0x4b2   :  { %1687 = vmatmul.mubr.bf16.vlgmr.msra.gmra.mrb[8].mxu0 %v4185_v61  ;;  %1769 = vmatmul.mubr.bf16.vlgmr.msra.gmra.mrb[16].mxu1 %v4185_v61  ;;  %v1347_v61 = vld [vmem:[#allocation2 + $0x4f8] sm:$0xff] }
 0x4b3   :  { %1696 = vmatpush1.bf16.msra.mxu0 %v1320_v16  ;;  %1778 = vmatpush1.bf16.msra.mxu1 %v1322_v17  ;;  %v1441_v16 = vld [vmem:[#allocation2 + $0x7e8] sm:$0xff]  ;;  %v1443_v17 = vld [vmem:[#allocation2 + $0x7f8] sm:$0xff] }
 0x4b4   :  { %1697 = vmatprep.subr.bf16.mxu0 %v1329_v18  ;;  %1779 = vmatprep.subr.bf16.mxu1 %v1331_v19  ;;  %v1440_v18 = vld [vmem:[#allocation2 + $0x7e0] sm:$0xff]  ;;  %v1442_v19 = vld [vmem:[#allocation2 + $0x7f0] sm:$0xff] }
 0x4b5   :  { %1727 = vmatprep.mubr.bf16.mxu0 %v4189_v2  ;;  %1809 = vmatprep.mubr.bf16.mxu1 %v4189_v2  ;;  %v1352_v2 = vld [vmem:[#allocation2 + $0x520] sm:$0xff] }
 0x4b7   :  { %1698 = vmatpush1.bf16.msra.mxu0 %v1328_v21  ;;  %1780 = vmatpush1.bf16.msra.mxu1 %v1330_v22  ;;  %v4209_v21 = vld [vmem:[#allocation10 + $0x15] sm:$0xff] }
 0x4b8   :  { %1699 = vmatprep.subr.bf16.mxu0 %v1337_v23  ;;  %1781 = vmatprep.subr.bf16.mxu1 %v1339_v24  ;;  %v1453_v22 = vrot.slane %v4209_v21, %v4118_v37  ;;  %v1461_v23 = vrot.slane %v4209_v21, %v4154_v32  ;;  %v1457_v24 = vrot.slane %v4209_v21, %v4121_v39 }
 0x4bb   :  { %1700 = vmatpush1.bf16.msra.mxu0 %v1336_v7  ;;  %1782 = vmatpush1.bf16.msra.mxu1 %v1338_v25  ;;  %v1465_v7 = vrot.slane %v4209_v21, %v4159_v34 }
 0x4bc   :  { %1701 = vmatprep.subr.bf16.mxu0 %v1345_v26  ;;  %1783 = vmatprep.subr.bf16.mxu1 %v1347_v61 }
 0x4bf   :  { %1702 = vmatpush1.bf16.msra.mxu0 %v1344_v27  ;;  %1784 = vmatpush1.bf16.msra.mxu1 %v1346_v28 }
 0x4c0   :  { %1703 = vmatprep.subr.bf16.mxu0 %v1353_v29  ;;  %1785 = vmatprep.subr.bf16.mxu1 %v1355_v30 }
 0x4c3   :  { %1704 = vmatpush1.bf16.msra.mxu0 %v1352_v2  ;;  %1786 = vmatpush1.bf16.msra.mxu1 %v1354_v35 }
 0x4c4   :  { %1705 = vmatprep.subr.bf16.mxu0 %v1361_v38  ;;  %1787 = vmatprep.subr.bf16.mxu1 %v1363_v40 }
 0x4c7   :  { %1706 = vmatpush1.bf16.msra.mxu0 %v1360_v41  ;;  %1788 = vmatpush1.bf16.msra.mxu1 %v1362_v42 }
 0x4c8   :  { %1707 = vmatprep.subr.bf16.mxu0 %v1369_v44  ;;  %1789 = vmatprep.subr.bf16.mxu1 %v1371_v45 }
 0x4cb   :  { %1708 = vmatpush1.bf16.msra.mxu0 %v1368_v43  ;;  %1790 = vmatpush1.bf16.msra.mxu1 %v1370_v46 }
 0x4cc   :  { %1709 = vmatprep.subr.bf16.mxu0 %v1377_v6  ;;  %1791 = vmatprep.subr.bf16.mxu1 %v1379_v47 }
 0x4cf   :  { %1710 = vmatpush1.bf16.msra.mxu0 %v1376_v48  ;;  %1792 = vmatpush1.bf16.msra.mxu1 %v1378_v49 }
 0x4d0   :  { %1711 = vmatprep.subr.bf16.mxu0 %v1385_v52  ;;  %1793 = vmatprep.subr.bf16.mxu1 %v1387_v53 }
 0x4d3   :  { %1712 = vmatpush1.bf16.msra.mxu0 %v1384_v54  ;;  %1794 = vmatpush1.bf16.msra.mxu1 %v1386_v55 }
 0x4d4   :  { %1713 = vmatprep.subr.bf16.mxu0 %v1393_v56  ;;  %1795 = vmatprep.subr.bf16.mxu1 %v1395_v57 }
 0x4d7   :  { %1714 = vmatpush1.bf16.msra.mxu0 %v1392_v58  ;;  %1796 = vmatpush1.bf16.msra.mxu1 %v1394_v20 }
 0x4d8   :  { %1715 = vmatprep.subr.bf16.mxu0 %v1401_v33  ;;  %1797 = vmatprep.subr.bf16.mxu1 %v1403_v59 }
 0x4db   :  { %1716 = vmatpush1.bf16.msra.mxu0 %v1400_v60  ;;  %1798 = vmatpush1.bf16.msra.mxu1 %v1402_v62 }
 0x4dc   :  { %1717 = vmatprep.subr.bf16.mxu0 %v1409_v63  ;;  %1799 = vmatprep.subr.bf16.mxu1 %v1411_v0 }
 0x4df   :  { %1718 = vmatpush1.bf16.msra.mxu0 %v1408_v1  ;;  %1800 = vmatpush1.bf16.msra.mxu1 %v1410_v31 }
 0x4e0   :  { %1719 = vmatprep.subr.bf16.mxu0 %v1417_v3  ;;  %1801 = vmatprep.subr.bf16.mxu1 %v1419_v4 }
 0x4e3   :  { %1720 = vmatpush1.bf16.msra.mxu0 %v1416_v5  ;;  %1802 = vmatpush1.bf16.msra.mxu1 %v1418_v51 }
 0x4e4   :  { %1721 = vmatprep.subr.bf16.mxu0 %v1425_v9  ;;  %1803 = vmatprep.subr.bf16.mxu1 %v1427_v10 }
 0x4e7   :  { %1722 = vmatpush1.bf16.msra.mxu0 %v1424_v11  ;;  %1804 = vmatpush1.bf16.msra.mxu1 %v1426_v12 }
 0x4e8   :  { %1723 = vmatprep.subr.bf16.mxu0 %v1433_v13  ;;  %1805 = vmatprep.subr.bf16.mxu1 %v1435_v14 }
 0x4eb   :  { %1724 = vmatpush1.bf16.msra.mxu0 %v1432_v50  ;;  %1806 = vmatpush1.bf16.msra.mxu1 %v1434_v15 }
 0x4ec   :  { %1725 = vmatprep.subr.bf16.mxu0 %v1441_v16  ;;  %1807 = vmatprep.subr.bf16.mxu1 %v1443_v17 }
 0x4ef   :  { %1726 = vmatpush1.bf16.msra.mxu0 %v1440_v18  ;;  %1808 = vmatpush1.bf16.msra.mxu1 %v1442_v19 }
 0x4f2   :  { %1728 = vmatmul.mubr.bf16.vlgmr.msra.gmra.mrb[8].mxu0 %v4197_v8  ;;  %1810 = vmatmul.mubr.bf16.vlgmr.msra.gmra.mrb[16].mxu1 %v4197_v8 }
 0x545   :  { %v1565_v25 = vpop.f32.mrb[4].mxu0  ;;  %v1647_v26 = vpop.f32.mrb[12].mxu1 }
 0x546   :  { %v4219_v61 = vadd.f32 %v1565_v25, %v1453_v22  ;;  %v4221_v27 = vadd.f32 %v1647_v26, %v1461_v23  ;;  %v1567_v8 = vpop.f32.mrb[5].mxu0  ;;  %v1649_v28 = vpop.f32.mrb[13].mxu1 }
 0x547   :  { %v4223_v29 = vadd.f32 %v1567_v8, %v1457_v24  ;;  %v4225_v30 = vadd.f32 %v1649_v28, %v1465_v7  ;;  %v1569_v2 = vpop.f32.mrb[6].mxu0  ;;  %v1651_v35 = vpop.f32.mrb[14].mxu1 }
 0x548   :  { %v1820_v38 = vrot.slane %v4219_v61, 4  ;;  %v1868_v40 = vmul.f32 %v4219_v61, %v4219_v61  ;;  %v1832_v41 = vrot.slane %v4221_v27, 4  ;;  %v1870_v42 = vmul.f32 %v4221_v27, %v4221_v27  ;;  %v1570_v44 = vpop.f32.mrb[7].mxu0  ;;  %v1652_v45 = vpop.f32.mrb[15].mxu1 }
 0x549   :  { %v1826_v43 = vrot.slane %v4223_v29, 4  ;;  %v1869_v46 = vmul.f32 %v4223_v29, %v4223_v29  ;;  %v1838_v6 = vrot.slane %v4225_v30, 4  ;;  %v1871_v47 = vmul.f32 %v4225_v30, %v4225_v30 }
 0x54a   :  { %v1821_v48 = vadd.f32 %v4219_v61, %v1820_v38  ;;  %v1876_v49 = vrot.slane %v1868_v40, 4  ;;  %v1833_v52 = vadd.f32 %v4221_v27, %v1832_v41  ;;  %v1888_v53 = vrot.slane %v1870_v42, 4 }
 0x54b   :  { %v1827_v54 = vadd.f32 %v4223_v29, %v1826_v43  ;;  %v1882_v55 = vrot.slane %v1869_v46, 4  ;;  %v1839_v56 = vadd.f32 %v4225_v30, %v1838_v6  ;;  %v1894_v57 = vrot.slane %v1871_v47, 4 }
 0x54c   :  { %v1822_v58 = vrot.slane %v1821_v48, 2  ;;  %v1877_v20 = vadd.f32 %v1876_v49, %v1868_v40  ;;  %v1834_v33 = vrot.slane %v1833_v52, 2  ;;  %v1889_v59 = vadd.f32 %v1888_v53, %v1870_v42 }
 0x54d   :  { %v1828_v60 = vrot.slane %v1827_v54, 2  ;;  %v1883_v62 = vadd.f32 %v1882_v55, %v1869_v46  ;;  %v1840_v63 = vrot.slane %v1839_v56, 2  ;;  %v1895_v0 = vadd.f32 %v1894_v57, %v1871_v47 }
 0x54e   :  { %v1823_v1 = vadd.f32 %v1822_v58, %v1821_v48  ;;  %v1878_v31 = vrot.slane %v1877_v20, 2  ;;  %v1835_v3 = vadd.f32 %v1834_v33, %v1833_v52  ;;  %v1890_v4 = vrot.slane %v1889_v59, 2 }
 0x54f   :  { %v1829_v5 = vadd.f32 %v1828_v60, %v1827_v54  ;;  %v1884_v51 = vrot.slane %v1883_v62, 2  ;;  %v1841_v9 = vadd.f32 %v1840_v63, %v1839_v56  ;;  %v1896_v10 = vrot.slane %v1895_v0, 2  ;;  %v4243_v63 = vld [vmem:[#allocation10 + $0x1d] sm:$0xff] }
 0x550   :  { %v1824_v11 = vrot.slane %v1823_v1, 1  ;;  %v1879_v12 = vadd.f32 %v1878_v31, %v1877_v20  ;;  %v1836_v13 = vrot.slane %v1835_v3, 1  ;;  %v1891_v14 = vadd.f32 %v1890_v4, %v1889_v59 }
 0x551   :  { %v1830_v50 = vrot.slane %v1829_v5, 1  ;;  %v1885_v15 = vadd.f32 %v1884_v51, %v1883_v62  ;;  %v1842_v16 = vrot.slane %v1841_v9, 1  ;;  %v1897_v17 = vadd.f32 %v1896_v10, %v1895_v0  ;;  %v4245_v0 = vld [vmem:[#allocation10 + $0x25] sm:$0xff] }
 0x552   :  { %v1825_v18 = vadd.f32 %v1824_v11, %v1823_v1  ;;  %v1880_v19 = vrot.slane %v1879_v12, 1  ;;  %v1837_v22 = vadd.f32 %v1836_v13, %v1835_v3  ;;  %v1892_v23 = vrot.slane %v1891_v14, 1 }
 0x553   :  { %v1831_v24 = vadd.f32 %v1830_v50, %v1829_v5  ;;  %v1886_v7 = vrot.slane %v1885_v15, 1  ;;  %v1843_v25 = vadd.f32 %v1842_v16, %v1841_v9  ;;  %v1898_v26 = vrot.slane %v1897_v17, 1 }
 0x554   :  { %v1881_v8 = vadd.f32 %v1880_v19, %v1879_v12  ;;  %v1924_v28 = vmul.f32 0.125, %v1825_v18  ;;  %v1893_v2 = vadd.f32 %v1892_v23, %v1891_v14  ;;  %v1926_v35 = vmul.f32 0.125, %v1837_v22 }
 0x555   :  { %v1887_v38 = vadd.f32 %v1886_v7, %v1885_v15  ;;  %v1925_v40 = vmul.f32 0.125, %v1831_v24  ;;  %v1899_v41 = vadd.f32 %v1898_v26, %v1897_v17  ;;  %v1927_v42 = vmul.f32 0.125, %v1843_v25 }
 0x556   :  { %v1932_v44 = vmul.f32 0.125, %v1881_v8  ;;  %v1940_v45 = vmul.f32 %v1924_v28, %v1924_v28  ;;  %v1934_v43 = vmul.f32 0.125, %v1893_v2  ;;  %v1942_v46 = vmul.f32 %v1926_v35, %v1926_v35 }
 0x557   :  { %v1933_v6 = vmul.f32 0.125, %v1887_v38  ;;  %v1941_v47 = vmul.f32 %v1925_v40, %v1925_v40  ;;  %v1935_v49 = vmul.f32 0.125, %v1899_v41  ;;  %v1943_v52 = vmul.f32 %v1927_v42, %v1927_v42 }
 0x558   :  { %v1948_v48 = vsub.f32 %v1932_v44, %v1940_v45  ;;  %v1950_v53 = vsub.f32 %v1934_v43, %v1942_v46  ;;  %v1964_v1 = vsub.f32 %v4219_v61, %v1924_v28  ;;  %v2000_v31 = vrot.slane %v4243_v63, %v4118_v37 }
 0x559   :  { %v1949_v54 = vsub.f32 %v1933_v6, %v1941_v47  ;;  %v1951_v56 = vsub.f32 %v1935_v49, %v1943_v52  ;;  %v1966_v4 = vsub.f32 %v4221_v27, %v1926_v35  ;;  %v2008_v5 = vrot.slane %v4243_v63, %v4154_v32 }
 0x55a   :  { %v1956_v55 = vmax.f32 %v1948_v48, 0.0  ;;  %v1958_v57 = vmax.f32 %v1950_v53, 0.0  ;;  %v2049_v10 = vrot.slane %v4245_v0, %v4118_v37  ;;  %v1965_v11 = vsub.f32 %v4223_v29, %v1925_v40 }
 0x55b   :  { %v1957_v58 = vmax.f32 %v1949_v54, 0.0  ;;  %v1959_v33 = vmax.f32 %v1951_v56, 0.0  ;;  %v2004_v12 = vrot.slane %v4243_v63, %v4121_v39  ;;  %v2057_v14 = vrot.slane %v4245_v0, %v4154_v32 }
 0x55c   :  { %v1972_v20 = vadd.f32 1e-05, %v1956_v55  ;;  %v1974_v59 = vadd.f32 1e-05, %v1958_v57  ;;  %v1967_v27 = vsub.f32 %v4225_v30, %v1927_v42  ;;  %v2012_v50 = vrot.slane %v4243_v63, %v4159_v34 }
 0x55d   :  { %v1973_v60 = vadd.f32 1e-05, %v1957_v58  ;;  %v1975_v62 = vadd.f32 1e-05, %v1959_v33  ;;  %v2053_v18 = vrot.slane %v4245_v0, %v4121_v39  ;;  %v2061_v22 = vrot.slane %v4245_v0, %v4159_v34 }
 0x55e   :  { %3820 = vrsqrt.f32 %v1972_v20  ;;  %v4276_v56 = vsub.s32 4, %v4115_v36  ;;  %v4279_v57 = vsub.s32 6, %v4115_v36  ;;  %v4282_v58 = vsub.s32 5, %v4115_v36 }
 0x55f   :  { %3822 = vrsqrt.f32 %v1974_v59  ;;  %v4285_v20 = vsub.s32 7, %v4115_v36 }
 0x560   :  { %3824 = vrsqrt.f32 %v1973_v60  ;;  %v1469_v33 = vrot.slane %v4209_v21, %v4276_v56  ;;  %v1477_v59 = vrot.slane %v4209_v21, %v4279_v57  ;;  %v1473_v60 = vrot.slane %v4209_v21, %v4282_v58 }
 0x561   :  { %3826 = vrsqrt.f32 %v1975_v62  ;;  %v1481_v62 = vrot.slane %v4209_v21, %v4285_v20 }
 0x568   :  { %v3821_v3 = vpop.eup %3820 }
 0x569   :  { %v3823_v51 = vpop.eup %3822  ;;  %v1988_v9 = vmul.f32 %v3821_v3, %v1964_v1 }
 0x56a   :  { %v3825_v61 = vpop.eup %3824  ;;  %v1990_v13 = vmul.f32 %v3823_v51, %v1966_v4 }
 0x56b   :  { %v3827_v15 = vpop.eup %3826  ;;  %v2037_v16 = vmul.f32 %v2000_v31, %v1988_v9  ;;  %v1989_v17 = vmul.f32 %v3825_v61, %v1965_v11 }
 0x56c   :  { %v2039_v29 = vmul.f32 %v2008_v5, %v1990_v13  ;;  %v1991_v19 = vmul.f32 %v3827_v15, %v1967_v27 }
 0x56d   :  { %v2086_v23 = vadd.f32 %v2049_v10, %v2037_v16  ;;  %v2038_v24 = vmul.f32 %v2004_v12, %v1989_v17 }
 0x56e   :  { %v2088_v7 = vadd.f32 %v2057_v14, %v2039_v29  ;;  %v2040_v25 = vmul.f32 %v2012_v50, %v1991_v19 }
 0x56f   :  { %v2102_v26 = vmul.f32 0.70710677, %v2086_v23  ;;  %v2087_v30 = vadd.f32 %v2053_v18, %v2038_v24  ;;  %v2094_v41 = vmul.f32 0.5, %v2086_v23 }
 0x570   :  { %v2104_v8 = vmul.f32 0.70710677, %v2088_v7  ;;  %v2089_v28 = vadd.f32 %v2061_v22, %v2040_v25  ;;  %v2096_v45 = vmul.f32 0.5, %v2088_v7 }
 0x571   :  { %3828 = verf.f32 %v2102_v26  ;;  %v2103_v2 = vmul.f32 0.70710677, %v2087_v30  ;;  %v2095_v47 = vmul.f32 0.5, %v2087_v30 }
 0x572   :  { %3830 = verf.f32 %v2104_v8  ;;  %v2105_v35 = vmul.f32 0.70710677, %v2089_v28  ;;  %v2097_v52 = vmul.f32 0.5, %v2089_v28 }
 0x573   :  { %3832 = verf.f32 %v2103_v2 }
 0x574   :  { %3834 = verf.f32 %v2105_v35 }
 0x57b   :  { %v3829_v38 = vpop.eup %3828 }
 0x57c   :  { %v3831_v40 = vpop.eup %3830  ;;  %v2118_v42 = vadd.f32 1.0, %v3829_v38 }
 0x57d   :  { %v3833_v44 = vpop.eup %3832  ;;  %v2120_v43 = vadd.f32 1.0, %v3831_v40 }
 0x57e   :  { %v3835_v46 = vpop.eup %3834  ;;  %v4267_v6 = vmul.f32 %v2118_v42, %v2094_v41  ;;  %v2119_v48 = vadd.f32 1.0, %v3833_v44 }
 0x57f   :  { %v4269_v49 = vmul.f32 %v2120_v43, %v2096_v45  ;;  %v2121_v53 = vadd.f32 1.0, %v3835_v46 }
 0x580   :  { %v4271_v54 = vmul.f32 %v2119_v48, %v2095_v47 }
 0x581   :  { %v4273_v55 = vmul.f32 %v2121_v53, %v2097_v52 }
 0x5c5   :  { %v1729_v1 = vpop.f32.mrb[8].mxu0  ;;  %v1811_v31 = vpop.f32.mrb[16].mxu1 }
 0x5c6   :  { %v4295_v3 = vadd.f32 %v1729_v1, %v1469_v33  ;;  %v4297_v4 = vadd.f32 %v1811_v31, %v1477_v59  ;;  %v1731_v36 = vpop.f32.mrb[9].mxu0  ;;  %v1813_v5 = vpop.f32.mrb[17].mxu1 }
 0x5c7   :  { %v4299_v51 = vadd.f32 %v1731_v36, %v1473_v60  ;;  %v4301_v9 = vadd.f32 %v1813_v5, %v1481_v62  ;;  %v1733_v10 = vpop.f32.mrb[10].mxu0  ;;  %v1815_v11 = vpop.f32.mrb[18].mxu1 }
 0x5c8   :  { %v1844_v12 = vrot.slane %v4295_v3, 4  ;;  %v1872_v61 = vmul.f32 %v4295_v3, %v4295_v3  ;;  %v1856_v21 = vrot.slane %v4297_v4, 4  ;;  %v1874_v13 = vmul.f32 %v4297_v4, %v4297_v4  ;;  %v1734_v14 = vpop.f32.mrb[11].mxu0  ;;  %v1816_v27 = vpop.f32.mrb[19].mxu1 }
 0x5c9   :  { %v1850_v50 = vrot.slane %v4299_v51, 4  ;;  %v1873_v15 = vmul.f32 %v4299_v51, %v4299_v51  ;;  %v1862_v16 = vrot.slane %v4301_v9, 4  ;;  %v1875_v17 = vmul.f32 %v4301_v9, %v4301_v9 }
 0x5ca   :  { %v1845_v18 = vadd.f32 %v4295_v3, %v1844_v12  ;;  %v1900_v29 = vrot.slane %v1872_v61, 4  ;;  %v1857_v19 = vadd.f32 %v4297_v4, %v1856_v21  ;;  %v1912_v22 = vrot.slane %v1874_v13, 4 }
 0x5cb   :  { %v1851_v23 = vadd.f32 %v4299_v51, %v1850_v50  ;;  %v1906_v24 = vrot.slane %v1873_v15, 4  ;;  %v1863_v7 = vadd.f32 %v4301_v9, %v1862_v16  ;;  %v1918_v25 = vrot.slane %v1875_v17, 4 }
 0x5cc   :  { %v1846_v26 = vrot.slane %v1845_v18, 2  ;;  %v1901_v30 = vadd.f32 %v1900_v29, %v1872_v61  ;;  %v1858_v8 = vrot.slane %v1857_v19, 2  ;;  %v1913_v28 = vadd.f32 %v1912_v22, %v1874_v13 }
 0x5cd   :  { %v1852_v2 = vrot.slane %v1851_v23, 2  ;;  %v1907_v35 = vadd.f32 %v1906_v24, %v1873_v15  ;;  %v1864_v38 = vrot.slane %v1863_v7, 2  ;;  %v1919_v40 = vadd.f32 %v1918_v25, %v1875_v17 }
 0x5ce   :  { %v1847_v41 = vadd.f32 %v1846_v26, %v1845_v18  ;;  %v1902_v42 = vrot.slane %v1901_v30, 2  ;;  %v1859_v44 = vadd.f32 %v1858_v8, %v1857_v19  ;;  %v1914_v45 = vrot.slane %v1913_v28, 2 }
 0x5cf   :  { %v1853_v43 = vadd.f32 %v1852_v2, %v1851_v23  ;;  %v1908_v46 = vrot.slane %v1907_v35, 2  ;;  %v1865_v47 = vadd.f32 %v1864_v38, %v1863_v7  ;;  %v1920_v48 = vrot.slane %v1919_v40, 2 }
 0x5d0   :  { %v1848_v52 = vrot.slane %v1847_v41, 1  ;;  %v1903_v53 = vadd.f32 %v1902_v42, %v1901_v30  ;;  %v1860_v33 = vrot.slane %v1859_v44, 1  ;;  %v1915_v59 = vadd.f32 %v1914_v45, %v1913_v28 }
 0x5d1   :  { %v1854_v60 = vrot.slane %v1853_v43, 1  ;;  %v1909_v62 = vadd.f32 %v1908_v46, %v1907_v35  ;;  %v1866_v1 = vrot.slane %v1865_v47, 1  ;;  %v1921_v31 = vadd.f32 %v1920_v48, %v1919_v40 }
 0x5d2   :  { %v1849_v36 = vadd.f32 %v1848_v52, %v1847_v41  ;;  %v1904_v5 = vrot.slane %v1903_v53, 1  ;;  %v1861_v10 = vadd.f32 %v1860_v33, %v1859_v44  ;;  %v1916_v11 = vrot.slane %v1915_v59, 1 }
 0x5d3   :  { %v1855_v12 = vadd.f32 %v1854_v60, %v1853_v43  ;;  %v1910_v61 = vrot.slane %v1909_v62, 1  ;;  %v1867_v21 = vadd.f32 %v1866_v1, %v1865_v47  ;;  %v1922_v13 = vrot.slane %v1921_v31, 1 }
 0x5d4   :  { %v1905_v14 = vadd.f32 %v1904_v5, %v1903_v53  ;;  %v1928_v27 = vmul.f32 0.125, %v1849_v36  ;;  %v1917_v50 = vadd.f32 %v1916_v11, %v1915_v59  ;;  %v1930_v15 = vmul.f32 0.125, %v1861_v10 }
 0x5d5   :  { %v1911_v16 = vadd.f32 %v1910_v61, %v1909_v62  ;;  %v1929_v17 = vmul.f32 0.125, %v1855_v12  ;;  %v1923_v18 = vadd.f32 %v1922_v13, %v1921_v31  ;;  %v1931_v29 = vmul.f32 0.125, %v1867_v21 }
 0x5d6   :  { %v1936_v19 = vmul.f32 0.125, %v1905_v14  ;;  %v1944_v22 = vmul.f32 %v1928_v27, %v1928_v27  ;;  %v1938_v23 = vmul.f32 0.125, %v1917_v50  ;;  %v1946_v24 = vmul.f32 %v1930_v15, %v1930_v15 }
 0x5d7   :  { %v1937_v7 = vmul.f32 0.125, %v1911_v16  ;;  %v1945_v25 = vmul.f32 %v1929_v17, %v1929_v17  ;;  %v1939_v30 = vmul.f32 0.125, %v1923_v18  ;;  %v1947_v8 = vmul.f32 %v1931_v29, %v1931_v29 }
 0x5d8   :  { %v1952_v26 = vsub.f32 %v1936_v19, %v1944_v22  ;;  %v1954_v28 = vsub.f32 %v1938_v23, %v1946_v24  ;;  %v1968_v47 = vsub.f32 %v4295_v3, %v1928_v27  ;;  %v2016_v48 = vrot.slane %v4243_v63, %v4276_v56 }
 0x5d9   :  { %v1953_v2 = vsub.f32 %v1937_v7, %v1945_v25  ;;  %v1955_v38 = vsub.f32 %v1939_v30, %v1947_v8  ;;  %v1970_v53 = vsub.f32 %v4297_v4, %v1930_v15  ;;  %v2024_v33 = vrot.slane %v4243_v63, %v4279_v57 }
 0x5da   :  { %v1960_v35 = vmax.f32 %v1952_v26, 0.0  ;;  %v1962_v40 = vmax.f32 %v1954_v28, 0.0  ;;  %v2065_v62 = vrot.slane %v4245_v0, %v4276_v56  ;;  %v1969_v1 = vsub.f32 %v4299_v51, %v1929_v17 }
 0x5db   :  { %v1961_v41 = vmax.f32 %v1953_v2, 0.0  ;;  %v1963_v44 = vmax.f32 %v1955_v38, 0.0  ;;  %v2020_v31 = vrot.slane %v4243_v63, %v4282_v58  ;;  %v2073_v5 = vrot.slane %v4245_v0, %v4279_v57 }
 0x5dc   :  { %v1976_v42 = vadd.f32 1e-05, %v1960_v35  ;;  %v1978_v45 = vadd.f32 1e-05, %v1962_v40  ;;  %v1971_v4 = vsub.f32 %v4301_v9, %v1931_v29  ;;  %v2028_v10 = vrot.slane %v4243_v63, %v4285_v20 }
 0x5dd   :  { %v1977_v43 = vadd.f32 1e-05, %v1961_v41  ;;  %v1979_v46 = vadd.f32 1e-05, %v1963_v44  ;;  %v2069_v21 = vrot.slane %v4245_v0, %v4282_v58  ;;  %v2077_v14 = vrot.slane %v4245_v0, %v4285_v20 }
 0x5de   :  { %3836 = vrsqrt.f32 %v1976_v42 }
 0x5df   :  { %3838 = vrsqrt.f32 %v1978_v45 }
 0x5e0   :  { %3840 = vrsqrt.f32 %v1977_v43 }
 0x5e1   :  { %3842 = vrsqrt.f32 %v1979_v46 }
 0x5e8   :  { %v3837_v52 = vpop.eup %3836 }
 0x5e9   :  { %v3839_v59 = vpop.eup %3838  ;;  %v1992_v60 = vmul.f32 %v3837_v52, %v1968_v47 }
 0x5ea   :  { %v3841_v3 = vpop.eup %3840  ;;  %v1994_v36 = vmul.f32 %v3839_v59, %v1970_v53 }
 0x5eb   :  { %v3843_v11 = vpop.eup %3842  ;;  %v2041_v12 = vmul.f32 %v2016_v48, %v1992_v60  ;;  %v1993_v61 = vmul.f32 %v3841_v3, %v1969_v1 }
 0x5ec   :  { %v2043_v51 = vmul.f32 %v2024_v33, %v1994_v36  ;;  %v1995_v13 = vmul.f32 %v3843_v11, %v1971_v4 }
 0x5ed   :  { %v2090_v27 = vadd.f32 %v2065_v62, %v2041_v12  ;;  %v2042_v50 = vmul.f32 %v2020_v31, %v1993_v61 }
 0x5ee   :  { %v2092_v15 = vadd.f32 %v2073_v5, %v2043_v51  ;;  %v2044_v16 = vmul.f32 %v2028_v10, %v1995_v13 }
 0x5ef   :  { %v2106_v17 = vmul.f32 0.70710677, %v2090_v27  ;;  %v2091_v9 = vadd.f32 %v2069_v21, %v2042_v50  ;;  %v2098_v24 = vmul.f32 0.5, %v2090_v27 }
 0x5f0   :  { %v2108_v18 = vmul.f32 0.70710677, %v2092_v15  ;;  %v2093_v29 = vadd.f32 %v2077_v14, %v2044_v16  ;;  %v2100_v0 = vmul.f32 0.5, %v2092_v15 }
 0x5f1   :  { %3844 = verf.f32 %v2106_v17  ;;  %v2107_v63 = vmul.f32 0.70710677, %v2091_v9  ;;  %v2099_v8 = vmul.f32 0.5, %v2091_v9 }
 0x5f2   :  { %3846 = verf.f32 %v2108_v18  ;;  %v2109_v19 = vmul.f32 0.70710677, %v2093_v29  ;;  %v2101_v35 = vmul.f32 0.5, %v2093_v29 }
 0x5f3   :  { %3848 = verf.f32 %v2107_v63 }
 0x5f4   :  { %3850 = verf.f32 %v2109_v19 }
 0x5fb   :  { %v3845_v22 = vpop.eup %3844 }
 0x5fc   :  { %v3847_v23 = vpop.eup %3846  ;;  %v2122_v7 = vadd.f32 1.0, %v3845_v22 }
 0x5fd   :  { %v3849_v25 = vpop.eup %3848  ;;  %v2124_v20 = vadd.f32 1.0, %v3847_v23 }
 0x5fe   :  { %v3851_v26 = vpop.eup %3850  ;;  %v4339_v30 = vmul.f32 %v2122_v7, %v2098_v24  ;;  %v2123_v28 = vadd.f32 1.0, %v3849_v25 }
 0x5ff   :  { %v4341_v2 = vmul.f32 %v2124_v20, %v2100_v0  ;;  %v2125_v38 = vadd.f32 1.0, %v3851_v26 }
 0x600   :  { %v4343_v40 = vmul.f32 %v2123_v28, %v2099_v8 }
 0x601   :  { %v4345_v41 = vmul.f32 %v2125_v38, %v2101_v35 }
 0x602   :  { %3976 = dma.done.wait [#allocation4 + $0x1], 57344 }
 0x603   :  { %3977 = vsyncadd [#allocation4 + $0x1], 4294909952  ;;  %v4349_v42 = vpack.c.bf16 %v4271_v54, %v4271_v54  ;;  %v2139_v44 = vld [vmem:[#allocation3 + $0x8] sm:$0xff]  ;;  %v2141_v45 = vld [vmem:[#allocation3 + $0x18] sm:$0xff] }
 0x604   :  { %v2138_v43 = vld [vmem:[#allocation3] sm:$0xff]  ;;  %2631 = vmatprep.subr.bf16.mxu0 %v2139_v44  ;;  %2795 = vmatprep.subr.bf16.mxu1 %v2141_v45  ;;  %v2140_v46 = vld [vmem:[#allocation3 + $0x10] sm:$0xff]  ;;  %v2145_v52 = vld [vmem:[#allocation3 + $0x38] sm:$0xff] }
 0x605   :  { %2663 = vmatprep.mubr.bf16.mxu0 %v4349_v42  ;;  %2827 = vmatprep.mubr.bf16.mxu1 %v4349_v42  ;;  %v2146_v47 = vld [vmem:[#allocation3 + $0x40] sm:$0xff]  ;;  %v2148_v48 = vld [vmem:[#allocation3 + $0x50] sm:$0xff]  ;;  %v2147_v53 = vld [vmem:[#allocation3 + $0x48] sm:$0xff] }
 0x606   :  { %2632 = vmatpush1.bf16.msra.mxu0 %v2138_v43  ;;  %2796 = vmatpush1.bf16.msra.mxu1 %v2140_v46  ;;  %v2153_v54 = vld [vmem:[#allocation3 + $0x78] sm:$0xff]  ;;  %v2155_v33 = vld [vmem:[#allocation3 + $0x88] sm:$0xff]  ;;  %v2152_v59 = vld [vmem:[#allocation3 + $0x70] sm:$0xff] }
 0x607   :  { %2633 = vmatprep.subr.bf16.mxu0 %v2146_v47  ;;  %2797 = vmatprep.subr.bf16.mxu1 %v2148_v48  ;;  %v2154_v60 = vld [vmem:[#allocation3 + $0x80] sm:$0xff]  ;;  %v2160_v62 = vld [vmem:[#allocation3 + $0xb0] sm:$0xff]  ;;  %v2159_v31 = vld [vmem:[#allocation3 + $0xa8] sm:$0xff] }
 0x608   :  { %v2162_v1 = vld [vmem:[#allocation3 + $0xc0] sm:$0xff]  ;;  %v2161_v3 = vld [vmem:[#allocation3 + $0xb8] sm:$0xff]  ;;  %v2167_v36 = vld [vmem:[#allocation3 + $0xe8] sm:$0xff] }
 0x609   :  { %v2169_v5 = vld [vmem:[#allocation3 + $0xf8] sm:$0xff]  ;;  %v2166_v4 = vld [vmem:[#allocation3 + $0xe0] sm:$0xff]  ;;  %v2168_v10 = vld [vmem:[#allocation3 + $0xf0] sm:$0xff] }
 0x60a   :  { %2634 = vmatpush1.bf16.msra.mxu0 %v2145_v52  ;;  %2798 = vmatpush1.bf16.msra.mxu1 %v2147_v53  ;;  %v2174_v11 = vld [vmem:[#allocation3 + $0x120] sm:$0xff]  ;;  %v2176_v12 = vld [vmem:[#allocation3 + $0x130] sm:$0xff]  ;;  %v2173_v61 = vld [vmem:[#allocation3 + $0x118] sm:$0xff] }
 0x60b   :  { %2635 = vmatprep.subr.bf16.mxu0 %v2153_v54  ;;  %2799 = vmatprep.subr.bf16.mxu1 %v2155_v33  ;;  %v2175_v21 = vld [vmem:[#allocation3 + $0x128] sm:$0xff]  ;;  %v2181_v51 = vld [vmem:[#allocation3 + $0x158] sm:$0xff]  ;;  %v2180_v14 = vld [vmem:[#allocation3 + $0x150] sm:$0xff] }
 0x60c   :  { %v2183_v13 = vld [vmem:[#allocation3 + $0x168] sm:$0xff]  ;;  %v2182_v27 = vld [vmem:[#allocation3 + $0x160] sm:$0xff]  ;;  %v2188_v50 = vld [vmem:[#allocation3 + $0x190] sm:$0xff] }
 0x60d   :  { %v2190_v15 = vld [vmem:[#allocation3 + $0x1a0] sm:$0xff]  ;;  %v2187_v16 = vld [vmem:[#allocation3 + $0x188] sm:$0xff]  ;;  %v2189_v17 = vld [vmem:[#allocation3 + $0x198] sm:$0xff] }
 0x60e   :  { %2636 = vmatpush1.bf16.msra.mxu0 %v2152_v59  ;;  %2800 = vmatpush1.bf16.msra.mxu1 %v2154_v60  ;;  %v2195_v9 = vld [vmem:[#allocation3 + $0x1c8] sm:$0xff]  ;;  %v2197_v18 = vld [vmem:[#allocation3 + $0x1d8] sm:$0xff]  ;;  %v2194_v29 = vld [vmem:[#allocation3 + $0x1c0] sm:$0xff] }
 0x60f   :  { %2637 = vmatprep.subr.bf16.mxu0 %v2160_v62  ;;  %2801 = vmatprep.subr.bf16.mxu1 %v2162_v1  ;;  %v2196_v63 = vld [vmem:[#allocation3 + $0x1d0] sm:$0xff]  ;;  %v2202_v19 = vld [vmem:[#allocation3 + $0x200] sm:$0xff]  ;;  %v2201_v23 = vld [vmem:[#allocation3 + $0x1f8] sm:$0xff] }
 0x610   :  { %v2204_v22 = vld [vmem:[#allocation3 + $0x210] sm:$0xff]  ;;  %v2203_v24 = vld [vmem:[#allocation3 + $0x208] sm:$0xff]  ;;  %v2209_v7 = vld [vmem:[#allocation3 + $0x238] sm:$0xff] }
 0x611   :  { %v2211_v25 = vld [vmem:[#allocation3 + $0x248] sm:$0xff]  ;;  %v2208_v0 = vld [vmem:[#allocation3 + $0x230] sm:$0xff]  ;;  %v2210_v20 = vld [vmem:[#allocation3 + $0x240] sm:$0xff] }
 0x612   :  { %2638 = vmatpush1.bf16.msra.mxu0 %v2159_v31  ;;  %2802 = vmatpush1.bf16.msra.mxu1 %v2161_v3  ;;  %v2216_v26 = vld [vmem:[#allocation3 + $0x270] sm:$0xff]  ;;  %v2218_v8 = vld [vmem:[#allocation3 + $0x280] sm:$0xff]  ;;  %v2215_v28 = vld [vmem:[#allocation3 + $0x268] sm:$0xff] }
 0x613   :  { %2639 = vmatprep.subr.bf16.mxu0 %v2167_v36  ;;  %2803 = vmatprep.subr.bf16.mxu1 %v2169_v5  ;;  %v2217_v35 = vld [vmem:[#allocation3 + $0x278] sm:$0xff]  ;;  %v2223_v38 = vld [vmem:[#allocation3 + $0x2a8] sm:$0xff]  ;;  %v2222_v45 = vld [vmem:[#allocation3 + $0x2a0] sm:$0xff]  ;;  %v4355_v5 = vpack.c.bf16 %v4267_v6, %v4267_v6 }
 0x614   :  { %v2225_v44 = vld [vmem:[#allocation3 + $0x2b8] sm:$0xff]  ;;  %v2224_v43 = vld [vmem:[#allocation3 + $0x2b0] sm:$0xff]  ;;  %v2230_v46 = vld [vmem:[#allocation3 + $0x2e0] sm:$0xff] }
 0x615   :  { %v2232_v47 = vld [vmem:[#allocation3 + $0x2f0] sm:$0xff]  ;;  %v2229_v48 = vld [vmem:[#allocation3 + $0x2d8] sm:$0xff]  ;;  %v2231_v52 = vld [vmem:[#allocation3 + $0x2e8] sm:$0xff] }
 0x616   :  { %2640 = vmatpush1.bf16.msra.mxu0 %v2166_v4  ;;  %2804 = vmatpush1.bf16.msra.mxu1 %v2168_v10  ;;  %v2237_v53 = vld [vmem:[#allocation3 + $0x318] sm:$0xff]  ;;  %v2239_v54 = vld [vmem:[#allocation3 + $0x328] sm:$0xff]  ;;  %v2236_v33 = vld [vmem:[#allocation3 + $0x310] sm:$0xff] }
 0x617   :  { %2641 = vmatprep.subr.bf16.mxu0 %v2174_v11  ;;  %2805 = vmatprep.subr.bf16.mxu1 %v2176_v12  ;;  %v2238_v59 = vld [vmem:[#allocation3 + $0x320] sm:$0xff]  ;;  %v2244_v60 = vld [vmem:[#allocation3 + $0x350] sm:$0xff]  ;;  %v2243_v1 = vld [vmem:[#allocation3 + $0x348] sm:$0xff] }
 0x618   :  { %v2246_v62 = vld [vmem:[#allocation3 + $0x360] sm:$0xff]  ;;  %v2245_v31 = vld [vmem:[#allocation3 + $0x358] sm:$0xff]  ;;  %v2251_v3 = vld [vmem:[#allocation3 + $0x388] sm:$0xff] }
 0x619   :  { %v2253_v36 = vld [vmem:[#allocation3 + $0x398] sm:$0xff]  ;;  %v2250_v4 = vld [vmem:[#allocation3 + $0x380] sm:$0xff]  ;;  %v2252_v10 = vld [vmem:[#allocation3 + $0x390] sm:$0xff] }
 0x61a   :  { %2642 = vmatpush1.bf16.msra.mxu0 %v2173_v61  ;;  %2806 = vmatpush1.bf16.msra.mxu1 %v2175_v21  ;;  %v2258_v11 = vld [vmem:[#allocation3 + $0x3c0] sm:$0xff]  ;;  %v2260_v12 = vld [vmem:[#allocation3 + $0x3d0] sm:$0xff]  ;;  %v4359_v61 = vpack.c.bf16 %v4273_v55, %v4273_v55  ;;  %v2257_v6 = vld [vmem:[#allocation3 + $0x3b8] sm:$0xff] }
 0x61b   :  { %2643 = vmatprep.subr.bf16.mxu0 %v2181_v51  ;;  %2807 = vmatprep.subr.bf16.mxu1 %v2183_v13  ;;  %v2259_v21 = vld [vmem:[#allocation3 + $0x3c8] sm:$0xff]  ;;  %v2265_v51 = vld [vmem:[#allocation3 + $0x3f8] sm:$0xff]  ;;  %v2264_v55 = vld [vmem:[#allocation3 + $0x3f0] sm:$0xff] }
 0x61c   :  { %v2267_v13 = vld [vmem:[#allocation3 + $0x408] sm:$0xff] }
 0x61e   :  { %2644 = vmatpush1.bf16.msra.mxu0 %v2180_v14  ;;  %2808 = vmatpush1.bf16.msra.mxu1 %v2182_v27  ;;  %v2266_v14 = vld [vmem:[#allocation3 + $0x400] sm:$0xff]  ;;  %v2272_v27 = vld [vmem:[#allocation3 + $0x430] sm:$0xff] }
 0x61f   :  { %2645 = vmatprep.subr.bf16.mxu0 %v2188_v50  ;;  %2809 = vmatprep.subr.bf16.mxu1 %v2190_v15  ;;  %v2274_v50 = vld [vmem:[#allocation3 + $0x440] sm:$0xff]  ;;  %v2271_v15 = vld [vmem:[#allocation3 + $0x428] sm:$0xff] }
 0x622   :  { %2646 = vmatpush1.bf16.msra.mxu0 %v2187_v16  ;;  %2810 = vmatpush1.bf16.msra.mxu1 %v2189_v17  ;;  %v2273_v16 = vld [vmem:[#allocation3 + $0x438] sm:$0xff]  ;;  %v2279_v17 = vld [vmem:[#allocation3 + $0x468] sm:$0xff] }
 0x623   :  { %2647 = vmatprep.subr.bf16.mxu0 %v2195_v9  ;;  %2811 = vmatprep.subr.bf16.mxu1 %v2197_v18  ;;  %v2281_v9 = vld [vmem:[#allocation3 + $0x478] sm:$0xff]  ;;  %v2278_v18 = vld [vmem:[#allocation3 + $0x460] sm:$0xff] }
 0x626   :  { %2648 = vmatpush1.bf16.msra.mxu0 %v2194_v29  ;;  %2812 = vmatpush1.bf16.msra.mxu1 %v2196_v63  ;;  %v2280_v29 = vld [vmem:[#allocation3 + $0x470] sm:$0xff]  ;;  %v2286_v63 = vld [vmem:[#allocation3 + $0x4a0] sm:$0xff] }
 0x627   :  { %2649 = vmatprep.subr.bf16.mxu0 %v2202_v19  ;;  %2813 = vmatprep.subr.bf16.mxu1 %v2204_v22  ;;  %v2288_v19 = vld [vmem:[#allocation3 + $0x4b0] sm:$0xff]  ;;  %v2285_v22 = vld [vmem:[#allocation3 + $0x498] sm:$0xff] }
 0x62a   :  { %2650 = vmatpush1.bf16.msra.mxu0 %v2201_v23  ;;  %2814 = vmatpush1.bf16.msra.mxu1 %v2203_v24  ;;  %v2287_v23 = vld [vmem:[#allocation3 + $0x4a8] sm:$0xff]  ;;  %v2293_v24 = vld [vmem:[#allocation3 + $0x4d8] sm:$0xff] }
 0x62b   :  { %2651 = vmatprep.subr.bf16.mxu0 %v2209_v7  ;;  %2815 = vmatprep.subr.bf16.mxu1 %v2211_v25  ;;  %v2295_v7 = vld [vmem:[#allocation3 + $0x4e8] sm:$0xff]  ;;  %v2292_v25 = vld [vmem:[#allocation3 + $0x4d0] sm:$0xff] }
 0x62e   :  { %2652 = vmatpush1.bf16.msra.mxu0 %v2208_v0  ;;  %2816 = vmatpush1.bf16.msra.mxu1 %v2210_v20  ;;  %v2294_v0 = vld [vmem:[#allocation3 + $0x4e0] sm:$0xff]  ;;  %v2300_v20 = vld [vmem:[#allocation3 + $0x510] sm:$0xff] }
 0x62f   :  { %2653 = vmatprep.subr.bf16.mxu0 %v2216_v26  ;;  %2817 = vmatprep.subr.bf16.mxu1 %v2218_v8  ;;  %v2302_v26 = vld [vmem:[#allocation3 + $0x520] sm:$0xff]  ;;  %v2299_v8 = vld [vmem:[#allocation3 + $0x508] sm:$0xff] }
 0x632   :  { %2654 = vmatpush1.bf16.msra.mxu0 %v2215_v28  ;;  %2818 = vmatpush1.bf16.msra.mxu1 %v2217_v35  ;;  %v2301_v28 = vld [vmem:[#allocation3 + $0x518] sm:$0xff]  ;;  %v2307_v35 = vld [vmem:[#allocation3 + $0x548] sm:$0xff] }
 0x633   :  { %2655 = vmatprep.subr.bf16.mxu0 %v2223_v38  ;;  %2819 = vmatprep.subr.bf16.mxu1 %v2225_v44  ;;  %v2309_v38 = vld [vmem:[#allocation3 + $0x558] sm:$0xff]  ;;  %v2306_v44 = vld [vmem:[#allocation3 + $0x540] sm:$0xff] }
 0x636   :  { %2656 = vmatpush1.bf16.msra.mxu0 %v2222_v45  ;;  %2820 = vmatpush1.bf16.msra.mxu1 %v2224_v43  ;;  %v2308_v45 = vld [vmem:[#allocation3 + $0x550] sm:$0xff]  ;;  %v2314_v43 = vld [vmem:[#allocation3 + $0x580] sm:$0xff] }
 0x637   :  { %2657 = vmatprep.subr.bf16.mxu0 %v2230_v46  ;;  %2821 = vmatprep.subr.bf16.mxu1 %v2232_v47  ;;  %v2316_v46 = vld [vmem:[#allocation3 + $0x590] sm:$0xff]  ;;  %v2313_v47 = vld [vmem:[#allocation3 + $0x578] sm:$0xff] }
 0x63a   :  { %2658 = vmatpush1.bf16.msra.mxu0 %v2229_v48  ;;  %2822 = vmatpush1.bf16.msra.mxu1 %v2231_v52  ;;  %v2315_v48 = vld [vmem:[#allocation3 + $0x588] sm:$0xff]  ;;  %v2321_v52 = vld [vmem:[#allocation3 + $0x5b8] sm:$0xff] }
 0x63b   :  { %2659 = vmatprep.subr.bf16.mxu0 %v2237_v53  ;;  %2823 = vmatprep.subr.bf16.mxu1 %v2239_v54  ;;  %v2323_v53 = vld [vmem:[#allocation3 + $0x5c8] sm:$0xff]  ;;  %v2320_v54 = vld [vmem:[#allocation3 + $0x5b0] sm:$0xff] }
 0x63e   :  { %2660 = vmatpush1.bf16.msra.mxu0 %v2236_v33  ;;  %2824 = vmatpush1.bf16.msra.mxu1 %v2238_v59  ;;  %v2322_v33 = vld [vmem:[#allocation3 + $0x5c0] sm:$0xff]  ;;  %v2328_v59 = vld [vmem:[#allocation3 + $0x5f0] sm:$0xff] }
 0x63f   :  { %2661 = vmatprep.subr.bf16.mxu0 %v2244_v60  ;;  %2825 = vmatprep.subr.bf16.mxu1 %v2246_v62  ;;  %v2330_v60 = vld [vmem:[#allocation3 + $0x600] sm:$0xff]  ;;  %v2327_v62 = vld [vmem:[#allocation3 + $0x5e8] sm:$0xff] }
 0x642   :  { %2662 = vmatpush1.bf16.msra.mxu0 %v2243_v1  ;;  %2826 = vmatpush1.bf16.msra.mxu1 %v2245_v31  ;;  %v2329_v1 = vld [vmem:[#allocation3 + $0x5f8] sm:$0xff]  ;;  %v2335_v31 = vld [vmem:[#allocation3 + $0x628] sm:$0xff] }
 0x643   :  { %2672 = vmatprep.subr.bf16.mxu0 %v2251_v3  ;;  %2836 = vmatprep.subr.bf16.mxu1 %v2253_v36  ;;  %v2337_v3 = vld [vmem:[#allocation3 + $0x638] sm:$0xff]  ;;  %v2334_v36 = vld [vmem:[#allocation3 + $0x620] sm:$0xff] }
 0x645   :  { %2664 = vmatmul.mubr.bf16.vlgmr.msra.gmra.mrb[12].mxu0 %v4355_v5  ;;  %2828 = vmatmul.mubr.bf16.vlgmr.msra.gmra.mrb[20].mxu1 %v4355_v5 }
 0x646   :  { %2673 = vmatpush1.bf16.msra.mxu0 %v2250_v4  ;;  %2837 = vmatpush1.bf16.msra.mxu1 %v2252_v10  ;;  %v2336_v4 = vld [vmem:[#allocation3 + $0x630] sm:$0xff]  ;;  %v2342_v10 = vld [vmem:[#allocation3 + $0x660] sm:$0xff] }
 0x647   :  { %2674 = vmatprep.subr.bf16.mxu0 %v2258_v11  ;;  %2838 = vmatprep.subr.bf16.mxu1 %v2260_v12  ;;  %v2344_v11 = vld [vmem:[#allocation3 + $0x670] sm:$0xff]  ;;  %v2341_v12 = vld [vmem:[#allocation3 + $0x658] sm:$0xff] }
 0x648   :  { %2704 = vmatprep.mubr.bf16.mxu0 %v4359_v61  ;;  %2868 = vmatprep.mubr.bf16.mxu1 %v4359_v61 }
 0x64a   :  { %2675 = vmatpush1.bf16.msra.mxu0 %v2257_v6  ;;  %2839 = vmatpush1.bf16.msra.mxu1 %v2259_v21  ;;  %v2343_v6 = vld [vmem:[#allocation3 + $0x668] sm:$0xff]  ;;  %v2349_v21 = vld [vmem:[#allocation3 + $0x698] sm:$0xff] }
 0x64b   :  { %2676 = vmatprep.subr.bf16.mxu0 %v2265_v51  ;;  %2840 = vmatprep.subr.bf16.mxu1 %v2267_v13  ;;  %v2351_v51 = vld [vmem:[#allocation3 + $0x6a8] sm:$0xff]  ;;  %v2348_v13 = vld [vmem:[#allocation3 + $0x690] sm:$0xff] }
 0x64e   :  { %2677 = vmatpush1.bf16.msra.mxu0 %v2264_v55  ;;  %2841 = vmatpush1.bf16.msra.mxu1 %v2266_v14  ;;  %v2350_v55 = vld [vmem:[#allocation3 + $0x6a0] sm:$0xff]  ;;  %v2356_v14 = vld [vmem:[#allocation3 + $0x6d0] sm:$0xff] }
 0x64f   :  { %2678 = vmatprep.subr.bf16.mxu0 %v2272_v27  ;;  %2842 = vmatprep.subr.bf16.mxu1 %v2274_v50  ;;  %v2358_v27 = vld [vmem:[#allocation3 + $0x6e0] sm:$0xff]  ;;  %v2355_v50 = vld [vmem:[#allocation3 + $0x6c8] sm:$0xff] }
 0x652   :  { %2679 = vmatpush1.bf16.msra.mxu0 %v2271_v15  ;;  %2843 = vmatpush1.bf16.msra.mxu1 %v2273_v16  ;;  %v2357_v15 = vld [vmem:[#allocation3 + $0x6d8] sm:$0xff]  ;;  %v2363_v16 = vld [vmem:[#allocation3 + $0x708] sm:$0xff] }
 0x653   :  { %2680 = vmatprep.subr.bf16.mxu0 %v2279_v17  ;;  %2844 = vmatprep.subr.bf16.mxu1 %v2281_v9  ;;  %v2365_v17 = vld [vmem:[#allocation3 + $0x718] sm:$0xff]  ;;  %v4367_v9 = vpack.c.bf16 %v4269_v49, %v4269_v49 }
 0x654   :  { %v2369_v49 = vld [vmem:[#allocation3 + $0x738] sm:$0xff] }
 0x656   :  { %2681 = vmatpush1.bf16.msra.mxu0 %v2278_v18  ;;  %2845 = vmatpush1.bf16.msra.mxu1 %v2280_v29  ;;  %v2362_v18 = vld [vmem:[#allocation3 + $0x700] sm:$0xff]  ;;  %v2364_v29 = vld [vmem:[#allocation3 + $0x710] sm:$0xff] }
 0x657   :  { %2682 = vmatprep.subr.bf16.mxu0 %v2286_v63  ;;  %2846 = vmatprep.subr.bf16.mxu1 %v2288_v19  ;;  %v2370_v63 = vld [vmem:[#allocation3 + $0x740] sm:$0xff]  ;;  %v2372_v19 = vld [vmem:[#allocation3 + $0x750] sm:$0xff] }
 0x65a   :  { %2683 = vmatpush1.bf16.msra.mxu0 %v2285_v22  ;;  %2847 = vmatpush1.bf16.msra.mxu1 %v2287_v23  ;;  %v4371_v22 = vpack.c.bf16 %v4343_v40, %v4343_v40  ;;  %v2371_v23 = vld [vmem:[#allocation3 + $0x748] sm:$0xff]  ;;  %v2376_v40 = vld [vmem:[#allocation3 + $0x770] sm:$0xff] }
 0x65b   :  { %2684 = vmatprep.subr.bf16.mxu0 %v2293_v24  ;;  %2848 = vmatprep.subr.bf16.mxu1 %v2295_v7  ;;  %v2377_v24 = vld [vmem:[#allocation3 + $0x778] sm:$0xff]  ;;  %v2379_v7 = vld [vmem:[#allocation3 + $0x788] sm:$0xff] }
 0x65e   :  { %2685 = vmatpush1.bf16.msra.mxu0 %v2292_v25  ;;  %2849 = vmatpush1.bf16.msra.mxu1 %v2294_v0  ;;  %v2378_v25 = vld [vmem:[#allocation3 + $0x780] sm:$0xff]  ;;  %v2384_v0 = vld [vmem:[#allocation3 + $0x7b0] sm:$0xff] }
 0x65f   :  { %2686 = vmatprep.subr.bf16.mxu0 %v2300_v20  ;;  %2850 = vmatprep.subr.bf16.mxu1 %v2302_v26  ;;  %v2386_v20 = vld [vmem:[#allocation3 + $0x7c0] sm:$0xff]  ;;  %v2383_v26 = vld [vmem:[#allocation3 + $0x7a8] sm:$0xff] }
 0x662   :  { %2687 = vmatpush1.bf16.msra.mxu0 %v2299_v8  ;;  %2851 = vmatpush1.bf16.msra.mxu1 %v2301_v28  ;;  %v2385_v8 = vld [vmem:[#allocation3 + $0x7b8] sm:$0xff]  ;;  %v2391_v28 = vld [vmem:[#allocation3 + $0x7e8] sm:$0xff] }
 0x663   :  { %2688 = vmatprep.subr.bf16.mxu0 %v2307_v35  ;;  %2852 = vmatprep.subr.bf16.mxu1 %v2309_v38  ;;  %v2393_v35 = vld [vmem:[#allocation3 + $0x7f8] sm:$0xff]  ;;  %v2390_v38 = vld [vmem:[#allocation3 + $0x7e0] sm:$0xff] }
 0x666   :  { %2689 = vmatpush1.bf16.msra.mxu0 %v2306_v44  ;;  %2853 = vmatpush1.bf16.msra.mxu1 %v2308_v45  ;;  %v2392_v44 = vld [vmem:[#allocation3 + $0x7f0] sm:$0xff]  ;;  %v2398_v45 = vld [vmem:[#allocation3 + $0x820] sm:$0xff] }
 0x667   :  { %2690 = vmatprep.subr.bf16.mxu0 %v2314_v43  ;;  %2854 = vmatprep.subr.bf16.mxu1 %v2316_v46  ;;  %v2400_v43 = vld [vmem:[#allocation3 + $0x830] sm:$0xff]  ;;  %v2397_v46 = vld [vmem:[#allocation3 + $0x818] sm:$0xff] }
 0x66a   :  { %2691 = vmatpush1.bf16.msra.mxu0 %v2313_v47  ;;  %2855 = vmatpush1.bf16.msra.mxu1 %v2315_v48  ;;  %v2399_v47 = vld [vmem:[#allocation3 + $0x828] sm:$0xff]  ;;  %v2405_v48 = vld [vmem:[#allocation3 + $0x858] sm:$0xff] }
 0x66b   :  { %2692 = vmatprep.subr.bf16.mxu0 %v2321_v52  ;;  %2856 = vmatprep.subr.bf16.mxu1 %v2323_v53  ;;  %v2407_v52 = vld [vmem:[#allocation3 + $0x868] sm:$0xff]  ;;  %v2404_v53 = vld [vmem:[#allocation3 + $0x850] sm:$0xff] }
 0x66e   :  { %2693 = vmatpush1.bf16.msra.mxu0 %v2320_v54  ;;  %2857 = vmatpush1.bf16.msra.mxu1 %v2322_v33  ;;  %v2406_v54 = vld [vmem:[#allocation3 + $0x860] sm:$0xff]  ;;  %v2412_v33 = vld [vmem:[#allocation3 + $0x890] sm:$0xff] }
 0x66f   :  { %2694 = vmatprep.subr.bf16.mxu0 %v2328_v59  ;;  %2858 = vmatprep.subr.bf16.mxu1 %v2330_v60  ;;  %v2414_v59 = vld [vmem:[#allocation3 + $0x8a0] sm:$0xff]  ;;  %v2411_v60 = vld [vmem:[#allocation3 + $0x888] sm:$0xff] }
 0x672   :  { %2695 = vmatpush1.bf16.msra.mxu0 %v2327_v62  ;;  %2859 = vmatpush1.bf16.msra.mxu1 %v2329_v1  ;;  %v2413_v62 = vld [vmem:[#allocation3 + $0x898] sm:$0xff]  ;;  %v2419_v1 = vld [vmem:[#allocation3 + $0x8c8] sm:$0xff] }
 0x673   :  { %2696 = vmatprep.subr.bf16.mxu0 %v2335_v31  ;;  %2860 = vmatprep.subr.bf16.mxu1 %v2337_v3  ;;  %v2421_v31 = vld [vmem:[#allocation3 + $0x8d8] sm:$0xff]  ;;  %v2418_v3 = vld [vmem:[#allocation3 + $0x8c0] sm:$0xff] }
 0x676   :  { %2697 = vmatpush1.bf16.msra.mxu0 %v2334_v36  ;;  %2861 = vmatpush1.bf16.msra.mxu1 %v2336_v4  ;;  %v2420_v36 = vld [vmem:[#allocation3 + $0x8d0] sm:$0xff]  ;;  %v2426_v4 = vld [vmem:[#allocation3 + $0x900] sm:$0xff] }
 0x677   :  { %2698 = vmatprep.subr.bf16.mxu0 %v2342_v10  ;;  %2862 = vmatprep.subr.bf16.mxu1 %v2344_v11  ;;  %v2428_v10 = vld [vmem:[#allocation3 + $0x910] sm:$0xff]  ;;  %v2425_v11 = vld [vmem:[#allocation3 + $0x8f8] sm:$0xff] }
 0x67a   :  { %2699 = vmatpush1.bf16.msra.mxu0 %v2341_v12  ;;  %2863 = vmatpush1.bf16.msra.mxu1 %v2343_v6  ;;  %v2427_v12 = vld [vmem:[#allocation3 + $0x908] sm:$0xff]  ;;  %v2433_v6 = vld [vmem:[#allocation3 + $0x938] sm:$0xff] }
 0x67b   :  { %2700 = vmatprep.subr.bf16.mxu0 %v2349_v21  ;;  %2864 = vmatprep.subr.bf16.mxu1 %v2351_v51  ;;  %v2435_v21 = vld [vmem:[#allocation3 + $0x948] sm:$0xff]  ;;  %v2432_v51 = vld [vmem:[#allocation3 + $0x930] sm:$0xff] }
 0x67e   :  { %2701 = vmatpush1.bf16.msra.mxu0 %v2348_v13  ;;  %2865 = vmatpush1.bf16.msra.mxu1 %v2350_v55  ;;  %v2434_v13 = vld [vmem:[#allocation3 + $0x940] sm:$0xff]  ;;  %v2440_v55 = vld [vmem:[#allocation3 + $0x970] sm:$0xff] }
 0x67f   :  { %2702 = vmatprep.subr.bf16.mxu0 %v2356_v14  ;;  %2866 = vmatprep.subr.bf16.mxu1 %v2358_v27  ;;  %v2442_v14 = vld [vmem:[#allocation3 + $0x980] sm:$0xff]  ;;  %v2439_v27 = vld [vmem:[#allocation3 + $0x968] sm:$0xff] }
 0x682   :  { %2703 = vmatpush1.bf16.msra.mxu0 %v2355_v50  ;;  %2867 = vmatpush1.bf16.msra.mxu1 %v2357_v15  ;;  %v2441_v50 = vld [vmem:[#allocation3 + $0x978] sm:$0xff]  ;;  %v2447_v15 = vld [vmem:[#allocation3 + $0x9a8] sm:$0xff] }
 0x683   :  { %2713 = vmatprep.subr.bf16.mxu0 %v2363_v16  ;;  %2877 = vmatprep.subr.bf16.mxu1 %v2365_v17  ;;  %v2449_v16 = vld [vmem:[#allocation3 + $0x9b8] sm:$0xff]  ;;  %v2446_v17 = vld [vmem:[#allocation3 + $0x9a0] sm:$0xff] }
 0x685   :  { %2705 = vmatmul.mubr.bf16.vlgmr.msra.gmra.mrb[12].mxu0 %v4367_v9  ;;  %2869 = vmatmul.mubr.bf16.vlgmr.msra.gmra.mrb[20].mxu1 %v4367_v9 }
 0x686   :  { %2714 = vmatpush1.bf16.msra.mxu0 %v2362_v18  ;;  %2878 = vmatpush1.bf16.msra.mxu1 %v2364_v29  ;;  %v2448_v18 = vld [vmem:[#allocation3 + $0x9b0] sm:$0xff]  ;;  %v2454_v29 = vld [vmem:[#allocation3 + $0x9e0] sm:$0xff] }
 0x687   :  { %2715 = vmatprep.subr.bf16.mxu0 %v2370_v63  ;;  %2879 = vmatprep.subr.bf16.mxu1 %v2372_v19  ;;  %v2456_v63 = vld [vmem:[#allocation3 + $0x9f0] sm:$0xff]  ;;  %v2453_v19 = vld [vmem:[#allocation3 + $0x9d8] sm:$0xff] }
 0x688   :  { %2745 = vmatprep.mubr.bf16.mxu0 %v4371_v22  ;;  %2909 = vmatprep.mubr.bf16.mxu1 %v4371_v22 }
 0x68a   :  { %2716 = vmatpush1.bf16.msra.mxu0 %v2369_v49  ;;  %2880 = vmatpush1.bf16.msra.mxu1 %v2371_v23  ;;  %v2455_v49 = vld [vmem:[#allocation3 + $0x9e8] sm:$0xff]  ;;  %v2461_v23 = vld [vmem:[#allocation3 + $0xa18] sm:$0xff] }
 0x68b   :  { %2717 = vmatprep.subr.bf16.mxu0 %v2377_v24  ;;  %2881 = vmatprep.subr.bf16.mxu1 %v2379_v7  ;;  %v2463_v24 = vld [vmem:[#allocation3 + $0xa28] sm:$0xff]  ;;  %v2460_v7 = vld [vmem:[#allocation3 + $0xa10] sm:$0xff] }
 0x68e   :  { %2718 = vmatpush1.bf16.msra.mxu0 %v2376_v40  ;;  %2882 = vmatpush1.bf16.msra.mxu1 %v2378_v25  ;;  %v2462_v40 = vld [vmem:[#allocation3 + $0xa20] sm:$0xff]  ;;  %v2468_v25 = vld [vmem:[#allocation3 + $0xa50] sm:$0xff] }
 0x68f   :  { %2719 = vmatprep.subr.bf16.mxu0 %v2384_v0  ;;  %2883 = vmatprep.subr.bf16.mxu1 %v2386_v20  ;;  %v2470_v0 = vld [vmem:[#allocation3 + $0xa60] sm:$0xff]  ;;  %v2467_v20 = vld [vmem:[#allocation3 + $0xa48] sm:$0xff] }
 0x692   :  { %2720 = vmatpush1.bf16.msra.mxu0 %v2383_v26  ;;  %2884 = vmatpush1.bf16.msra.mxu1 %v2385_v8  ;;  %v2469_v26 = vld [vmem:[#allocation3 + $0xa58] sm:$0xff]  ;;  %v2475_v8 = vld [vmem:[#allocation3 + $0xa88] sm:$0xff] }
 0x693   :  { %2721 = vmatprep.subr.bf16.mxu0 %v2391_v28  ;;  %2885 = vmatprep.subr.bf16.mxu1 %v2393_v35  ;;  %v2477_v28 = vld [vmem:[#allocation3 + $0xa98] sm:$0xff]  ;;  %v4379_v35 = vpack.c.bf16 %v4339_v30, %v4339_v30 }
 0x694   :  { %v2481_v30 = vld [vmem:[#allocation3 + $0xab8] sm:$0xff] }
 0x696   :  { %2722 = vmatpush1.bf16.msra.mxu0 %v2390_v38  ;;  %2886 = vmatpush1.bf16.msra.mxu1 %v2392_v44  ;;  %v2474_v38 = vld [vmem:[#allocation3 + $0xa80] sm:$0xff]  ;;  %v2476_v44 = vld [vmem:[#allocation3 + $0xa90] sm:$0xff] }
 0x697   :  { %2723 = vmatprep.subr.bf16.mxu0 %v2398_v45  ;;  %2887 = vmatprep.subr.bf16.mxu1 %v2400_v43  ;;  %v2482_v45 = vld [vmem:[#allocation3 + $0xac0] sm:$0xff]  ;;  %v2484_v43 = vld [vmem:[#allocation3 + $0xad0] sm:$0xff] }
 0x69a   :  { %2724 = vmatpush1.bf16.msra.mxu0 %v2397_v46  ;;  %2888 = vmatpush1.bf16.msra.mxu1 %v2399_v47  ;;  %v4383_v46 = vpack.c.bf16 %v4345_v41, %v4345_v41  ;;  %v2483_v47 = vld [vmem:[#allocation3 + $0xac8] sm:$0xff]  ;;  %v2488_v41 = vld [vmem:[#allocation3 + $0xaf0] sm:$0xff] }
 0x69b   :  { %2725 = vmatprep.subr.bf16.mxu0 %v2405_v48  ;;  %2889 = vmatprep.subr.bf16.mxu1 %v2407_v52  ;;  %v2489_v48 = vld [vmem:[#allocation3 + $0xaf8] sm:$0xff]  ;;  %v2491_v52 = vld [vmem:[#allocation3 + $0xb08] sm:$0xff] }
 0x69e   :  { %2726 = vmatpush1.bf16.msra.mxu0 %v2404_v53  ;;  %2890 = vmatpush1.bf16.msra.mxu1 %v2406_v54  ;;  %v2490_v53 = vld [vmem:[#allocation3 + $0xb00] sm:$0xff]  ;;  %v2496_v54 = vld [vmem:[#allocation3 + $0xb30] sm:$0xff] }
 0x69f   :  { %2727 = vmatprep.subr.bf16.mxu0 %v2412_v33  ;;  %2891 = vmatprep.subr.bf16.mxu1 %v2414_v59  ;;  %v2498_v33 = vld [vmem:[#allocation3 + $0xb40] sm:$0xff]  ;;  %v2495_v59 = vld [vmem:[#allocation3 + $0xb28] sm:$0xff] }
 0x6a2   :  { %2728 = vmatpush1.bf16.msra.mxu0 %v2411_v60  ;;  %2892 = vmatpush1.bf16.msra.mxu1 %v2413_v62  ;;  %v2497_v60 = vld [vmem:[#allocation3 + $0xb38] sm:$0xff]  ;;  %v2503_v62 = vld [vmem:[#allocation3 + $0xb68] sm:$0xff] }
 0x6a3   :  { %2729 = vmatprep.subr.bf16.mxu0 %v2419_v1  ;;  %2893 = vmatprep.subr.bf16.mxu1 %v2421_v31  ;;  %v2505_v1 = vld [vmem:[#allocation3 + $0xb78] sm:$0xff]  ;;  %v2502_v31 = vld [vmem:[#allocation3 + $0xb60] sm:$0xff] }
 0x6a6   :  { %2730 = vmatpush1.bf16.msra.mxu0 %v2418_v3  ;;  %2894 = vmatpush1.bf16.msra.mxu1 %v2420_v36  ;;  %v2504_v3 = vld [vmem:[#allocation3 + $0xb70] sm:$0xff]  ;;  %v2510_v36 = vld [vmem:[#allocation3 + $0xba0] sm:$0xff] }
 0x6a7   :  { %2731 = vmatprep.subr.bf16.mxu0 %v2426_v4  ;;  %2895 = vmatprep.subr.bf16.mxu1 %v2428_v10  ;;  %v2512_v4 = vld [vmem:[#allocation3 + $0xbb0] sm:$0xff]  ;;  %v2509_v10 = vld [vmem:[#allocation3 + $0xb98] sm:$0xff] }
 0x6aa   :  { %2732 = vmatpush1.bf16.msra.mxu0 %v2425_v11  ;;  %2896 = vmatpush1.bf16.msra.mxu1 %v2427_v12  ;;  %v2511_v11 = vld [vmem:[#allocation3 + $0xba8] sm:$0xff]  ;;  %v2517_v12 = vld [vmem:[#allocation3 + $0xbd8] sm:$0xff] }
 0x6ab   :  { %2733 = vmatprep.subr.bf16.mxu0 %v2433_v6  ;;  %2897 = vmatprep.subr.bf16.mxu1 %v2435_v21  ;;  %v2519_v6 = vld [vmem:[#allocation3 + $0xbe8] sm:$0xff]  ;;  %v2516_v21 = vld [vmem:[#allocation3 + $0xbd0] sm:$0xff] }
 0x6ae   :  { %2734 = vmatpush1.bf16.msra.mxu0 %v2432_v51  ;;  %2898 = vmatpush1.bf16.msra.mxu1 %v2434_v13  ;;  %v2518_v51 = vld [vmem:[#allocation3 + $0xbe0] sm:$0xff]  ;;  %v2524_v13 = vld [vmem:[#allocation3 + $0xc10] sm:$0xff] }
 0x6af   :  { %2735 = vmatprep.subr.bf16.mxu0 %v2440_v55  ;;  %2899 = vmatprep.subr.bf16.mxu1 %v2442_v14  ;;  %v2526_v55 = vld [vmem:[#allocation3 + $0xc20] sm:$0xff]  ;;  %v2523_v14 = vld [vmem:[#allocation3 + $0xc08] sm:$0xff] }
 0x6b2   :  { %2736 = vmatpush1.bf16.msra.mxu0 %v2439_v27  ;;  %2900 = vmatpush1.bf16.msra.mxu1 %v2441_v50  ;;  %v2525_v27 = vld [vmem:[#allocation3 + $0xc18] sm:$0xff]  ;;  %v2531_v50 = vld [vmem:[#allocation3 + $0xc48] sm:$0xff] }
 0x6b3   :  { %2737 = vmatprep.subr.bf16.mxu0 %v2447_v15  ;;  %2901 = vmatprep.subr.bf16.mxu1 %v2449_v16  ;;  %v2533_v15 = vld [vmem:[#allocation3 + $0xc58] sm:$0xff]  ;;  %v2530_v16 = vld [vmem:[#allocation3 + $0xc40] sm:$0xff] }
 0x6b6   :  { %2738 = vmatpush1.bf16.msra.mxu0 %v2446_v17  ;;  %2902 = vmatpush1.bf16.msra.mxu1 %v2448_v18  ;;  %v2532_v17 = vld [vmem:[#allocation3 + $0xc50] sm:$0xff]  ;;  %v2538_v18 = vld [vmem:[#allocation3 + $0xc80] sm:$0xff] }
 0x6b7   :  { %2739 = vmatprep.subr.bf16.mxu0 %v2454_v29  ;;  %2903 = vmatprep.subr.bf16.mxu1 %v2456_v63  ;;  %v2540_v29 = vld [vmem:[#allocation3 + $0xc90] sm:$0xff]  ;;  %v2537_v63 = vld [vmem:[#allocation3 + $0xc78] sm:$0xff] }
 0x6ba   :  { %2740 = vmatpush1.bf16.msra.mxu0 %v2453_v19  ;;  %2904 = vmatpush1.bf16.msra.mxu1 %v2455_v49  ;;  %v2539_v19 = vld [vmem:[#allocation3 + $0xc88] sm:$0xff]  ;;  %v2545_v49 = vld [vmem:[#allocation3 + $0xcb8] sm:$0xff] }
 0x6bb   :  { %2741 = vmatprep.subr.bf16.mxu0 %v2461_v23  ;;  %2905 = vmatprep.subr.bf16.mxu1 %v2463_v24  ;;  %v2547_v23 = vld [vmem:[#allocation3 + $0xcc8] sm:$0xff]  ;;  %v2544_v24 = vld [vmem:[#allocation3 + $0xcb0] sm:$0xff] }
 0x6be   :  { %2742 = vmatpush1.bf16.msra.mxu0 %v2460_v7  ;;  %2906 = vmatpush1.bf16.msra.mxu1 %v2462_v40  ;;  %v2546_v7 = vld [vmem:[#allocation3 + $0xcc0] sm:$0xff]  ;;  %v2552_v40 = vld [vmem:[#allocation3 + $0xcf0] sm:$0xff] }
 0x6bf   :  { %2743 = vmatprep.subr.bf16.mxu0 %v2468_v25  ;;  %2907 = vmatprep.subr.bf16.mxu1 %v2470_v0  ;;  %v2554_v25 = vld [vmem:[#allocation3 + $0xd00] sm:$0xff]  ;;  %v2551_v0 = vld [vmem:[#allocation3 + $0xce8] sm:$0xff] }
 0x6c2   :  { %2744 = vmatpush1.bf16.msra.mxu0 %v2467_v20  ;;  %2908 = vmatpush1.bf16.msra.mxu1 %v2469_v26  ;;  %v2553_v20 = vld [vmem:[#allocation3 + $0xcf8] sm:$0xff]  ;;  %v2559_v26 = vld [vmem:[#allocation3 + $0xd28] sm:$0xff] }
 0x6c3   :  { %2754 = vmatprep.subr.bf16.mxu0 %v2475_v8  ;;  %2918 = vmatprep.subr.bf16.mxu1 %v2477_v28  ;;  %v2561_v8 = vld [vmem:[#allocation3 + $0xd38] sm:$0xff]  ;;  %v2558_v28 = vld [vmem:[#allocation3 + $0xd20] sm:$0xff] }
 0x6c5   :  { %2746 = vmatmul.mubr.bf16.vlgmr.msra.gmra.mrb[12].mxu0 %v4379_v35  ;;  %2910 = vmatmul.mubr.bf16.vlgmr.msra.gmra.mrb[20].mxu1 %v4379_v35 }
 0x6c6   :  { %2755 = vmatpush1.bf16.msra.mxu0 %v2474_v38  ;;  %2919 = vmatpush1.bf16.msra.mxu1 %v2476_v44  ;;  %v2560_v38 = vld [vmem:[#allocation3 + $0xd30] sm:$0xff]  ;;  %v2566_v44 = vld [vmem:[#allocation3 + $0xd60] sm:$0xff] }
 0x6c7   :  { %2756 = vmatprep.subr.bf16.mxu0 %v2482_v45  ;;  %2920 = vmatprep.subr.bf16.mxu1 %v2484_v43  ;;  %v2568_v45 = vld [vmem:[#allocation3 + $0xd70] sm:$0xff]  ;;  %v2565_v43 = vld [vmem:[#allocation3 + $0xd58] sm:$0xff] }
 0x6c8   :  { %2786 = vmatprep.mubr.bf16.mxu0 %v4383_v46  ;;  %2950 = vmatprep.mubr.bf16.mxu1 %v4383_v46 }
 0x6ca   :  { %2757 = vmatpush1.bf16.msra.mxu0 %v2481_v30  ;;  %2921 = vmatpush1.bf16.msra.mxu1 %v2483_v47  ;;  %v2567_v30 = vld [vmem:[#allocation3 + $0xd68] sm:$0xff]  ;;  %v2573_v47 = vld [vmem:[#allocation3 + $0xd98] sm:$0xff] }
 0x6cb   :  { %2758 = vmatprep.subr.bf16.mxu0 %v2489_v48  ;;  %2922 = vmatprep.subr.bf16.mxu1 %v2491_v52  ;;  %v2575_v48 = vld [vmem:[#allocation3 + $0xda8] sm:$0xff]  ;;  %v2572_v52 = vld [vmem:[#allocation3 + $0xd90] sm:$0xff] }
 0x6ce   :  { %2759 = vmatpush1.bf16.msra.mxu0 %v2488_v41  ;;  %2923 = vmatpush1.bf16.msra.mxu1 %v2490_v53  ;;  %v2574_v41 = vld [vmem:[#allocation3 + $0xda0] sm:$0xff]  ;;  %v2580_v53 = vld [vmem:[#allocation3 + $0xdd0] sm:$0xff] }
 0x6cf   :  { %2760 = vmatprep.subr.bf16.mxu0 %v2496_v54  ;;  %2924 = vmatprep.subr.bf16.mxu1 %v2498_v33  ;;  %v2582_v54 = vld [vmem:[#allocation3 + $0xde0] sm:$0xff]  ;;  %v2579_v33 = vld [vmem:[#allocation3 + $0xdc8] sm:$0xff] }
 0x6d2   :  { %2761 = vmatpush1.bf16.msra.mxu0 %v2495_v59  ;;  %2925 = vmatpush1.bf16.msra.mxu1 %v2497_v60  ;;  %v2581_v59 = vld [vmem:[#allocation3 + $0xdd8] sm:$0xff]  ;;  %v2143_v60 = vld [vmem:[#allocation3 + $0x28] sm:$0xff] }
 0x6d3   :  { %2762 = vmatprep.subr.bf16.mxu0 %v2503_v62  ;;  %2926 = vmatprep.subr.bf16.mxu1 %v2505_v1  ;;  %v2200_v62 = vld [vmem:[#allocation3 + $0x1f0] sm:$0xff]  ;;  %v4391_v1 = vpack.c.bf16 %v4341_v2, %v4341_v2  ;;  %v2157_v2 = vld [vmem:[#allocation3 + $0x98] sm:$0xff] }
 0x6d6   :  { %2763 = vmatpush1.bf16.msra.mxu0 %v2502_v31  ;;  %2927 = vmatpush1.bf16.msra.mxu1 %v2504_v3  ;;  %v2142_v31 = vld [vmem:[#allocation3 + $0x20] sm:$0xff]  ;;  %v2144_v3 = vld [vmem:[#allocation3 + $0x30] sm:$0xff] }
 0x6d7   :  { %2764 = vmatprep.subr.bf16.mxu0 %v2510_v36  ;;  %2928 = vmatprep.subr.bf16.mxu1 %v2512_v4  ;;  %v2150_v36 = vld [vmem:[#allocation3 + $0x60] sm:$0xff]  ;;  %v2207_v4 = vld [vmem:[#allocation3 + $0x228] sm:$0xff] }
 0x6da   :  { %2765 = vmatpush1.bf16.msra.mxu0 %v2509_v10  ;;  %2929 = vmatpush1.bf16.msra.mxu1 %v2511_v11  ;;  %v2149_v10 = vld [vmem:[#allocation3 + $0x58] sm:$0xff]  ;;  %v2151_v11 = vld [vmem:[#allocation3 + $0x68] sm:$0xff] }
 0x6db   :  { %2766 = vmatprep.subr.bf16.mxu0 %v2517_v12  ;;  %2930 = vmatprep.subr.bf16.mxu1 %v2519_v6  ;;  %v2214_v12 = vld [vmem:[#allocation3 + $0x260] sm:$0xff]  ;;  %v2156_v6 = vld [vmem:[#allocation3 + $0x90] sm:$0xff] }
 0x6de   :  { %2767 = vmatpush1.bf16.msra.mxu0 %v2516_v21  ;;  %2931 = vmatpush1.bf16.msra.mxu1 %v2518_v51  ;;  %v2158_v21 = vld [vmem:[#allocation3 + $0xa0] sm:$0xff]  ;;  %v2164_v51 = vld [vmem:[#allocation3 + $0xd0] sm:$0xff] }
 0x6df   :  { %2768 = vmatprep.subr.bf16.mxu0 %v2524_v13  ;;  %2932 = vmatprep.subr.bf16.mxu1 %v2526_v55  ;;  %v2221_v13 = vld [vmem:[#allocation3 + $0x298] sm:$0xff]  ;;  %v2163_v55 = vld [vmem:[#allocation3 + $0xc8] sm:$0xff] }
 0x6e2   :  { %2769 = vmatpush1.bf16.msra.mxu0 %v2523_v14  ;;  %2933 = vmatpush1.bf16.msra.mxu1 %v2525_v27  ;;  %v2165_v14 = vld [vmem:[#allocation3 + $0xd8] sm:$0xff]  ;;  %v2171_v27 = vld [vmem:[#allocation3 + $0x108] sm:$0xff] }
 0x6e3   :  { %2770 = vmatprep.subr.bf16.mxu0 %v2531_v50  ;;  %2934 = vmatprep.subr.bf16.mxu1 %v2533_v15  ;;  %v2228_v50 = vld [vmem:[#allocation3 + $0x2d0] sm:$0xff] }
 0x6e4   :  { %v2172_v15 = vld [vmem:[#allocation3 + $0x110] sm:$0xff] }
 0x6e6   :  { %2771 = vmatpush1.bf16.msra.mxu0 %v2530_v16  ;;  %2935 = vmatpush1.bf16.msra.mxu1 %v2532_v17  ;;  %v2178_v16 = vld [vmem:[#allocation3 + $0x140] sm:$0xff]  ;;  %v2235_v17 = vld [vmem:[#allocation3 + $0x308] sm:$0xff] }
 0x6e7   :  { %2772 = vmatprep.subr.bf16.mxu0 %v2538_v18  ;;  %2936 = vmatprep.subr.bf16.mxu1 %v2540_v29  ;;  %v2177_v18 = vld [vmem:[#allocation3 + $0x138] sm:$0xff]  ;;  %v2179_v29 = vld [vmem:[#allocation3 + $0x148] sm:$0xff] }
 0x6ea   :  { %2773 = vmatpush1.bf16.msra.mxu0 %v2537_v63  ;;  %2937 = vmatpush1.bf16.msra.mxu1 %v2539_v19  ;;  %v2185_v63 = vld [vmem:[#allocation3 + $0x178] sm:$0xff]  ;;  %v2242_v19 = vld [vmem:[#allocation3 + $0x340] sm:$0xff] }
 0x6eb   :  { %2774 = vmatprep.subr.bf16.mxu0 %v2545_v49  ;;  %2938 = vmatprep.subr.bf16.mxu1 %v2547_v23  ;;  %v2184_v49 = vld [vmem:[#allocation3 + $0x170] sm:$0xff]  ;;  %v2186_v23 = vld [vmem:[#allocation3 + $0x180] sm:$0xff] }
 0x6ee   :  { %2775 = vmatpush1.bf16.msra.mxu0 %v2544_v24  ;;  %2939 = vmatpush1.bf16.msra.mxu1 %v2546_v7  ;;  %v2192_v24 = vld [vmem:[#allocation3 + $0x1b0] sm:$0xff]  ;;  %v2249_v7 = vld [vmem:[#allocation3 + $0x378] sm:$0xff] }
 0x6ef   :  { %2776 = vmatprep.subr.bf16.mxu0 %v2552_v40  ;;  %2940 = vmatprep.subr.bf16.mxu1 %v2554_v25  ;;  %v2191_v40 = vld [vmem:[#allocation3 + $0x1a8] sm:$0xff]  ;;  %v2193_v25 = vld [vmem:[#allocation3 + $0x1b8] sm:$0xff] }
 0x6f2   :  { %2777 = vmatpush1.bf16.msra.mxu0 %v2551_v0  ;;  %2941 = vmatpush1.bf16.msra.mxu1 %v2553_v20  ;;  %v2199_v0 = vld [vmem:[#allocation3 + $0x1e8] sm:$0xff]  ;;  %v2312_v20 = vld [vmem:[#allocation3 + $0x570] sm:$0xff] }
 0x6f3   :  { %2778 = vmatprep.subr.bf16.mxu0 %v2559_v26  ;;  %2942 = vmatprep.subr.bf16.mxu1 %v2561_v8  ;;  %v2198_v26 = vld [vmem:[#allocation3 + $0x1e0] sm:$0xff]  ;;  %v2256_v8 = vld [vmem:[#allocation3 + $0x3b0] sm:$0xff] }
 0x6f6   :  { %2779 = vmatpush1.bf16.msra.mxu0 %v2558_v28  ;;  %2943 = vmatpush1.bf16.msra.mxu1 %v2560_v38  ;;  %v2206_v28 = vld [vmem:[#allocation3 + $0x220] sm:$0xff]  ;;  %v2319_v38 = vld [vmem:[#allocation3 + $0x5a8] sm:$0xff] }
 0x6f7   :  { %2780 = vmatprep.subr.bf16.mxu0 %v2566_v44  ;;  %2944 = vmatprep.subr.bf16.mxu1 %v2568_v45  ;;  %v2205_v44 = vld [vmem:[#allocation3 + $0x218] sm:$0xff]  ;;  %v2263_v45 = vld [vmem:[#allocation3 + $0x3e8] sm:$0xff] }
 0x6fa   :  { %2781 = vmatpush1.bf16.msra.mxu0 %v2565_v43  ;;  %2945 = vmatpush1.bf16.msra.mxu1 %v2567_v30  ;;  %v2213_v43 = vld [vmem:[#allocation3 + $0x258] sm:$0xff]  ;;  %v2326_v30 = vld [vmem:[#allocation3 + $0x5e0] sm:$0xff] }
 0x6fb   :  { %2782 = vmatprep.subr.bf16.mxu0 %v2573_v47  ;;  %2946 = vmatprep.subr.bf16.mxu1 %v2575_v48  ;;  %v2212_v47 = vld [vmem:[#allocation3 + $0x250] sm:$0xff]  ;;  %v2270_v48 = vld [vmem:[#allocation3 + $0x420] sm:$0xff] }
 0x6fe   :  { %2783 = vmatpush1.bf16.msra.mxu0 %v2572_v52  ;;  %2947 = vmatpush1.bf16.msra.mxu1 %v2574_v41  ;;  %v2220_v52 = vld [vmem:[#allocation3 + $0x290] sm:$0xff]  ;;  %v2333_v41 = vld [vmem:[#allocation3 + $0x618] sm:$0xff] }
 0x6ff   :  { %2784 = vmatprep.subr.bf16.mxu0 %v2580_v53  ;;  %2948 = vmatprep.subr.bf16.mxu1 %v2582_v54  ;;  %v2219_v53 = vld [vmem:[#allocation3 + $0x288] sm:$0xff]  ;;  %v2277_v54 = vld [vmem:[#allocation3 + $0x458] sm:$0xff] }
 0x702   :  { %2785 = vmatpush1.bf16.msra.mxu0 %v2579_v33  ;;  %2949 = vmatpush1.bf16.msra.mxu1 %v2581_v59  ;;  %v2227_v33 = vld [vmem:[#allocation3 + $0x2c8] sm:$0xff]  ;;  %v2340_v59 = vld [vmem:[#allocation3 + $0x650] sm:$0xff] }
 0x703   :  { %2959 = vmatprep.subr.bf16.mxu0 %v2143_v60  ;;  %3465 = vmatprep.subr.bf16.mxu1 %v2200_v62  ;;  %v2226_v60 = vld [vmem:[#allocation3 + $0x2c0] sm:$0xff]  ;;  %v2284_v62 = vld [vmem:[#allocation3 + $0x490] sm:$0xff] }
 0x705   :  { %2787 = vmatmul.mubr.bf16.vlgmr.msra.gmra.mrb[12].mxu0 %v4391_v1  ;;  %2951 = vmatmul.mubr.bf16.vlgmr.msra.gmra.mrb[20].mxu1 %v4391_v1 }
 0x706   :  { %2960 = vmatpush1.bf16.msra.mxu0 %v2142_v31  ;;  %3466 = vmatpush3.bf16.msra.mxu1 %v2144_v3  ;;  %v2234_v31 = vld [vmem:[#allocation3 + $0x300] sm:$0xff]  ;;  %v2347_v3 = vld [vmem:[#allocation3 + $0x688] sm:$0xff] }
 0x707   :  { %2961 = vmatprep.subr.bf16.mxu0 %v2150_v36  ;;  %3467 = vmatprep.subr.bf16.mxu1 %v2207_v4  ;;  %v2233_v36 = vld [vmem:[#allocation3 + $0x2f8] sm:$0xff]  ;;  %v2291_v4 = vld [vmem:[#allocation3 + $0x4c8] sm:$0xff] }
 0x708   :  { %2991 = vmatprep.mubr.bf16.mxu0 %v4349_v42  ;;  %3155 = vmatprep.mubr.bf16.mxu1 %v4349_v42  ;;  %v2170_v42 = vld [vmem:[#allocation3 + $0x100] sm:$0xff] }
 0x70a   :  { %2962 = vmatpush1.bf16.msra.mxu0 %v2149_v10  ;;  %3468 = vmatpush3.bf16.msra.mxu1 %v2151_v11  ;;  %v2241_v10 = vld [vmem:[#allocation3 + $0x338] sm:$0xff]  ;;  %v2354_v11 = vld [vmem:[#allocation3 + $0x6c0] sm:$0xff] }
 0x70b   :  { %2963 = vmatprep.subr.bf16.mxu0 %v2157_v2  ;;  %3469 = vmatprep.subr.bf16.mxu1 %v2214_v12  ;;  %v2240_v2 = vld [vmem:[#allocation3 + $0x330] sm:$0xff]  ;;  %v2298_v12 = vld [vmem:[#allocation3 + $0x500] sm:$0xff] }
 0x70e   :  { %2964 = vmatpush1.bf16.msra.mxu0 %v2156_v6  ;;  %3470 = vmatpush3.bf16.msra.mxu1 %v2158_v21  ;;  %v2248_v6 = vld [vmem:[#allocation3 + $0x370] sm:$0xff]  ;;  %v2361_v21 = vld [vmem:[#allocation3 + $0x6f8] sm:$0xff] }
 0x70f   :  { %2965 = vmatprep.subr.bf16.mxu0 %v2164_v51  ;;  %3471 = vmatprep.subr.bf16.mxu1 %v2221_v13  ;;  %v2247_v51 = vld [vmem:[#allocation3 + $0x368] sm:$0xff]  ;;  %v2305_v13 = vld [vmem:[#allocation3 + $0x538] sm:$0xff] }
 0x712   :  { %2966 = vmatpush1.bf16.msra.mxu0 %v2163_v55  ;;  %3472 = vmatpush3.bf16.msra.mxu1 %v2165_v14  ;;  %v2255_v55 = vld [vmem:[#allocation3 + $0x3a8] sm:$0xff]  ;;  %v2424_v14 = vld [vmem:[#allocation3 + $0x8f0] sm:$0xff] }
 0x713   :  { %2967 = vmatprep.subr.bf16.mxu0 %v2171_v27  ;;  %3473 = vmatprep.subr.bf16.mxu1 %v2228_v50  ;;  %v2254_v27 = vld [vmem:[#allocation3 + $0x3a0] sm:$0xff]  ;;  %v2368_v50 = vld [vmem:[#allocation3 + $0x730] sm:$0xff] }
 0x716   :  { %2968 = vmatpush1.bf16.msra.mxu0 %v2170_v42  ;;  %3474 = vmatpush3.bf16.msra.mxu1 %v2172_v15  ;;  %v2262_v42 = vld [vmem:[#allocation3 + $0x3e0] sm:$0xff]  ;;  %v2431_v15 = vld [vmem:[#allocation3 + $0x928] sm:$0xff] }
 0x717   :  { %2969 = vmatprep.subr.bf16.mxu0 %v2178_v16  ;;  %3475 = vmatprep.subr.bf16.mxu1 %v2235_v17  ;;  %v2261_v16 = vld [vmem:[#allocation3 + $0x3d8] sm:$0xff]  ;;  %v2375_v17 = vld [vmem:[#allocation3 + $0x768] sm:$0xff] }
 0x71a   :  { %2970 = vmatpush1.bf16.msra.mxu0 %v2177_v18  ;;  %3476 = vmatpush3.bf16.msra.mxu1 %v2179_v29  ;;  %v2269_v18 = vld [vmem:[#allocation3 + $0x418] sm:$0xff]  ;;  %v2438_v29 = vld [vmem:[#allocation3 + $0x960] sm:$0xff] }
 0x71b   :  { %2971 = vmatprep.subr.bf16.mxu0 %v2185_v63  ;;  %3477 = vmatprep.subr.bf16.mxu1 %v2242_v19  ;;  %v2268_v63 = vld [vmem:[#allocation3 + $0x410] sm:$0xff] }
 0x71c   :  { %v2276_v19 = vld [vmem:[#allocation3 + $0x450] sm:$0xff] }
 0x71e   :  { %2972 = vmatpush1.bf16.msra.mxu0 %v2184_v49  ;;  %3478 = vmatpush3.bf16.msra.mxu1 %v2186_v23  ;;  %v2445_v49 = vld [vmem:[#allocation3 + $0x998] sm:$0xff]  ;;  %v2275_v23 = vld [vmem:[#allocation3 + $0x448] sm:$0xff] }
 0x71f   :  { %2973 = vmatprep.subr.bf16.mxu0 %v2192_v24  ;;  %3479 = vmatprep.subr.bf16.mxu1 %v2249_v7  ;;  %v2389_v24 = vld [vmem:[#allocation3 + $0x7d8] sm:$0xff]  ;;  %v2283_v7 = vld [vmem:[#allocation3 + $0x488] sm:$0xff] }
 0x722   :  { %2974 = vmatpush1.bf16.msra.mxu0 %v2191_v40  ;;  %3480 = vmatpush3.bf16.msra.mxu1 %v2193_v25  ;;  %v2452_v40 = vld [vmem:[#allocation3 + $0x9d0] sm:$0xff] }
 0x723   :  { %2975 = vmatprep.subr.bf16.mxu0 %v2199_v0  ;;  %3487 = vmatprep.subr.bf16.mxu1 %v2312_v20  ;;  %v2396_v25 = vld [vmem:[#allocation3 + $0x810] sm:$0xff]  ;;  %v2290_v0 = vld [vmem:[#allocation3 + $0x4c0] sm:$0xff]  ;;  %v2459_v20 = vld [vmem:[#allocation3 + $0xa08] sm:$0xff] }
 0x725   :  { %3156 = vmatmul.mubr.bf16.vlgmr.msra.gmra.mrb[24].mxu1 %v4355_v5 }
 0x726   :  { %2976 = vmatpush1.bf16.msra.mxu0 %v2198_v26  ;;  %3488 = vmatpush3.bf16.msra.mxu1 %v2256_v8  ;;  %v2289_v26 = vld [vmem:[#allocation3 + $0x4b8] sm:$0xff]  ;;  %v2403_v8 = vld [vmem:[#allocation3 + $0x848] sm:$0xff] }
 0x727   :  { %2977 = vmatprep.subr.bf16.mxu0 %v2206_v28  ;;  %3489 = vmatprep.subr.bf16.mxu1 %v2319_v38  ;;  %v2297_v28 = vld [vmem:[#allocation3 + $0x4f8] sm:$0xff]  ;;  %v2466_v38 = vld [vmem:[#allocation3 + $0xa40] sm:$0xff] }
 0x728   :  { %3195 = vmatprep.mubr.bf16.mxu1 %v4359_v61 }
 0x72a   :  { %2978 = vmatpush1.bf16.msra.mxu0 %v2205_v44  ;;  %3490 = vmatpush3.bf16.msra.mxu1 %v2263_v45  ;;  %v2296_v44 = vld [vmem:[#allocation3 + $0x4f0] sm:$0xff]  ;;  %v2410_v45 = vld [vmem:[#allocation3 + $0x880] sm:$0xff] }
 0x72b   :  { %2979 = vmatprep.subr.bf16.mxu0 %v2213_v43  ;;  %3491 = vmatprep.subr.bf16.mxu1 %v2326_v30  ;;  %v2304_v43 = vld [vmem:[#allocation3 + $0x530] sm:$0xff]  ;;  %v2473_v30 = vld [vmem:[#allocation3 + $0xa78] sm:$0xff] }
 0x72e   :  { %2980 = vmatpush1.bf16.msra.mxu0 %v2212_v47  ;;  %3492 = vmatpush3.bf16.msra.mxu1 %v2270_v48  ;;  %v2303_v47 = vld [vmem:[#allocation3 + $0x528] sm:$0xff]  ;;  %v2417_v48 = vld [vmem:[#allocation3 + $0x8b8] sm:$0xff] }
 0x72f   :  { %2981 = vmatprep.subr.bf16.mxu0 %v2220_v52  ;;  %3493 = vmatprep.subr.bf16.mxu1 %v2333_v41  ;;  %v2311_v52 = vld [vmem:[#allocation3 + $0x568] sm:$0xff]  ;;  %v2536_v41 = vld [vmem:[#allocation3 + $0xc70] sm:$0xff] }
 0x732   :  { %2982 = vmatpush1.bf16.msra.mxu0 %v2219_v53  ;;  %3494 = vmatpush3.bf16.msra.mxu1 %v2277_v54  ;;  %v2310_v53 = vld [vmem:[#allocation3 + $0x560] sm:$0xff]  ;;  %v2480_v54 = vld [vmem:[#allocation3 + $0xab0] sm:$0xff] }
 0x733   :  { %2983 = vmatprep.subr.bf16.mxu0 %v2227_v33  ;;  %3495 = vmatprep.subr.bf16.mxu1 %v2340_v59  ;;  %v2318_v33 = vld [vmem:[#allocation3 + $0x5a0] sm:$0xff]  ;;  %v2543_v59 = vld [vmem:[#allocation3 + $0xca8] sm:$0xff] }
 0x736   :  { %2984 = vmatpush1.bf16.msra.mxu0 %v2226_v60  ;;  %3496 = vmatpush3.bf16.msra.mxu1 %v2284_v62  ;;  %v2317_v60 = vld [vmem:[#allocation3 + $0x598] sm:$0xff]  ;;  %v2487_v62 = vld [vmem:[#allocation3 + $0xae8] sm:$0xff] }
 0x737   :  { %2985 = vmatprep.subr.bf16.mxu0 %v2234_v31  ;;  %3497 = vmatprep.subr.bf16.mxu1 %v2347_v3  ;;  %v2325_v31 = vld [vmem:[#allocation3 + $0x5d8] sm:$0xff]  ;;  %v2550_v3 = vld [vmem:[#allocation3 + $0xce0] sm:$0xff] }
 0x73a   :  { %2986 = vmatpush1.bf16.msra.mxu0 %v2233_v36  ;;  %3498 = vmatpush3.bf16.msra.mxu1 %v2291_v4  ;;  %v2324_v36 = vld [vmem:[#allocation3 + $0x5d0] sm:$0xff]  ;;  %v2494_v4 = vld [vmem:[#allocation3 + $0xb20] sm:$0xff] }
 0x73b   :  { %2987 = vmatprep.subr.bf16.mxu0 %v2241_v10  ;;  %3499 = vmatprep.subr.bf16.mxu1 %v2354_v11  ;;  %v2332_v10 = vld [vmem:[#allocation3 + $0x610] sm:$0xff]  ;;  %v2557_v11 = vld [vmem:[#allocation3 + $0xd18] sm:$0xff] }
 0x73e   :  { %2988 = vmatpush1.bf16.msra.mxu0 %v2240_v2  ;;  %3500 = vmatpush3.bf16.msra.mxu1 %v2298_v12  ;;  %v2331_v2 = vld [vmem:[#allocation3 + $0x608] sm:$0xff]  ;;  %v2501_v12 = vld [vmem:[#allocation3 + $0xb58] sm:$0xff] }
 0x73f   :  { %2989 = vmatprep.subr.bf16.mxu0 %v2248_v6  ;;  %3501 = vmatprep.subr.bf16.mxu1 %v2361_v21  ;;  %v2339_v6 = vld [vmem:[#allocation3 + $0x648] sm:$0xff]  ;;  %v2564_v21 = vld [vmem:[#allocation3 + $0xd50] sm:$0xff] }
 0x742   :  { %2990 = vmatpush1.bf16.msra.mxu0 %v2247_v51  ;;  %3502 = vmatpush3.bf16.msra.mxu1 %v2305_v13  ;;  %v2338_v51 = vld [vmem:[#allocation3 + $0x640] sm:$0xff]  ;;  %v2508_v13 = vld [vmem:[#allocation3 + $0xb90] sm:$0xff] }
 0x743   :  { %3000 = vmatprep.subr.bf16.mxu0 %v2255_v55  ;;  %3509 = vmatprep.subr.bf16.mxu1 %v2424_v14  ;;  %v2346_v55 = vld [vmem:[#allocation3 + $0x680] sm:$0xff]  ;;  %v2571_v14 = vld [vmem:[#allocation3 + $0xd88] sm:$0xff] }
 0x745   :  { %2992 = vmatmul.mubr.bf16.vlgmr.msra.gmra.mrb[16].mxu0 %v4355_v5  ;;  %3196 = vmatmul.mubr.bf16.vlgmr.msra.gmra.mrb[28].mxu1 %v4367_v9  ;;  %v2382_v5 = vld [vmem:[#allocation3 + $0x7a0] sm:$0xff] }
 0x746   :  { %3001 = vmatpush1.bf16.msra.mxu0 %v2254_v27  ;;  %3510 = vmatpush3.bf16.msra.mxu1 %v2368_v50  ;;  %v2345_v27 = vld [vmem:[#allocation3 + $0x678] sm:$0xff]  ;;  %v2515_v50 = vld [vmem:[#allocation3 + $0xbc8] sm:$0xff] }
 0x747   :  { %3002 = vmatprep.subr.bf16.mxu0 %v2262_v42  ;;  %3511 = vmatprep.subr.bf16.mxu1 %v2431_v15  ;;  %v2353_v42 = vld [vmem:[#allocation3 + $0x6b8] sm:$0xff]  ;;  %v2578_v15 = vld [vmem:[#allocation3 + $0xdc0] sm:$0xff] }
 0x748   :  { %3032 = vmatprep.mubr.bf16.mxu0 %v4359_v61  ;;  %3235 = vmatprep.mubr.bf16.mxu1 %v4371_v22  ;;  %v2282_v61 = vld [vmem:[#allocation3 + $0x480] sm:$0xff] }
 0x74a   :  { %3003 = vmatpush1.bf16.msra.mxu0 %v2261_v16  ;;  %3512 = vmatpush3.bf16.msra.mxu1 %v2375_v17  ;;  %v2352_v16 = vld [vmem:[#allocation3 + $0x6b0] sm:$0xff]  ;;  %v2522_v17 = vld [vmem:[#allocation3 + $0xc00] sm:$0xff] }
 0x74b   :  { %3004 = vmatprep.subr.bf16.mxu0 %v2269_v18  ;;  %3513 = vmatprep.subr.bf16.mxu1 %v2438_v29  ;;  %v2360_v18 = vld [vmem:[#allocation3 + $0x6f0] sm:$0xff]  ;;  %v2585_v29 = vld [vmem:[#allocation3 + $0xdf8] sm:$0xff] }
 0x74e   :  { %3005 = vmatpush1.bf16.msra.mxu0 %v2268_v63  ;;  %3514 = vmatpush3.bf16.msra.mxu1 %v2382_v5  ;;  %v2359_v63 = vld [vmem:[#allocation3 + $0x6e8] sm:$0xff]  ;;  %v2529_v5 = vld [vmem:[#allocation3 + $0xc38] sm:$0xff] }
 0x74f   :  { %3006 = vmatprep.subr.bf16.mxu0 %v2276_v19  ;;  %3515 = vmatprep.subr.bf16.mxu1 %v2445_v49  ;;  %v2367_v19 = vld [vmem:[#allocation3 + $0x728] sm:$0xff]  ;;  %v2366_v49 = vld [vmem:[#allocation3 + $0x720] sm:$0xff] }
 0x752   :  { %3007 = vmatpush1.bf16.msra.mxu0 %v2275_v23  ;;  %3516 = vmatpush3.bf16.msra.mxu1 %v2389_v24  ;;  %v2374_v23 = vld [vmem:[#allocation3 + $0x760] sm:$0xff]  ;;  %v2373_v24 = vld [vmem:[#allocation3 + $0x758] sm:$0xff] }
 0x753   :  { %3008 = vmatprep.subr.bf16.mxu0 %v2283_v7  ;;  %3517 = vmatprep.subr.bf16.mxu1 %v2452_v40  ;;  %v2381_v7 = vld [vmem:[#allocation3 + $0x798] sm:$0xff]  ;;  %v2380_v40 = vld [vmem:[#allocation3 + $0x790] sm:$0xff] }
 0x756   :  { %3009 = vmatpush1.bf16.msra.mxu0 %v2282_v61  ;;  %3518 = vmatpush3.bf16.msra.mxu1 %v2396_v25  ;;  %v2388_v61 = vld [vmem:[#allocation3 + $0x7d0] sm:$0xff]  ;;  %v2387_v25 = vld [vmem:[#allocation3 + $0x7c8] sm:$0xff] }
 0x757   :  { %3010 = vmatprep.subr.bf16.mxu0 %v2290_v0  ;;  %3519 = vmatprep.subr.bf16.mxu1 %v2459_v20  ;;  %v2395_v0 = vld [vmem:[#allocation3 + $0x808] sm:$0xff]  ;;  %v2394_v20 = vld [vmem:[#allocation3 + $0x800] sm:$0xff] }
 0x75a   :  { %3011 = vmatpush1.bf16.msra.mxu0 %v2289_v26  ;;  %3520 = vmatpush3.bf16.msra.mxu1 %v2403_v8  ;;  %v2401_v26 = vld [vmem:[#allocation3 + $0x838] sm:$0xff] }
 0x75b   :  { %3012 = vmatprep.subr.bf16.mxu0 %v2297_v28  ;;  %3521 = vmatprep.subr.bf16.mxu1 %v2466_v38  ;;  %v2409_v8 = vld [vmem:[#allocation3 + $0x878] sm:$0xff]  ;;  %v2416_v28 = vld [vmem:[#allocation3 + $0x8b0] sm:$0xff]  ;;  %v2415_v38 = vld [vmem:[#allocation3 + $0x8a8] sm:$0xff] }
 0x75e   :  { %3013 = vmatpush1.bf16.msra.mxu0 %v2296_v44  ;;  %3522 = vmatpush3.bf16.msra.mxu1 %v2410_v45  ;;  %v2423_v44 = vld [vmem:[#allocation3 + $0x8e8] sm:$0xff]  ;;  %v2422_v45 = vld [vmem:[#allocation3 + $0x8e0] sm:$0xff] }
 0x75f   :  { %3014 = vmatprep.subr.bf16.mxu0 %v2304_v43  ;;  %3523 = vmatprep.subr.bf16.mxu1 %v2473_v30  ;;  %v2430_v43 = vld [vmem:[#allocation3 + $0x920] sm:$0xff]  ;;  %v2429_v30 = vld [vmem:[#allocation3 + $0x918] sm:$0xff] }
 0x762   :  { %3015 = vmatpush1.bf16.msra.mxu0 %v2303_v47  ;;  %3524 = vmatpush3.bf16.msra.mxu1 %v2417_v48  ;;  %v2437_v47 = vld [vmem:[#allocation3 + $0x958] sm:$0xff]  ;;  %v2436_v48 = vld [vmem:[#allocation3 + $0x950] sm:$0xff] }
 0x763   :  { %3016 = vmatprep.subr.bf16.mxu0 %v2311_v52  ;;  %3531 = vmatprep.subr.bf16.mxu1 %v2536_v41  ;;  %v2444_v52 = vld [vmem:[#allocation3 + $0x990] sm:$0xff]  ;;  %v2443_v41 = vld [vmem:[#allocation3 + $0x988] sm:$0xff] }
 0x765   :  { %3236 = vmatmul.mubr.bf16.vlgmr.msra.gmra.mrb[32].mxu1 %v4379_v35 }
 0x766   :  { %3017 = vmatpush1.bf16.msra.mxu0 %v2310_v53  ;;  %3532 = vmatpush3.bf16.msra.mxu1 %v2480_v54  ;;  %v2451_v53 = vld [vmem:[#allocation3 + $0x9c8] sm:$0xff]  ;;  %v2450_v54 = vld [vmem:[#allocation3 + $0x9c0] sm:$0xff] }
 0x767   :  { %3018 = vmatprep.subr.bf16.mxu0 %v2318_v33  ;;  %3533 = vmatprep.subr.bf16.mxu1 %v2543_v59  ;;  %v2458_v33 = vld [vmem:[#allocation3 + $0xa00] sm:$0xff]  ;;  %v2457_v59 = vld [vmem:[#allocation3 + $0x9f8] sm:$0xff] }
 0x768   :  { %3275 = vmatprep.mubr.bf16.mxu1 %v4383_v46 }
 0x76a   :  { %3019 = vmatpush1.bf16.msra.mxu0 %v2317_v60  ;;  %3534 = vmatpush3.bf16.msra.mxu1 %v2487_v62  ;;  %v2465_v60 = vld [vmem:[#allocation3 + $0xa38] sm:$0xff]  ;;  %v2464_v62 = vld [vmem:[#allocation3 + $0xa30] sm:$0xff] }
 0x76b   :  { %3020 = vmatprep.subr.bf16.mxu0 %v2325_v31  ;;  %3535 = vmatprep.subr.bf16.mxu1 %v2550_v3  ;;  %v2472_v31 = vld [vmem:[#allocation3 + $0xa70] sm:$0xff]  ;;  %v2471_v3 = vld [vmem:[#allocation3 + $0xa68] sm:$0xff] }
 0x76e   :  { %3021 = vmatpush1.bf16.msra.mxu0 %v2324_v36  ;;  %3536 = vmatpush3.bf16.msra.mxu1 %v2494_v4  ;;  %v2479_v36 = vld [vmem:[#allocation3 + $0xaa8] sm:$0xff]  ;;  %v2478_v4 = vld [vmem:[#allocation3 + $0xaa0] sm:$0xff] }
 0x76f   :  { %3022 = vmatprep.subr.bf16.mxu0 %v2332_v10  ;;  %3537 = vmatprep.subr.bf16.mxu1 %v2557_v11  ;;  %v2486_v10 = vld [vmem:[#allocation3 + $0xae0] sm:$0xff]  ;;  %v2485_v11 = vld [vmem:[#allocation3 + $0xad8] sm:$0xff] }
 0x772   :  { %3023 = vmatpush1.bf16.msra.mxu0 %v2331_v2  ;;  %3538 = vmatpush3.bf16.msra.mxu1 %v2501_v12  ;;  %v2493_v2 = vld [vmem:[#allocation3 + $0xb18] sm:$0xff]  ;;  %v2492_v12 = vld [vmem:[#allocation3 + $0xb10] sm:$0xff] }
 0x773   :  { %3024 = vmatprep.subr.bf16.mxu0 %v2339_v6  ;;  %3539 = vmatprep.subr.bf16.mxu1 %v2564_v21  ;;  %v2500_v6 = vld [vmem:[#allocation3 + $0xb50] sm:$0xff]  ;;  %v2499_v21 = vld [vmem:[#allocation3 + $0xb48] sm:$0xff] }
 0x776   :  { %3025 = vmatpush1.bf16.msra.mxu0 %v2338_v51  ;;  %3540 = vmatpush3.bf16.msra.mxu1 %v2508_v13  ;;  %v2507_v51 = vld [vmem:[#allocation3 + $0xb88] sm:$0xff] }
 0x777   :  { %3026 = vmatprep.subr.bf16.mxu0 %v2346_v55  ;;  %3541 = vmatprep.subr.bf16.mxu1 %v2571_v14  ;;  %v4410_v13 = vld [vmem:[#allocation10 + $0x2d] sm:$0xff]  ;;  %v2506_v55 = vld [vmem:[#allocation3 + $0xb80] sm:$0xff] }
 0x778   :  { %v2607_v14 = vrot.slane %v4410_v13, %v4154_v32 }
 0x77a   :  { %3027 = vmatpush1.bf16.msra.mxu0 %v2345_v27  ;;  %3542 = vmatpush3.bf16.msra.mxu1 %v2515_v50  ;;  %v2603_v27 = vrot.slane %v4410_v13, %v4121_v39  ;;  %v2611_v50 = vrot.slane %v4410_v13, %v4159_v34 }
 0x77b   :  { %3028 = vmatprep.subr.bf16.mxu0 %v2353_v42  ;;  %3543 = vmatprep.subr.bf16.mxu1 %v2578_v15  ;;  %v2513_v42 = vld [vmem:[#allocation3 + $0xbb8] sm:$0xff] }
 0x77e   :  { %3029 = vmatpush1.bf16.msra.mxu0 %v2352_v16  ;;  %3544 = vmatpush3.bf16.msra.mxu1 %v2522_v17  ;;  %v2521_v17 = vld [vmem:[#allocation3 + $0xbf8] sm:$0xff] }
 0x77f   :  { %3030 = vmatprep.subr.bf16.mxu0 %v2360_v18  ;;  %3545 = vmatprep.subr.bf16.mxu1 %v2585_v29 }
 0x782   :  { %3031 = vmatpush1.bf16.msra.mxu0 %v2359_v63  ;;  %3546 = vmatpush3.bf16.msra.mxu1 %v2529_v5 }
 0x783   :  { %3041 = vmatprep.subr.bf16.mxu0 %v2367_v19 }
 0x785   :  { %3033 = vmatmul.mubr.bf16.vlgmr.msra.gmra.mrb[16].mxu0 %v4367_v9  ;;  %3276 = vmatmul.mubr.bf16.vlgmr.msra.gmra.mrb[36].mxu1 %v4391_v1  ;;  %v2402_v9 = vld [vmem:[#allocation3 + $0x840] sm:$0xff] }
 0x786   :  { %3042 = vmatpush1.bf16.msra.mxu0 %v2366_v49  ;;  %3073 = vmatprep.mubr.bf16.mxu0 %v4371_v22  ;;  %v2408_v22 = vld [vmem:[#allocation3 + $0x870] sm:$0xff] }
 0x787   :  { %3043 = vmatprep.subr.bf16.mxu0 %v2374_v23  ;;  %v2520_v23 = vld [vmem:[#allocation3 + $0xbf0] sm:$0xff] }
 0x78a   :  { %3044 = vmatpush1.bf16.msra.mxu0 %v2373_v24 }
 0x78b   :  { %3045 = vmatprep.subr.bf16.mxu0 %v2381_v7 }
 0x78e   :  { %3046 = vmatpush1.bf16.msra.mxu0 %v2380_v40 }
 0x78f   :  { %3047 = vmatprep.subr.bf16.mxu0 %v2388_v61 }
 0x792   :  { %3048 = vmatpush1.bf16.msra.mxu0 %v2387_v25  ;;  %v2528_v25 = vld [vmem:[#allocation3 + $0xc30] sm:$0xff] }
 0x793   :  { %3049 = vmatprep.subr.bf16.mxu0 %v2395_v0  ;;  %v2527_v0 = vld [vmem:[#allocation3 + $0xc28] sm:$0xff] }
 0x796   :  { %3050 = vmatpush1.bf16.msra.mxu0 %v2394_v20  ;;  %v2535_v20 = vld [vmem:[#allocation3 + $0xc68] sm:$0xff] }
 0x797   :  { %3051 = vmatprep.subr.bf16.mxu0 %v2402_v9  ;;  %v2534_v9 = vld [vmem:[#allocation3 + $0xc60] sm:$0xff] }
 0x79a   :  { %3052 = vmatpush1.bf16.msra.mxu0 %v2401_v26  ;;  %v2542_v26 = vld [vmem:[#allocation3 + $0xca0] sm:$0xff] }
 0x79b   :  { %3053 = vmatprep.subr.bf16.mxu0 %v2409_v8 }
 0x79e   :  { %3054 = vmatpush1.bf16.msra.mxu0 %v2408_v22  ;;  %v2541_v22 = vld [vmem:[#allocation3 + $0xc98] sm:$0xff] }
 0x79f   :  { %3055 = vmatprep.subr.bf16.mxu0 %v2416_v28 }
 0x7a2   :  { %3056 = vmatpush1.bf16.msra.mxu0 %v2415_v38 }
 0x7a3   :  { %3057 = vmatprep.subr.bf16.mxu0 %v2423_v44  ;;  %v2549_v44 = vld [vmem:[#allocation3 + $0xcd8] sm:$0xff] }
 0x7a6   :  { %3058 = vmatpush1.bf16.msra.mxu0 %v2422_v45 }
 0x7a7   :  { %3059 = vmatprep.subr.bf16.mxu0 %v2430_v43 }
 0x7aa   :  { %3060 = vmatpush1.bf16.msra.mxu0 %v2429_v30 }
 0x7ab   :  { %3061 = vmatprep.subr.bf16.mxu0 %v2437_v47 }
 0x7ae   :  { %3062 = vmatpush1.bf16.msra.mxu0 %v2436_v48 }
 0x7af   :  { %3063 = vmatprep.subr.bf16.mxu0 %v2444_v52  ;;  %v2548_v52 = vld [vmem:[#allocation3 + $0xcd0] sm:$0xff] }
 0x7b2   :  { %3064 = vmatpush1.bf16.msra.mxu0 %v2443_v41  ;;  %v2556_v41 = vld [vmem:[#allocation3 + $0xd10] sm:$0xff] }
 0x7b3   :  { %3065 = vmatprep.subr.bf16.mxu0 %v2451_v53  ;;  %v2555_v53 = vld [vmem:[#allocation3 + $0xd08] sm:$0xff] }
 0x7b6   :  { %3066 = vmatpush1.bf16.msra.mxu0 %v2450_v54  ;;  %v2563_v54 = vld [vmem:[#allocation3 + $0xd48] sm:$0xff] }
 0x7b7   :  { %3067 = vmatprep.subr.bf16.mxu0 %v2458_v33  ;;  %v2562_v33 = vld [vmem:[#allocation3 + $0xd40] sm:$0xff] }
 0x7ba   :  { %3068 = vmatpush1.bf16.msra.mxu0 %v2457_v59 }
 0x7bb   :  { %3069 = vmatprep.subr.bf16.mxu0 %v2465_v60  ;;  %v2570_v60 = vld [vmem:[#allocation3 + $0xd80] sm:$0xff] }
 0x7be   :  { %3070 = vmatpush1.bf16.msra.mxu0 %v2464_v62 }
 0x7bf   :  { %3071 = vmatprep.subr.bf16.mxu0 %v2472_v31 }
 0x7c2   :  { %3072 = vmatpush1.bf16.msra.mxu0 %v2471_v3 }
 0x7c3   :  { %3082 = vmatprep.subr.bf16.mxu0 %v2479_v36  ;;  %v2569_v36 = vld [vmem:[#allocation3 + $0xd78] sm:$0xff] }
 0x7c5   :  { %3074 = vmatmul.mubr.bf16.vlgmr.msra.gmra.mrb[16].mxu0 %v4379_v35  ;;  %v2514_v35 = vld [vmem:[#allocation3 + $0xbc0] sm:$0xff] }
 0x7c6   :  { %3083 = vmatpush1.bf16.msra.mxu0 %v2478_v4  ;;  %3114 = vmatprep.mubr.bf16.mxu0 %v4383_v46  ;;  %v2599_v46 = vrot.slane %v4410_v13, %v4118_v37  ;;  %v2577_v4 = vld [vmem:[#allocation3 + $0xdb8] sm:$0xff] }
 0x7c7   :  { %3084 = vmatprep.subr.bf16.mxu0 %v2486_v10 }
 0x7ca   :  { %3085 = vmatpush1.bf16.msra.mxu0 %v2485_v11 }
 0x7cb   :  { %3086 = vmatprep.subr.bf16.mxu0 %v2493_v2 }
 0x7ce   :  { %3087 = vmatpush1.bf16.msra.mxu0 %v2492_v12 }
 0x7cf   :  { %3088 = vmatprep.subr.bf16.mxu0 %v2500_v6  ;;  %v2576_v6 = vld [vmem:[#allocation3 + $0xdb0] sm:$0xff] }
 0x7d2   :  { %3089 = vmatpush1.bf16.msra.mxu0 %v2499_v21 }
 0x7d3   :  { %3090 = vmatprep.subr.bf16.mxu0 %v2507_v51  ;;  %v2584_v51 = vld [vmem:[#allocation3 + $0xdf0] sm:$0xff] }
 0x7d6   :  { %3091 = vmatpush1.bf16.msra.mxu0 %v2506_v55  ;;  %v2583_v55 = vld [vmem:[#allocation3 + $0xde8] sm:$0xff] }
 0x7d7   :  { %3092 = vmatprep.subr.bf16.mxu0 %v2514_v35  ;;  %v2623_v35 = vrot.slane %v4410_v13, %v4279_v57 }
 0x7d8   :  { %v2788_v15 = vpop.f32.mrb[12].mxu0  ;;  %v2952_v16 = vpop.f32.mrb[20].mxu1 }
 0x7d9   :  { %v3581_v18 = vadd.f32 %v2788_v15, %v2599_v46  ;;  %v3583_v29 = vadd.f32 %v2952_v16, %v2607_v14  ;;  %v2790_v63 = vpop.f32.mrb[13].mxu0  ;;  %v2954_v5 = vpop.f32.mrb[21].mxu1 }
 0x7da   :  { %v3582_v37 = vadd.f32 %v2790_v63, %v2603_v27  ;;  %v3584_v19 = vadd.f32 %v2954_v5, %v2611_v50  ;;  %v2792_v49 = vpop.f32.mrb[14].mxu0  ;;  %v2956_v32 = vpop.f32.mrb[22].mxu1  ;;  %3093 = vmatpush1.bf16.msra.mxu0 %v2513_v42 }
 0x7db   :  { %v3447_v24 = vmul.f32 -1.442695, %v3581_v18  ;;  %v3449_v39 = vmul.f32 -1.442695, %v3583_v29  ;;  %v2793_v7 = vpop.f32.mrb[15].mxu0  ;;  %v2957_v40 = vpop.f32.mrb[23].mxu1  ;;  %3094 = vmatprep.subr.bf16.mxu0 %v2521_v17 }
 0x7dc   :  { %v3448_v34 = vmul.f32 -1.442695, %v3582_v37  ;;  %v3450_v61 = vmul.f32 -1.442695, %v3584_v19 }
 0x7dd   :  { %3852 = vpow2.f32 %v3447_v24 }
 0x7de   :  { %3854 = vpow2.f32 %v3449_v39  ;;  %3095 = vmatpush1.bf16.msra.mxu0 %v2520_v23 }
 0x7df   :  { %3856 = vpow2.f32 %v3448_v34  ;;  %3096 = vmatprep.subr.bf16.mxu0 %v2528_v25  ;;  %v2615_v34 = vrot.slane %v4410_v13, %v4276_v56 }
 0x7e0   :  { %3858 = vpow2.f32 %v3450_v61  ;;  %v2619_v61 = vrot.slane %v4410_v13, %v4282_v58 }
 0x7e2   :  { %3097 = vmatpush1.bf16.msra.mxu0 %v2527_v0 }
 0x7e3   :  { %3098 = vmatprep.subr.bf16.mxu0 %v2535_v20 }
 0x7e6   :  { %3099 = vmatpush1.bf16.msra.mxu0 %v2534_v9 }
 0x7e7   :  { %v3853_v8 = vpop.eup %3852  ;;  %3100 = vmatprep.subr.bf16.mxu0 %v2542_v26 }
 0x7e8   :  { %v3855_v28 = vpop.eup %3854  ;;  %v3304_v38 = vadd.f32 1.0, %v3853_v8 }
 0x7e9   :  { %v3857_v45 = vpop.eup %3856  ;;  %v3306_v43 = vadd.f32 1.0, %v3855_v28 }
 0x7ea   :  { %v3859_v30 = vpop.eup %3858  ;;  %3860 = vrcp.f32 %v3304_v38  ;;  %v3305_v47 = vadd.f32 1.0, %v3857_v45  ;;  %3101 = vmatpush1.bf16.msra.mxu0 %v2541_v22 }
 0x7eb   :  { %3862 = vrcp.f32 %v3306_v43  ;;  %v3307_v48 = vadd.f32 1.0, %v3859_v30  ;;  %3102 = vmatprep.subr.bf16.mxu0 %v2549_v44 }
 0x7ec   :  { %3864 = vrcp.f32 %v3305_v47 }
 0x7ed   :  { %3866 = vrcp.f32 %v3307_v48 }
 0x7ee   :  { %3103 = vmatpush1.bf16.msra.mxu0 %v2548_v52 }
 0x7ef   :  { %3104 = vmatprep.subr.bf16.mxu0 %v2556_v41 }
 0x7f2   :  { %3105 = vmatpush1.bf16.msra.mxu0 %v2555_v53 }
 0x7f3   :  { %3106 = vmatprep.subr.bf16.mxu0 %v2563_v54 }
 0x7f4   :  { %v3861_v59 = vpop.eup %3860 }
 0x7f5   :  { %v3863_v62 = vpop.eup %3862  ;;  %3325 = vst [vmem:[%s4455_s7] sm:$0xff] %v3861_v59 }
 0x7f6   :  { %v3865_v31 = vpop.eup %3864  ;;  %3327 = vst [vmem:[%s4455_s7 + $0x10] sm:$0xff] %v3863_v62  ;;  %3107 = vmatpush1.bf16.msra.mxu0 %v2562_v33 }
 0x7f7   :  { %v3867_v3 = vpop.eup %3866  ;;  %3326 = vst [vmem:[%s4455_s7 + $0x8] sm:$0xff] %v3865_v31  ;;  %3108 = vmatprep.subr.bf16.mxu0 %v2570_v60 }
 0x7f8   :  { %3328 = vst [vmem:[%s4455_s7 + $0x18] sm:$0xff] %v3867_v3  ;;  %v3481_v10 = vpop.f32.mrb[24].mxu1 }
 0x7f9   :  { %v3482_v11 = vpop.f32.mrb[25].mxu1 }
 0x7fa   :  { %3109 = vmatpush1.bf16.msra.mxu0 %v2569_v36  ;;  %v3483_v2 = vadd.f32 %v3482_v11, %v3481_v10  ;;  %v3484_v12 = vpop.f32.mrb[26].mxu1 }
 0x7fb   :  { %3110 = vmatprep.subr.bf16.mxu0 %v2577_v4  ;;  %v3485_v21 = vpop.f32.mrb[27].mxu1 }
 0x7fc   :  { %v3158_v46 = vadd.f32 %v3483_v2, %v2623_v35 }
 0x7fe   :  { %3111 = vmatpush1.bf16.msra.mxu0 %v2576_v6 }
 0x7ff   :  { %3112 = vmatprep.subr.bf16.mxu0 %v2584_v51 }
 0x802   :  { %3113 = vmatpush1.bf16.msra.mxu0 %v2583_v55 }
 0x805   :  { %3115 = vmatmul.mubr.bf16.vlgmr.msra.gmra.mrb[16].mxu0 %v4391_v1 }
 0x818   :  { %v3503_v14 = vpop.f32.mrb[28].mxu1 }
 0x819   :  { %v3504_v27 = vpop.f32.mrb[29].mxu1 }
 0x81a   :  { %v3505_v50 = vadd.f32 %v3504_v27, %v3503_v14  ;;  %v3506_v42 = vpop.f32.mrb[30].mxu1 }
 0x81b   :  { %v3507_v15 = vpop.f32.mrb[31].mxu1 }
 0x81c   :  { %v3198_v16 = vadd.f32 %v3505_v50, %v3158_v46 }
 0x838   :  { %v3525_v17 = vpop.f32.mrb[32].mxu1 }
 0x839   :  { %v3526_v18 = vpop.f32.mrb[33].mxu1 }
 0x83a   :  { %v3527_v29 = vadd.f32 %v3526_v18, %v3525_v17  ;;  %v3528_v63 = vpop.f32.mrb[34].mxu1 }
 0x83b   :  { %v3529_v5 = vpop.f32.mrb[35].mxu1 }
 0x83c   :  { %v3238_v37 = vadd.f32 %v3527_v29, %v3198_v16 }
 0x858   :  { %v3547_v19 = vpop.f32.mrb[36].mxu1 }
 0x859   :  { %v3548_v49 = vpop.f32.mrb[37].mxu1 }
 0x85a   :  { %v3549_v32 = vadd.f32 %v3548_v49, %v3547_v19  ;;  %v3550_v1 = vpop.f32.mrb[38].mxu1 }
 0x85b   :  { %v3551_v23 = vpop.f32.mrb[39].mxu1 }
 0x85c   :  { %v3278_v24 = vadd.f32 %v3549_v32, %v3238_v37 }
 0x85e   :  { %v3453_v57 = vmul.f32 -1.442695, %v3278_v24 }
 0x860   :  { %3868 = vpow2.f32 %v3453_v57 }
 0x86a   :  { %v3869_v39 = vpop.eup %3868 }
 0x86b   :  { %v3310_v7 = vadd.f32 1.0, %v3869_v39 }
 0x86d   :  { %3870 = vrcp.f32 %v3310_v7 }
 0x877   :  { %v3871_v40 = vpop.eup %3870 }
 0x878   :  { %3331 = vst [vmem:[%s4455_s7 + $0x30] sm:$0xff] %v3871_v40 }
 0x8d8   :  { %v3116_v25 = vpop.f32.mrb[16].mxu0 }
 0x8d9   :  { %v3585_v0 = vadd.f32 %v3116_v25, %v2615_v34  ;;  %v3118_v20 = vpop.f32.mrb[17].mxu0 }
 0x8da   :  { %v3586_v9 = vadd.f32 %v3118_v20, %v2619_v61  ;;  %v3120_v26 = vpop.f32.mrb[18].mxu0 }
 0x8db   :  { %v3451_v8 = vmul.f32 -1.442695, %v3585_v0  ;;  %v3121_v22 = vpop.f32.mrb[19].mxu0 }
 0x8dc   :  { %v3452_v28 = vmul.f32 -1.442695, %v3586_v9 }
 0x8dd   :  { %3872 = vpow2.f32 %v3451_v8 }
 0x8de   :  { %3874 = vpow2.f32 %v3452_v28 }
 0x8e7   :  { %v3873_v38 = vpop.eup %3872 }
 0x8e8   :  { %v3875_v44 = vpop.eup %3874  ;;  %v3308_v45 = vadd.f32 1.0, %v3873_v38 }
 0x8e9   :  { %v3309_v43 = vadd.f32 1.0, %v3875_v44 }
 0x8ea   :  { %3876 = vrcp.f32 %v3308_v45 }
 0x8eb   :  { %3878 = vrcp.f32 %v3309_v43 }
 0x8f4   :  { %v3877_v56 = vpop.eup %3876 }
 0x8f5   :  { %v3879_v30 = vpop.eup %3878  ;;  %3329 = vst [vmem:[%s4455_s7 + $0x20] sm:$0xff] %v3877_v56 }
 0x8f6   :  { %3330 = vst [vmem:[%s4455_s7 + $0x28] sm:$0xff] %v3879_v30 }
 0x8f7   :  { %3336 = vsyncpa [#allocation6], 1 }
 0x8f8   :  { %3337 = vsyncpa [#allocation8], 1 }
 0x8f9   :  { %3338 = vsyncpa [#allocation11], 1 }
 0x8fa   :  { %3339 = vsyncmov [#allocation4] }
 0x8fd   :  { %s3340_s1 = vpop.sfrf %3339 }
 0x8fe   :  { %p3454_p4 = scmp.ne.s32.totalorder %s3340_s1, 0 }
 0x900   :  { %3344 = shalt.err (%p3454_p4)  }
 0x901   :  { %3346 = vsyncmov [#allocation4 + $0x1] }
 0x904   :  { %s3347_s16 = vpop.sfrf %3346 }
 0x905   :  { %p3455_p5 = scmp.ne.s32.totalorder %s3347_s16, 0 }
 0x907   :  { %3351 = shalt.err (%p3455_p5)  }

</bundles_post_ra>
